<compile_context>
chip_gen: v5e
topology: v5e:2x2
jax: 0.10.0
libtpu: 0.0.40
codegen_flags: <defaults>
</compile_context>

<pallas_src>
import functools

import jax
import jax.numpy as jnp
from jax.experimental import pallas as pl
from jax.experimental.pallas import tpu as pltpu

# MXU operand dtype. bf16 doubles effective MXU throughput on v6e/v7x and
# halves weight footprint; state / gate math stays f32. Set to jnp.float32
# for an exactly-f32 path.
MM_DTYPE = jnp.bfloat16

LANE = 128     # each gate block is padded to a multiple of the lane width
SUBLANE = 8    # batch rows are padded to a multiple of the sublane count


def _round_up(x, m):
    return (x + m - 1) // m * m


def _encoder_kernel(x_ref, wih0_ref, wihr_ref, whh_ref, b_ref, out_ref,
                    seq_sc, xproj_sc, *, T, Bp, HP, L):
    """Fused stacked-LSTM encoder (single invocation, no grid).

    x_ref   : (T*Bp, Din_p)            time-major, padded input (MM_DTYPE)
    wih0_ref: (Din_p, 4*HP)            layer-0 input->gates weight (transposed, gate-padded)
    wihr_ref: (max(L-1,1), HP, 4*HP)   layers 1..L-1 input->gates weights
    whh_ref : (L, HP, 4*HP)            hidden->gates weights
    b_ref   : (L, 1, 4*HP)             combined bias (b_ih + b_hh), float32
    out_ref : (Bp, HP)                 h_T of the last layer (float32)
    seq_sc  : (T*Bp, HP)   f32 VMEM    current layer's hidden sequence
    xproj_sc: (T*Bp, 4*HP) f32 VMEM    hoisted input projection
    """
    h_last = None
    for layer in range(L):             # L is small & static -> unrolled at trace
        # ---- Hoisted input projection: one big MXU-friendly matmul over all
        #      T*Bp rows; NOT on the serial critical path.
        if layer == 0:
            inp = x_ref[...]
            w_in = wih0_ref[...]
        else:
            inp = seq_sc[...].astype(MM_DTYPE)
            w_in = wihr_ref[layer - 1]
        xproj_sc[...] = (
            jnp.dot(inp, w_in, preferred_element_type=jnp.float32)
            + b_ref[layer]
        )

        write_seq = layer < L - 1      # last layer only needs h_T

        # ---- Serial recurrence: only h_{t-1} @ W_hh stays inside the loop.
        def step(t, carry, _layer=layer, _write_seq=write_seq):
            h, c = carry
            row = pl.multiple_of(t * Bp, SUBLANE)
            gates = xproj_sc[pl.ds(row, Bp), :] + jnp.dot(
                h.astype(MM_DTYPE), whh_ref[_layer],
                preferred_element_type=jnp.float32)
            # PyTorch gate order (i, f, g, o); each slice is 128-lane aligned.
            i_g = jax.nn.sigmoid(gates[:, 0 * HP:1 * HP])
            f_g = jax.nn.sigmoid(gates[:, 1 * HP:2 * HP])
            g_g = jnp.tanh(gates[:, 2 * HP:3 * HP])
            o_g = jax.nn.sigmoid(gates[:, 3 * HP:4 * HP])
            c_new = f_g * c + i_g * g_g
            h_new = o_g * jnp.tanh(c_new)
            if _write_seq:
                seq_sc[pl.ds(row, Bp), :] = h_new
            return h_new, c_new

        h0 = jnp.zeros((Bp, HP), jnp.float32)
        c0 = jnp.zeros((Bp, HP), jnp.float32)
        h_last, _ = jax.lax.fori_loop(
            0, T, step, (h0, c0), unroll=True if T <= 32 else 8)

    out_ref[...] = h_last


def _prep_gate_matrix(w, rows_p, HP):
    """PyTorch (4*hs, rows) weight -> transposed, gate-padded (rows_p, 4*HP).

    Gate k occupies columns [k*HP, k*HP + hs); padded rows/cols are zero, so
    padded hidden units stay exactly zero through the recurrence.
    """
    four_hs, rows = w.shape
    hs = four_hs // 4
    w_t = jnp.asarray(w, jnp.float32).T.reshape(rows, 4, hs)
    w_t = jnp.pad(w_t, ((0, rows_p - rows), (0, 0), (0, HP - hs)))
    return w_t.reshape(rows_p, 4 * HP).astype(MM_DTYPE)


def _prep_gate_bias(b_ih, b_hh, HP):
    hs = b_ih.shape[0] // 4
    b = (jnp.asarray(b_ih, jnp.float32)
         + jnp.asarray(b_hh, jnp.float32)).reshape(4, hs)
    b = jnp.pad(b, ((0, 0), (0, HP - hs)))
    return b.reshape(1, 4 * HP)


def init_encoder_params(key, input_size, num_of_layers, hs_size):
    """Deterministic parameter init, matching nn.LSTM's per-layer shapes and
    uniform(-1/sqrt(hs), 1/sqrt(hs)) initialization."""
    params = []
    bound = 1.0 / jnp.sqrt(jnp.float32(hs_size))
    for layer in range(num_of_layers):
        d_in = input_size if layer == 0 else hs_size
        key, k1, k2, k3, k4 = jax.random.split(key, 5)
        w_ih = jax.random.uniform(k1, (4 * hs_size, d_in), jnp.float32, -bound, bound)
        w_hh = jax.random.uniform(k2, (4 * hs_size, hs_size), jnp.float32, -bound, bound)
        b_ih = jax.random.uniform(k3, (4 * hs_size,), jnp.float32, -bound, bound)
        b_hh = jax.random.uniform(k4, (4 * hs_size,), jnp.float32, -bound, bound)
        params.append((w_ih, w_hh, b_ih, b_hh))
    return params


def encoder_forward(x, params, hs_size):
    """x: (B, T, input_size) batch_first, like the PyTorch module.
    Returns h_t[last_layer].view(-1, 1, hs_size) == (B, 1, hs_size)."""
    B, T, Din = x.shape
    L = len(params)
    HP = _round_up(hs_size, LANE)
    Bp = _round_up(B, SUBLANE)
    Din_p = _round_up(Din, LANE)

    # Time-major, pad batch (sublane) and feature (lane) dims, flatten rows so
    # the hoisted input projection is one large matmul.
    x_tm = jnp.transpose(jnp.asarray(x, jnp.float32), (1, 0, 2))
    x_tm = jnp.pad(x_tm, ((0, 0), (0, Bp - B), (0, Din_p - Din)))
    x2d = x_tm.reshape(T * Bp, Din_p).astype(MM_DTYPE)

    wih0 = _prep_gate_matrix(params[0][0], Din_p, HP)
    if L > 1:
        wihr = jnp.stack([_prep_gate_matrix(p[0], HP, HP) for p in params[1:]])
    else:
        wihr = jnp.zeros((1, HP, 4 * HP), MM_DTYPE)    # unused dummy
    whh = jnp.stack([_prep_gate_matrix(p[1], HP, HP) for p in params])
    bias = jnp.stack([_prep_gate_bias(p[2], p[3], HP) for p in params])

    kernel = functools.partial(_encoder_kernel, T=T, Bp=Bp, HP=HP, L=L)
    h_last = pl.pallas_call(
        kernel,
        out_shape=jax.ShapeDtypeStruct((Bp, HP), jnp.float32),
        in_specs=[pl.BlockSpec(memory_space=pltpu.MemorySpace.VMEM)] * 5,
        out_specs=pl.BlockSpec(memory_space=pltpu.MemorySpace.VMEM),
        scratch_shapes=[
            pltpu.VMEM((T * Bp, HP), jnp.float32),       # inter-layer hidden seq
            pltpu.VMEM((T * Bp, 4 * HP), jnp.float32),   # hoisted input projection
        ],
    )(x2d, wih0, wihr, whh, bias)

    return h_last[:B, :hs_size].reshape(-1, 1, hs_size)


if __name__ == "__main__":
    # Small shapes consistent with the module's forward.
    batch, seq = 2, 8
    input_size, num_of_layers, hs_size, dropout = 16, 2, 32, 0.1

    key = jax.random.PRNGKey(0)
    key, kx = jax.random.split(key)
    x = jax.random.normal(kx, (batch, seq, input_size), jnp.float32)

    params = init_encoder_params(key, input_size, num_of_layers, hs_size)

    out = encoder_forward(x, params, hs_size)
    out = jax.block_until_ready(out)
    assert out.shape == (batch, 1, hs_size), out.shape
    print("KERNEL_OK")
</pallas_src>

<mosaic_0001>
module attributes {stable_mosaic.version = 11 : i64} {
  func.func @_encoder_kernel(%arg0: memref<64x128xbf16, #tpu.memory_space<vmem>>, %arg1: memref<128x512xbf16, #tpu.memory_space<vmem>>, %arg2: memref<1x128x512xbf16, #tpu.memory_space<vmem>>, %arg3: memref<2x128x512xbf16, #tpu.memory_space<vmem>>, %arg4: memref<2x1x512xf32, #tpu.memory_space<vmem>>, %arg5: memref<8x128xf32, #tpu.memory_space<vmem>>, %arg6: memref<64x128xf32, #tpu.memory_space<vmem>>, %arg7: memref<64x512xf32, #tpu.memory_space<vmem>>) attributes {dimension_semantics = [], scalar_prefetch = 0 : i64, scratch_operands = 2 : i64, tpu.core_type = #tpu.core_type<tc>} {
    %c0 = arith.constant 0 : index
    %c0_0 = arith.constant 0 : index
    %0 = vector.load %arg0[%c0, %c0_0] : memref<64x128xbf16, #tpu.memory_space<vmem>>, vector<64x128xbf16>
    %c0_1 = arith.constant 0 : index
    %c0_2 = arith.constant 0 : index
    %1 = vector.load %arg1[%c0_1, %c0_2] : memref<128x512xbf16, #tpu.memory_space<vmem>>, vector<128x512xbf16>
    %cst = arith.constant dense<0.000000e+00> : vector<64x512xf32>
    %2 = tpu.matmul %0, %1, %cst {dimension_numbers = #tpu.dot_dimension_numbers<[1], [0], [0], [1], [0, 0, 1, 1], [], []>} : vector<64x128xbf16>, vector<128x512xbf16>, vector<64x512xf32> -> vector<64x512xf32>
    %c0_3 = arith.constant 0 : index
    %c0_4 = arith.constant 0 : index
    %c0_5 = arith.constant 0 : index
    %3 = vector.load %arg4[%c0_3, %c0_4, %c0_5] : memref<2x1x512xf32, #tpu.memory_space<vmem>>, vector<1x1x512xf32>
    %4 = vector.shape_cast %3 : vector<1x1x512xf32> to vector<1x512xf32>
    %5 = vector.broadcast %4 : vector<1x512xf32> to vector<64x512xf32>
    %6 = arith.addf %2, %5 : vector<64x512xf32>
    %c0_6 = arith.constant 0 : index
    %c0_7 = arith.constant 0 : index
    %7 = vector.load %arg7[%c0_6, %c0_7] : memref<64x512xf32, #tpu.memory_space<vmem>>, vector<64x512xf32>
    tpu.vector_store %arg7[%c0_6, %c0_7], %6 {strides = array<i32>} : memref<64x512xf32, #tpu.memory_space<vmem>>, vector<64x512xf32>,
    %cst_8 = arith.constant 0.000000e+00 : f32
    %8 = vector.broadcast %cst_8 : f32 to vector<8x128xf32>
    %cst_9 = arith.constant 0.000000e+00 : f32
    %9 = vector.broadcast %cst_9 : f32 to vector<8x128xf32>
    %c0_i32 = arith.constant 0 : i32
    %c8_i32 = arith.constant 8 : i32
    %10 = arith.muli %c0_i32, %c8_i32 : i32
    %11 = tpu.assume_multiple %10, 8 : i32
    %12 = arith.index_cast %11 : i32 to index
    %c0_10 = arith.constant 0 : index
    %13 = vector.load %arg7[%12, %c0_10] : memref<64x512xf32, #tpu.memory_space<vmem>>, vector<8x512xf32>
    %14 = arith.truncf %8 : vector<8x128xf32> to vector<8x128xbf16>
    %c0_11 = arith.constant 0 : index
    %c0_12 = arith.constant 0 : index
    %c0_13 = arith.constant 0 : index
    %15 = vector.load %arg3[%c0_11, %c0_12, %c0_13] : memref<2x128x512xbf16, #tpu.memory_space<vmem>>, vector<1x128x512xbf16>
    %16 = vector.shape_cast %15 : vector<1x128x512xbf16> to vector<128x512xbf16>
    %cst_14 = arith.constant dense<0.000000e+00> : vector<8x512xf32>
    %17 = tpu.matmul %14, %16, %cst_14 {dimension_numbers = #tpu.dot_dimension_numbers<[1], [0], [0], [1], [0, 0, 1, 1], [], []>} : vector<8x128xbf16>, vector<128x512xbf16>, vector<8x512xf32> -> vector<8x512xf32>
    %18 = arith.addf %13, %17 : vector<8x512xf32>
    %19 = vector.extract_strided_slice %18 {offsets = [0, 0], sizes = [8, 128], strides = [1, 1]} : vector<8x512xf32> to vector<8x128xf32>
    %20 = arith.negf %19 : vector<8x128xf32>
    %21 = math.exp %20 : vector<8x128xf32>
    %cst_15 = arith.constant 1.000000e+00 : f32
    %22 = vector.broadcast %cst_15 : f32 to vector<8x128xf32>
    %23 = arith.addf %22, %21 : vector<8x128xf32>
    %24 = arith.divf %22, %23 : vector<8x128xf32>
    %25 = vector.extract_strided_slice %18 {offsets = [0, 128], sizes = [8, 128], strides = [1, 1]} : vector<8x512xf32> to vector<8x128xf32>
    %26 = arith.negf %25 : vector<8x128xf32>
    %27 = math.exp %26 : vector<8x128xf32>
    %cst_16 = arith.constant 1.000000e+00 : f32
    %28 = vector.broadcast %cst_16 : f32 to vector<8x128xf32>
    %29 = arith.addf %28, %27 : vector<8x128xf32>
    %30 = arith.divf %28, %29 : vector<8x128xf32>
    %31 = vector.extract_strided_slice %18 {offsets = [0, 256], sizes = [8, 128], strides = [1, 1]} : vector<8x512xf32> to vector<8x128xf32>
    %32 = math.tanh %31 : vector<8x128xf32>
    %33 = vector.extract_strided_slice %18 {offsets = [0, 384], sizes = [8, 128], strides = [1, 1]} : vector<8x512xf32> to vector<8x128xf32>
    %34 = arith.negf %33 : vector<8x128xf32>
    %35 = math.exp %34 : vector<8x128xf32>
    %cst_17 = arith.constant 1.000000e+00 : f32
    %36 = vector.broadcast %cst_17 : f32 to vector<8x128xf32>
    %37 = arith.addf %36, %35 : vector<8x128xf32>
    %38 = arith.divf %36, %37 : vector<8x128xf32>
    %39 = arith.mulf %30, %9 : vector<8x128xf32>
    %40 = arith.mulf %24, %32 : vector<8x128xf32>
    %41 = arith.addf %39, %40 : vector<8x128xf32>
    %42 = math.tanh %41 : vector<8x128xf32>
    %43 = arith.mulf %38, %42 : vector<8x128xf32>
    %44 = arith.index_cast %11 : i32 to index
    %c0_18 = arith.constant 0 : index
    %45 = vector.load %arg6[%44, %c0_18] : memref<64x128xf32, #tpu.memory_space<vmem>>, vector<8x128xf32>
    tpu.vector_store %arg6[%44, %c0_18], %43 {strides = array<i32>} : memref<64x128xf32, #tpu.memory_space<vmem>>, vector<8x128xf32>,
    %c1_i32 = arith.constant 1 : i32
    %c8_i32_19 = arith.constant 8 : i32
    %46 = arith.muli %c1_i32, %c8_i32_19 : i32
    %47 = tpu.assume_multiple %46, 8 : i32
    %48 = arith.index_cast %47 : i32 to index
    %c0_20 = arith.constant 0 : index
    %49 = vector.load %arg7[%48, %c0_20] : memref<64x512xf32, #tpu.memory_space<vmem>>, vector<8x512xf32>
    %50 = arith.truncf %43 : vector<8x128xf32> to vector<8x128xbf16>
    %c0_21 = arith.constant 0 : index
    %c0_22 = arith.constant 0 : index
    %c0_23 = arith.constant 0 : index
    %51 = vector.load %arg3[%c0_21, %c0_22, %c0_23] : memref<2x128x512xbf16, #tpu.memory_space<vmem>>, vector<1x128x512xbf16>
    %52 = vector.shape_cast %51 : vector<1x128x512xbf16> to vector<128x512xbf16>
    %cst_24 = arith.constant dense<0.000000e+00> : vector<8x512xf32>
    %53 = tpu.matmul %50, %52, %cst_24 {dimension_numbers = #tpu.dot_dimension_numbers<[1], [0], [0], [1], [0, 0, 1, 1], [], []>} : vector<8x128xbf16>, vector<128x512xbf16>, vector<8x512xf32> -> vector<8x512xf32>
    %54 = arith.addf %49, %53 : vector<8x512xf32>
    %55 = vector.extract_strided_slice %54 {offsets = [0, 0], sizes = [8, 128], strides = [1, 1]} : vector<8x512xf32> to vector<8x128xf32>
    %56 = arith.negf %55 : vector<8x128xf32>
    %57 = math.exp %56 : vector<8x128xf32>
    %cst_25 = arith.constant 1.000000e+00 : f32
    %58 = vector.broadcast %cst_25 : f32 to vector<8x128xf32>
    %59 = arith.addf %58, %57 : vector<8x128xf32>
    %60 = arith.divf %58, %59 : vector<8x128xf32>
    %61 = vector.extract_strided_slice %54 {offsets = [0, 128], sizes = [8, 128], strides = [1, 1]} : vector<8x512xf32> to vector<8x128xf32>
    %62 = arith.negf %61 : vector<8x128xf32>
    %63 = math.exp %62 : vector<8x128xf32>
    %cst_26 = arith.constant 1.000000e+00 : f32
    %64 = vector.broadcast %cst_26 : f32 to vector<8x128xf32>
    %65 = arith.addf %64, %63 : vector<8x128xf32>
    %66 = arith.divf %64, %65 : vector<8x128xf32>
    %67 = vector.extract_strided_slice %54 {offsets = [0, 256], sizes = [8, 128], strides = [1, 1]} : vector<8x512xf32> to vector<8x128xf32>
    %68 = math.tanh %67 : vector<8x128xf32>
    %69 = vector.extract_strided_slice %54 {offsets = [0, 384], sizes = [8, 128], strides = [1, 1]} : vector<8x512xf32> to vector<8x128xf32>
    %70 = arith.negf %69 : vector<8x128xf32>
    %71 = math.exp %70 : vector<8x128xf32>
    %cst_27 = arith.constant 1.000000e+00 : f32
    %72 = vector.broadcast %cst_27 : f32 to vector<8x128xf32>
    %73 = arith.addf %72, %71 : vector<8x128xf32>
    %74 = arith.divf %72, %73 : vector<8x128xf32>
    %75 = arith.mulf %66, %41 : vector<8x128xf32>
    %76 = arith.mulf %60, %68 : vector<8x128xf32>
    %77 = arith.addf %75, %76 : vector<8x128xf32>
    %78 = math.tanh %77 : vector<8x128xf32>
    %79 = arith.mulf %74, %78 : vector<8x128xf32>
    %80 = arith.index_cast %47 : i32 to index
    %c0_28 = arith.constant 0 : index
    %81 = vector.load %arg6[%80, %c0_28] : memref<64x128xf32, #tpu.memory_space<vmem>>, vector<8x128xf32>
    tpu.vector_store %arg6[%80, %c0_28], %79 {strides = array<i32>} : memref<64x128xf32, #tpu.memory_space<vmem>>, vector<8x128xf32>,
    %c2_i32 = arith.constant 2 : i32
    %c8_i32_29 = arith.constant 8 : i32
    %82 = arith.muli %c2_i32, %c8_i32_29 : i32
    %83 = tpu.assume_multiple %82, 8 : i32
    %84 = arith.index_cast %83 : i32 to index
    %c0_30 = arith.constant 0 : index
    %85 = vector.load %arg7[%84, %c0_30] : memref<64x512xf32, #tpu.memory_space<vmem>>, vector<8x512xf32>
    %86 = arith.truncf %79 : vector<8x128xf32> to vector<8x128xbf16>
    %c0_31 = arith.constant 0 : index
    %c0_32 = arith.constant 0 : index
    %c0_33 = arith.constant 0 : index
    %87 = vector.load %arg3[%c0_31, %c0_32, %c0_33] : memref<2x128x512xbf16, #tpu.memory_space<vmem>>, vector<1x128x512xbf16>
    %88 = vector.shape_cast %87 : vector<1x128x512xbf16> to vector<128x512xbf16>
    %cst_34 = arith.constant dense<0.000000e+00> : vector<8x512xf32>
    %89 = tpu.matmul %86, %88, %cst_34 {dimension_numbers = #tpu.dot_dimension_numbers<[1], [0], [0], [1], [0, 0, 1, 1], [], []>} : vector<8x128xbf16>, vector<128x512xbf16>, vector<8x512xf32> -> vector<8x512xf32>
    %90 = arith.addf %85, %89 : vector<8x512xf32>
    %91 = vector.extract_strided_slice %90 {offsets = [0, 0], sizes = [8, 128], strides = [1, 1]} : vector<8x512xf32> to vector<8x128xf32>
    %92 = arith.negf %91 : vector<8x128xf32>
    %93 = math.exp %92 : vector<8x128xf32>
    %cst_35 = arith.constant 1.000000e+00 : f32
    %94 = vector.broadcast %cst_35 : f32 to vector<8x128xf32>
    %95 = arith.addf %94, %93 : vector<8x128xf32>
    %96 = arith.divf %94, %95 : vector<8x128xf32>
    %97 = vector.extract_strided_slice %90 {offsets = [0, 128], sizes = [8, 128], strides = [1, 1]} : vector<8x512xf32> to vector<8x128xf32>
    %98 = arith.negf %97 : vector<8x128xf32>
    %99 = math.exp %98 : vector<8x128xf32>
    %cst_36 = arith.constant 1.000000e+00 : f32
    %100 = vector.broadcast %cst_36 : f32 to vector<8x128xf32>
    %101 = arith.addf %100, %99 : vector<8x128xf32>
    %102 = arith.divf %100, %101 : vector<8x128xf32>
    %103 = vector.extract_strided_slice %90 {offsets = [0, 256], sizes = [8, 128], strides = [1, 1]} : vector<8x512xf32> to vector<8x128xf32>
    %104 = math.tanh %103 : vector<8x128xf32>
    %105 = vector.extract_strided_slice %90 {offsets = [0, 384], sizes = [8, 128], strides = [1, 1]} : vector<8x512xf32> to vector<8x128xf32>
    %106 = arith.negf %105 : vector<8x128xf32>
    %107 = math.exp %106 : vector<8x128xf32>
    %cst_37 = arith.constant 1.000000e+00 : f32
    %108 = vector.broadcast %cst_37 : f32 to vector<8x128xf32>
    %109 = arith.addf %108, %107 : vector<8x128xf32>
    %110 = arith.divf %108, %109 : vector<8x128xf32>
    %111 = arith.mulf %102, %77 : vector<8x128xf32>
    %112 = arith.mulf %96, %104 : vector<8x128xf32>
    %113 = arith.addf %111, %112 : vector<8x128xf32>
    %114 = math.tanh %113 : vector<8x128xf32>
    %115 = arith.mulf %110, %114 : vector<8x128xf32>
    %116 = arith.index_cast %83 : i32 to index
    %c0_38 = arith.constant 0 : index
    %117 = vector.load %arg6[%116, %c0_38] : memref<64x128xf32, #tpu.memory_space<vmem>>, vector<8x128xf32>
    tpu.vector_store %arg6[%116, %c0_38], %115 {strides = array<i32>} : memref<64x128xf32, #tpu.memory_space<vmem>>, vector<8x128xf32>,
    %c3_i32 = arith.constant 3 : i32
    %c8_i32_39 = arith.constant 8 : i32
    %118 = arith.muli %c3_i32, %c8_i32_39 : i32
    %119 = tpu.assume_multiple %118, 8 : i32
    %120 = arith.index_cast %119 : i32 to index
    %c0_40 = arith.constant 0 : index
    %121 = vector.load %arg7[%120, %c0_40] : memref<64x512xf32, #tpu.memory_space<vmem>>, vector<8x512xf32>
    %122 = arith.truncf %115 : vector<8x128xf32> to vector<8x128xbf16>
    %c0_41 = arith.constant 0 : index
    %c0_42 = arith.constant 0 : index
    %c0_43 = arith.constant 0 : index
    %123 = vector.load %arg3[%c0_41, %c0_42, %c0_43] : memref<2x128x512xbf16, #tpu.memory_space<vmem>>, vector<1x128x512xbf16>
    %124 = vector.shape_cast %123 : vector<1x128x512xbf16> to vector<128x512xbf16>
    %cst_44 = arith.constant dense<0.000000e+00> : vector<8x512xf32>
    %125 = tpu.matmul %122, %124, %cst_44 {dimension_numbers = #tpu.dot_dimension_numbers<[1], [0], [0], [1], [0, 0, 1, 1], [], []>} : vector<8x128xbf16>, vector<128x512xbf16>, vector<8x512xf32> -> vector<8x512xf32>
    %126 = arith.addf %121, %125 : vector<8x512xf32>
    %127 = vector.extract_strided_slice %126 {offsets = [0, 0], sizes = [8, 128], strides = [1, 1]} : vector<8x512xf32> to vector<8x128xf32>
    %128 = arith.negf %127 : vector<8x128xf32>
    %129 = math.exp %128 : vector<8x128xf32>
    %cst_45 = arith.constant 1.000000e+00 : f32
    %130 = vector.broadcast %cst_45 : f32 to vector<8x128xf32>
    %131 = arith.addf %130, %129 : vector<8x128xf32>
    %132 = arith.divf %130, %131 : vector<8x128xf32>
    %133 = vector.extract_strided_slice %126 {offsets = [0, 128], sizes = [8, 128], strides = [1, 1]} : vector<8x512xf32> to vector<8x128xf32>
    %134 = arith.negf %133 : vector<8x128xf32>
    %135 = math.exp %134 : vector<8x128xf32>
    %cst_46 = arith.constant 1.000000e+00 : f32
    %136 = vector.broadcast %cst_46 : f32 to vector<8x128xf32>
    %137 = arith.addf %136, %135 : vector<8x128xf32>
    %138 = arith.divf %136, %137 : vector<8x128xf32>
    %139 = vector.extract_strided_slice %126 {offsets = [0, 256], sizes = [8, 128], strides = [1, 1]} : vector<8x512xf32> to vector<8x128xf32>
    %140 = math.tanh %139 : vector<8x128xf32>
    %141 = vector.extract_strided_slice %126 {offsets = [0, 384], sizes = [8, 128], strides = [1, 1]} : vector<8x512xf32> to vector<8x128xf32>
    %142 = arith.negf %141 : vector<8x128xf32>
    %143 = math.exp %142 : vector<8x128xf32>
    %cst_47 = arith.constant 1.000000e+00 : f32
    %144 = vector.broadcast %cst_47 : f32 to vector<8x128xf32>
    %145 = arith.addf %144, %143 : vector<8x128xf32>
    %146 = arith.divf %144, %145 : vector<8x128xf32>
    %147 = arith.mulf %138, %113 : vector<8x128xf32>
    %148 = arith.mulf %132, %140 : vector<8x128xf32>
    %149 = arith.addf %147, %148 : vector<8x128xf32>
    %150 = math.tanh %149 : vector<8x128xf32>
    %151 = arith.mulf %146, %150 : vector<8x128xf32>
    %152 = arith.index_cast %119 : i32 to index
    %c0_48 = arith.constant 0 : index
    %153 = vector.load %arg6[%152, %c0_48] : memref<64x128xf32, #tpu.memory_space<vmem>>, vector<8x128xf32>
    tpu.vector_store %arg6[%152, %c0_48], %151 {strides = array<i32>} : memref<64x128xf32, #tpu.memory_space<vmem>>, vector<8x128xf32>,
    %c4_i32 = arith.constant 4 : i32
    %c8_i32_49 = arith.constant 8 : i32
    %154 = arith.muli %c4_i32, %c8_i32_49 : i32
    %155 = tpu.assume_multiple %154, 8 : i32
    %156 = arith.index_cast %155 : i32 to index
    %c0_50 = arith.constant 0 : index
    %157 = vector.load %arg7[%156, %c0_50] : memref<64x512xf32, #tpu.memory_space<vmem>>, vector<8x512xf32>
    %158 = arith.truncf %151 : vector<8x128xf32> to vector<8x128xbf16>
    %c0_51 = arith.constant 0 : index
    %c0_52 = arith.constant 0 : index
    %c0_53 = arith.constant 0 : index
    %159 = vector.load %arg3[%c0_51, %c0_52, %c0_53] : memref<2x128x512xbf16, #tpu.memory_space<vmem>>, vector<1x128x512xbf16>
    %160 = vector.shape_cast %159 : vector<1x128x512xbf16> to vector<128x512xbf16>
    %cst_54 = arith.constant dense<0.000000e+00> : vector<8x512xf32>
    %161 = tpu.matmul %158, %160, %cst_54 {dimension_numbers = #tpu.dot_dimension_numbers<[1], [0], [0], [1], [0, 0, 1, 1], [], []>} : vector<8x128xbf16>, vector<128x512xbf16>, vector<8x512xf32> -> vector<8x512xf32>
    %162 = arith.addf %157, %161 : vector<8x512xf32>
    %163 = vector.extract_strided_slice %162 {offsets = [0, 0], sizes = [8, 128], strides = [1, 1]} : vector<8x512xf32> to vector<8x128xf32>
    %164 = arith.negf %163 : vector<8x128xf32>
    %165 = math.exp %164 : vector<8x128xf32>
    %cst_55 = arith.constant 1.000000e+00 : f32
    %166 = vector.broadcast %cst_55 : f32 to vector<8x128xf32>
    %167 = arith.addf %166, %165 : vector<8x128xf32>
    %168 = arith.divf %166, %167 : vector<8x128xf32>
    %169 = vector.extract_strided_slice %162 {offsets = [0, 128], sizes = [8, 128], strides = [1, 1]} : vector<8x512xf32> to vector<8x128xf32>
    %170 = arith.negf %169 : vector<8x128xf32>
    %171 = math.exp %170 : vector<8x128xf32>
    %cst_56 = arith.constant 1.000000e+00 : f32
    %172 = vector.broadcast %cst_56 : f32 to vector<8x128xf32>
    %173 = arith.addf %172, %171 : vector<8x128xf32>
    %174 = arith.divf %172, %173 : vector<8x128xf32>
    %175 = vector.extract_strided_slice %162 {offsets = [0, 256], sizes = [8, 128], strides = [1, 1]} : vector<8x512xf32> to vector<8x128xf32>
    %176 = math.tanh %175 : vector<8x128xf32>
    %177 = vector.extract_strided_slice %162 {offsets = [0, 384], sizes = [8, 128], strides = [1, 1]} : vector<8x512xf32> to vector<8x128xf32>
    %178 = arith.negf %177 : vector<8x128xf32>
    %179 = math.exp %178 : vector<8x128xf32>
    %cst_57 = arith.constant 1.000000e+00 : f32
    %180 = vector.broadcast %cst_57 : f32 to vector<8x128xf32>
    %181 = arith.addf %180, %179 : vector<8x128xf32>
    %182 = arith.divf %180, %181 : vector<8x128xf32>
    %183 = arith.mulf %174, %149 : vector<8x128xf32>
    %184 = arith.mulf %168, %176 : vector<8x128xf32>
    %185 = arith.addf %183, %184 : vector<8x128xf32>
    %186 = math.tanh %185 : vector<8x128xf32>
    %187 = arith.mulf %182, %186 : vector<8x128xf32>
    %188 = arith.index_cast %155 : i32 to index
    %c0_58 = arith.constant 0 : index
    %189 = vector.load %arg6[%188, %c0_58] : memref<64x128xf32, #tpu.memory_space<vmem>>, vector<8x128xf32>
    tpu.vector_store %arg6[%188, %c0_58], %187 {strides = array<i32>} : memref<64x128xf32, #tpu.memory_space<vmem>>, vector<8x128xf32>,
    %c5_i32 = arith.constant 5 : i32
    %c8_i32_59 = arith.constant 8 : i32
    %190 = arith.muli %c5_i32, %c8_i32_59 : i32
    %191 = tpu.assume_multiple %190, 8 : i32
    %192 = arith.index_cast %191 : i32 to index
    %c0_60 = arith.constant 0 : index
    %193 = vector.load %arg7[%192, %c0_60] : memref<64x512xf32, #tpu.memory_space<vmem>>, vector<8x512xf32>
    %194 = arith.truncf %187 : vector<8x128xf32> to vector<8x128xbf16>
    %c0_61 = arith.constant 0 : index
    %c0_62 = arith.constant 0 : index
    %c0_63 = arith.constant 0 : index
    %195 = vector.load %arg3[%c0_61, %c0_62, %c0_63] : memref<2x128x512xbf16, #tpu.memory_space<vmem>>, vector<1x128x512xbf16>
    %196 = vector.shape_cast %195 : vector<1x128x512xbf16> to vector<128x512xbf16>
    %cst_64 = arith.constant dense<0.000000e+00> : vector<8x512xf32>
    %197 = tpu.matmul %194, %196, %cst_64 {dimension_numbers = #tpu.dot_dimension_numbers<[1], [0], [0], [1], [0, 0, 1, 1], [], []>} : vector<8x128xbf16>, vector<128x512xbf16>, vector<8x512xf32> -> vector<8x512xf32>
    %198 = arith.addf %193, %197 : vector<8x512xf32>
    %199 = vector.extract_strided_slice %198 {offsets = [0, 0], sizes = [8, 128], strides = [1, 1]} : vector<8x512xf32> to vector<8x128xf32>
    %200 = arith.negf %199 : vector<8x128xf32>
    %201 = math.exp %200 : vector<8x128xf32>
    %cst_65 = arith.constant 1.000000e+00 : f32
    %202 = vector.broadcast %cst_65 : f32 to vector<8x128xf32>
    %203 = arith.addf %202, %201 : vector<8x128xf32>
    %204 = arith.divf %202, %203 : vector<8x128xf32>
    %205 = vector.extract_strided_slice %198 {offsets = [0, 128], sizes = [8, 128], strides = [1, 1]} : vector<8x512xf32> to vector<8x128xf32>
    %206 = arith.negf %205 : vector<8x128xf32>
    %207 = math.exp %206 : vector<8x128xf32>
    %cst_66 = arith.constant 1.000000e+00 : f32
    %208 = vector.broadcast %cst_66 : f32 to vector<8x128xf32>
    %209 = arith.addf %208, %207 : vector<8x128xf32>
    %210 = arith.divf %208, %209 : vector<8x128xf32>
    %211 = vector.extract_strided_slice %198 {offsets = [0, 256], sizes = [8, 128], strides = [1, 1]} : vector<8x512xf32> to vector<8x128xf32>
    %212 = math.tanh %211 : vector<8x128xf32>
    %213 = vector.extract_strided_slice %198 {offsets = [0, 384], sizes = [8, 128], strides = [1, 1]} : vector<8x512xf32> to vector<8x128xf32>
    %214 = arith.negf %213 : vector<8x128xf32>
    %215 = math.exp %214 : vector<8x128xf32>
    %cst_67 = arith.constant 1.000000e+00 : f32
    %216 = vector.broadcast %cst_67 : f32 to vector<8x128xf32>
    %217 = arith.addf %216, %215 : vector<8x128xf32>
    %218 = arith.divf %216, %217 : vector<8x128xf32>
    %219 = arith.mulf %210, %185 : vector<8x128xf32>
    %220 = arith.mulf %204, %212 : vector<8x128xf32>
    %221 = arith.addf %219, %220 : vector<8x128xf32>
    %222 = math.tanh %221 : vector<8x128xf32>
    %223 = arith.mulf %218, %222 : vector<8x128xf32>
    %224 = arith.index_cast %191 : i32 to index
    %c0_68 = arith.constant 0 : index
    %225 = vector.load %arg6[%224, %c0_68] : memref<64x128xf32, #tpu.memory_space<vmem>>, vector<8x128xf32>
    tpu.vector_store %arg6[%224, %c0_68], %223 {strides = array<i32>} : memref<64x128xf32, #tpu.memory_space<vmem>>, vector<8x128xf32>,
    %c6_i32 = arith.constant 6 : i32
    %c8_i32_69 = arith.constant 8 : i32
    %226 = arith.muli %c6_i32, %c8_i32_69 : i32
    %227 = tpu.assume_multiple %226, 8 : i32
    %228 = arith.index_cast %227 : i32 to index
    %c0_70 = arith.constant 0 : index
    %229 = vector.load %arg7[%228, %c0_70] : memref<64x512xf32, #tpu.memory_space<vmem>>, vector<8x512xf32>
    %230 = arith.truncf %223 : vector<8x128xf32> to vector<8x128xbf16>
    %c0_71 = arith.constant 0 : index
    %c0_72 = arith.constant 0 : index
    %c0_73 = arith.constant 0 : index
    %231 = vector.load %arg3[%c0_71, %c0_72, %c0_73] : memref<2x128x512xbf16, #tpu.memory_space<vmem>>, vector<1x128x512xbf16>
    %232 = vector.shape_cast %231 : vector<1x128x512xbf16> to vector<128x512xbf16>
    %cst_74 = arith.constant dense<0.000000e+00> : vector<8x512xf32>
    %233 = tpu.matmul %230, %232, %cst_74 {dimension_numbers = #tpu.dot_dimension_numbers<[1], [0], [0], [1], [0, 0, 1, 1], [], []>} : vector<8x128xbf16>, vector<128x512xbf16>, vector<8x512xf32> -> vector<8x512xf32>
    %234 = arith.addf %229, %233 : vector<8x512xf32>
    %235 = vector.extract_strided_slice %234 {offsets = [0, 0], sizes = [8, 128], strides = [1, 1]} : vector<8x512xf32> to vector<8x128xf32>
    %236 = arith.negf %235 : vector<8x128xf32>
    %237 = math.exp %236 : vector<8x128xf32>
    %cst_75 = arith.constant 1.000000e+00 : f32
    %238 = vector.broadcast %cst_75 : f32 to vector<8x128xf32>
    %239 = arith.addf %238, %237 : vector<8x128xf32>
    %240 = arith.divf %238, %239 : vector<8x128xf32>
    %241 = vector.extract_strided_slice %234 {offsets = [0, 128], sizes = [8, 128], strides = [1, 1]} : vector<8x512xf32> to vector<8x128xf32>
    %242 = arith.negf %241 : vector<8x128xf32>
    %243 = math.exp %242 : vector<8x128xf32>
    %cst_76 = arith.constant 1.000000e+00 : f32
    %244 = vector.broadcast %cst_76 : f32 to vector<8x128xf32>
    %245 = arith.addf %244, %243 : vector<8x128xf32>
    %246 = arith.divf %244, %245 : vector<8x128xf32>
    %247 = vector.extract_strided_slice %234 {offsets = [0, 256], sizes = [8, 128], strides = [1, 1]} : vector<8x512xf32> to vector<8x128xf32>
    %248 = math.tanh %247 : vector<8x128xf32>
    %249 = vector.extract_strided_slice %234 {offsets = [0, 384], sizes = [8, 128], strides = [1, 1]} : vector<8x512xf32> to vector<8x128xf32>
    %250 = arith.negf %249 : vector<8x128xf32>
    %251 = math.exp %250 : vector<8x128xf32>
    %cst_77 = arith.constant 1.000000e+00 : f32
    %252 = vector.broadcast %cst_77 : f32 to vector<8x128xf32>
    %253 = arith.addf %252, %251 : vector<8x128xf32>
    %254 = arith.divf %252, %253 : vector<8x128xf32>
    %255 = arith.mulf %246, %221 : vector<8x128xf32>
    %256 = arith.mulf %240, %248 : vector<8x128xf32>
    %257 = arith.addf %255, %256 : vector<8x128xf32>
    %258 = math.tanh %257 : vector<8x128xf32>
    %259 = arith.mulf %254, %258 : vector<8x128xf32>
    %260 = arith.index_cast %227 : i32 to index
    %c0_78 = arith.constant 0 : index
    %261 = vector.load %arg6[%260, %c0_78] : memref<64x128xf32, #tpu.memory_space<vmem>>, vector<8x128xf32>
    tpu.vector_store %arg6[%260, %c0_78], %259 {strides = array<i32>} : memref<64x128xf32, #tpu.memory_space<vmem>>, vector<8x128xf32>,
    %c7_i32 = arith.constant 7 : i32
    %c8_i32_79 = arith.constant 8 : i32
    %262 = arith.muli %c7_i32, %c8_i32_79 : i32
    %263 = tpu.assume_multiple %262, 8 : i32
    %264 = arith.index_cast %263 : i32 to index
    %c0_80 = arith.constant 0 : index
    %265 = vector.load %arg7[%264, %c0_80] : memref<64x512xf32, #tpu.memory_space<vmem>>, vector<8x512xf32>
    %266 = arith.truncf %259 : vector<8x128xf32> to vector<8x128xbf16>
    %c0_81 = arith.constant 0 : index
    %c0_82 = arith.constant 0 : index
    %c0_83 = arith.constant 0 : index
    %267 = vector.load %arg3[%c0_81, %c0_82, %c0_83] : memref<2x128x512xbf16, #tpu.memory_space<vmem>>, vector<1x128x512xbf16>
    %268 = vector.shape_cast %267 : vector<1x128x512xbf16> to vector<128x512xbf16>
    %cst_84 = arith.constant dense<0.000000e+00> : vector<8x512xf32>
    %269 = tpu.matmul %266, %268, %cst_84 {dimension_numbers = #tpu.dot_dimension_numbers<[1], [0], [0], [1], [0, 0, 1, 1], [], []>} : vector<8x128xbf16>, vector<128x512xbf16>, vector<8x512xf32> -> vector<8x512xf32>
    %270 = arith.addf %265, %269 : vector<8x512xf32>
    %271 = vector.extract_strided_slice %270 {offsets = [0, 0], sizes = [8, 128], strides = [1, 1]} : vector<8x512xf32> to vector<8x128xf32>
    %272 = arith.negf %271 : vector<8x128xf32>
    %273 = math.exp %272 : vector<8x128xf32>
    %cst_85 = arith.constant 1.000000e+00 : f32
    %274 = vector.broadcast %cst_85 : f32 to vector<8x128xf32>
    %275 = arith.addf %274, %273 : vector<8x128xf32>
    %276 = arith.divf %274, %275 : vector<8x128xf32>
    %277 = vector.extract_strided_slice %270 {offsets = [0, 128], sizes = [8, 128], strides = [1, 1]} : vector<8x512xf32> to vector<8x128xf32>
    %278 = arith.negf %277 : vector<8x128xf32>
    %279 = math.exp %278 : vector<8x128xf32>
    %cst_86 = arith.constant 1.000000e+00 : f32
    %280 = vector.broadcast %cst_86 : f32 to vector<8x128xf32>
    %281 = arith.addf %280, %279 : vector<8x128xf32>
    %282 = arith.divf %280, %281 : vector<8x128xf32>
    %283 = vector.extract_strided_slice %270 {offsets = [0, 256], sizes = [8, 128], strides = [1, 1]} : vector<8x512xf32> to vector<8x128xf32>
    %284 = math.tanh %283 : vector<8x128xf32>
    %285 = vector.extract_strided_slice %270 {offsets = [0, 384], sizes = [8, 128], strides = [1, 1]} : vector<8x512xf32> to vector<8x128xf32>
    %286 = arith.negf %285 : vector<8x128xf32>
    %287 = math.exp %286 : vector<8x128xf32>
    %cst_87 = arith.constant 1.000000e+00 : f32
    %288 = vector.broadcast %cst_87 : f32 to vector<8x128xf32>
    %289 = arith.addf %288, %287 : vector<8x128xf32>
    %290 = arith.divf %288, %289 : vector<8x128xf32>
    %291 = arith.mulf %282, %257 : vector<8x128xf32>
    %292 = arith.mulf %276, %284 : vector<8x128xf32>
    %293 = arith.addf %291, %292 : vector<8x128xf32>
    %294 = math.tanh %293 : vector<8x128xf32>
    %295 = arith.mulf %290, %294 : vector<8x128xf32>
    %296 = arith.index_cast %263 : i32 to index
    %c0_88 = arith.constant 0 : index
    %297 = vector.load %arg6[%296, %c0_88] : memref<64x128xf32, #tpu.memory_space<vmem>>, vector<8x128xf32>
    tpu.vector_store %arg6[%296, %c0_88], %295 {strides = array<i32>} : memref<64x128xf32, #tpu.memory_space<vmem>>, vector<8x128xf32>,
    %c8_i32_89 = arith.constant 8 : i32
    %c0_90 = arith.constant 0 : index
    %c0_91 = arith.constant 0 : index
    %298 = vector.load %arg6[%c0_90, %c0_91] : memref<64x128xf32, #tpu.memory_space<vmem>>, vector<64x128xf32>
    %299 = arith.truncf %298 : vector<64x128xf32> to vector<64x128xbf16>
    %c0_92 = arith.constant 0 : index
    %c0_93 = arith.constant 0 : index
    %c0_94 = arith.constant 0 : index
    %300 = vector.load %arg2[%c0_92, %c0_93, %c0_94] : memref<1x128x512xbf16, #tpu.memory_space<vmem>>, vector<1x128x512xbf16>
    %301 = vector.shape_cast %300 : vector<1x128x512xbf16> to vector<128x512xbf16>
    %cst_95 = arith.constant dense<0.000000e+00> : vector<64x512xf32>
    %302 = tpu.matmul %299, %301, %cst_95 {dimension_numbers = #tpu.dot_dimension_numbers<[1], [0], [0], [1], [0, 0, 1, 1], [], []>} : vector<64x128xbf16>, vector<128x512xbf16>, vector<64x512xf32> -> vector<64x512xf32>
    %c1 = arith.constant 1 : index
    %c0_96 = arith.constant 0 : index
    %c0_97 = arith.constant 0 : index
    %303 = vector.load %arg4[%c1, %c0_96, %c0_97] : memref<2x1x512xf32, #tpu.memory_space<vmem>>, vector<1x1x512xf32>
    %304 = vector.shape_cast %303 : vector<1x1x512xf32> to vector<1x512xf32>
    %305 = vector.broadcast %304 : vector<1x512xf32> to vector<64x512xf32>
    %306 = arith.addf %302, %305 : vector<64x512xf32>
    %c0_98 = arith.constant 0 : index
    %c0_99 = arith.constant 0 : index
    %307 = vector.load %arg7[%c0_98, %c0_99] : memref<64x512xf32, #tpu.memory_space<vmem>>, vector<64x512xf32>
    tpu.vector_store %arg7[%c0_98, %c0_99], %306 {strides = array<i32>} : memref<64x512xf32, #tpu.memory_space<vmem>>, vector<64x512xf32>,
    %cst_100 = arith.constant 0.000000e+00 : f32
    %308 = vector.broadcast %cst_100 : f32 to vector<8x128xf32>
    %cst_101 = arith.constant 0.000000e+00 : f32
    %309 = vector.broadcast %cst_101 : f32 to vector<8x128xf32>
    %c0_i32_102 = arith.constant 0 : i32
    %c8_i32_103 = arith.constant 8 : i32
    %310 = arith.muli %c0_i32_102, %c8_i32_103 : i32
    %311 = tpu.assume_multiple %310, 8 : i32
    %312 = arith.index_cast %311 : i32 to index
    %c0_104 = arith.constant 0 : index
    %313 = vector.load %arg7[%312, %c0_104] : memref<64x512xf32, #tpu.memory_space<vmem>>, vector<8x512xf32>
    %314 = arith.truncf %308 : vector<8x128xf32> to vector<8x128xbf16>
    %c1_105 = arith.constant 1 : index
    %c0_106 = arith.constant 0 : index
    %c0_107 = arith.constant 0 : index
    %315 = vector.load %arg3[%c1_105, %c0_106, %c0_107] : memref<2x128x512xbf16, #tpu.memory_space<vmem>>, vector<1x128x512xbf16>
    %316 = vector.shape_cast %315 : vector<1x128x512xbf16> to vector<128x512xbf16>
    %cst_108 = arith.constant dense<0.000000e+00> : vector<8x512xf32>
    %317 = tpu.matmul %314, %316, %cst_108 {dimension_numbers = #tpu.dot_dimension_numbers<[1], [0], [0], [1], [0, 0, 1, 1], [], []>} : vector<8x128xbf16>, vector<128x512xbf16>, vector<8x512xf32> -> vector<8x512xf32>
    %318 = arith.addf %313, %317 : vector<8x512xf32>
    %319 = vector.extract_strided_slice %318 {offsets = [0, 0], sizes = [8, 128], strides = [1, 1]} : vector<8x512xf32> to vector<8x128xf32>
    %320 = arith.negf %319 : vector<8x128xf32>
    %321 = math.exp %320 : vector<8x128xf32>
    %cst_109 = arith.constant 1.000000e+00 : f32
    %322 = vector.broadcast %cst_109 : f32 to vector<8x128xf32>
    %323 = arith.addf %322, %321 : vector<8x128xf32>
    %324 = arith.divf %322, %323 : vector<8x128xf32>
    %325 = vector.extract_strided_slice %318 {offsets = [0, 128], sizes = [8, 128], strides = [1, 1]} : vector<8x512xf32> to vector<8x128xf32>
    %326 = arith.negf %325 : vector<8x128xf32>
    %327 = math.exp %326 : vector<8x128xf32>
    %cst_110 = arith.constant 1.000000e+00 : f32
    %328 = vector.broadcast %cst_110 : f32 to vector<8x128xf32>
    %329 = arith.addf %328, %327 : vector<8x128xf32>
    %330 = arith.divf %328, %329 : vector<8x128xf32>
    %331 = vector.extract_strided_slice %318 {offsets = [0, 256], sizes = [8, 128], strides = [1, 1]} : vector<8x512xf32> to vector<8x128xf32>
    %332 = math.tanh %331 : vector<8x128xf32>
    %333 = vector.extract_strided_slice %318 {offsets = [0, 384], sizes = [8, 128], strides = [1, 1]} : vector<8x512xf32> to vector<8x128xf32>
    %334 = arith.negf %333 : vector<8x128xf32>
    %335 = math.exp %334 : vector<8x128xf32>
    %cst_111 = arith.constant 1.000000e+00 : f32
    %336 = vector.broadcast %cst_111 : f32 to vector<8x128xf32>
    %337 = arith.addf %336, %335 : vector<8x128xf32>
    %338 = arith.divf %336, %337 : vector<8x128xf32>
    %339 = arith.mulf %330, %309 : vector<8x128xf32>
    %340 = arith.mulf %324, %332 : vector<8x128xf32>
    %341 = arith.addf %339, %340 : vector<8x128xf32>
    %342 = math.tanh %341 : vector<8x128xf32>
    %343 = arith.mulf %338, %342 : vector<8x128xf32>
    %c1_i32_112 = arith.constant 1 : i32
    %c8_i32_113 = arith.constant 8 : i32
    %344 = arith.muli %c1_i32_112, %c8_i32_113 : i32
    %345 = tpu.assume_multiple %344, 8 : i32
    %346 = arith.index_cast %345 : i32 to index
    %c0_114 = arith.constant 0 : index
    %347 = vector.load %arg7[%346, %c0_114] : memref<64x512xf32, #tpu.memory_space<vmem>>, vector<8x512xf32>
    %348 = arith.truncf %343 : vector<8x128xf32> to vector<8x128xbf16>
    %c1_115 = arith.constant 1 : index
    %c0_116 = arith.constant 0 : index
    %c0_117 = arith.constant 0 : index
    %349 = vector.load %arg3[%c1_115, %c0_116, %c0_117] : memref<2x128x512xbf16, #tpu.memory_space<vmem>>, vector<1x128x512xbf16>
    %350 = vector.shape_cast %349 : vector<1x128x512xbf16> to vector<128x512xbf16>
    %cst_118 = arith.constant dense<0.000000e+00> : vector<8x512xf32>
    %351 = tpu.matmul %348, %350, %cst_118 {dimension_numbers = #tpu.dot_dimension_numbers<[1], [0], [0], [1], [0, 0, 1, 1], [], []>} : vector<8x128xbf16>, vector<128x512xbf16>, vector<8x512xf32> -> vector<8x512xf32>
    %352 = arith.addf %347, %351 : vector<8x512xf32>
    %353 = vector.extract_strided_slice %352 {offsets = [0, 0], sizes = [8, 128], strides = [1, 1]} : vector<8x512xf32> to vector<8x128xf32>
    %354 = arith.negf %353 : vector<8x128xf32>
    %355 = math.exp %354 : vector<8x128xf32>
    %cst_119 = arith.constant 1.000000e+00 : f32
    %356 = vector.broadcast %cst_119 : f32 to vector<8x128xf32>
    %357 = arith.addf %356, %355 : vector<8x128xf32>
    %358 = arith.divf %356, %357 : vector<8x128xf32>
    %359 = vector.extract_strided_slice %352 {offsets = [0, 128], sizes = [8, 128], strides = [1, 1]} : vector<8x512xf32> to vector<8x128xf32>
    %360 = arith.negf %359 : vector<8x128xf32>
    %361 = math.exp %360 : vector<8x128xf32>
    %cst_120 = arith.constant 1.000000e+00 : f32
    %362 = vector.broadcast %cst_120 : f32 to vector<8x128xf32>
    %363 = arith.addf %362, %361 : vector<8x128xf32>
    %364 = arith.divf %362, %363 : vector<8x128xf32>
    %365 = vector.extract_strided_slice %352 {offsets = [0, 256], sizes = [8, 128], strides = [1, 1]} : vector<8x512xf32> to vector<8x128xf32>
    %366 = math.tanh %365 : vector<8x128xf32>
    %367 = vector.extract_strided_slice %352 {offsets = [0, 384], sizes = [8, 128], strides = [1, 1]} : vector<8x512xf32> to vector<8x128xf32>
    %368 = arith.negf %367 : vector<8x128xf32>
    %369 = math.exp %368 : vector<8x128xf32>
    %cst_121 = arith.constant 1.000000e+00 : f32
    %370 = vector.broadcast %cst_121 : f32 to vector<8x128xf32>
    %371 = arith.addf %370, %369 : vector<8x128xf32>
    %372 = arith.divf %370, %371 : vector<8x128xf32>
    %373 = arith.mulf %364, %341 : vector<8x128xf32>
    %374 = arith.mulf %358, %366 : vector<8x128xf32>
    %375 = arith.addf %373, %374 : vector<8x128xf32>
    %376 = math.tanh %375 : vector<8x128xf32>
    %377 = arith.mulf %372, %376 : vector<8x128xf32>
    %c2_i32_122 = arith.constant 2 : i32
    %c8_i32_123 = arith.constant 8 : i32
    %378 = arith.muli %c2_i32_122, %c8_i32_123 : i32
    %379 = tpu.assume_multiple %378, 8 : i32
    %380 = arith.index_cast %379 : i32 to index
    %c0_124 = arith.constant 0 : index
    %381 = vector.load %arg7[%380, %c0_124] : memref<64x512xf32, #tpu.memory_space<vmem>>, vector<8x512xf32>
    %382 = arith.truncf %377 : vector<8x128xf32> to vector<8x128xbf16>
    %c1_125 = arith.constant 1 : index
    %c0_126 = arith.constant 0 : index
    %c0_127 = arith.constant 0 : index
    %383 = vector.load %arg3[%c1_125, %c0_126, %c0_127] : memref<2x128x512xbf16, #tpu.memory_space<vmem>>, vector<1x128x512xbf16>
    %384 = vector.shape_cast %383 : vector<1x128x512xbf16> to vector<128x512xbf16>
    %cst_128 = arith.constant dense<0.000000e+00> : vector<8x512xf32>
    %385 = tpu.matmul %382, %384, %cst_128 {dimension_numbers = #tpu.dot_dimension_numbers<[1], [0], [0], [1], [0, 0, 1, 1], [], []>} : vector<8x128xbf16>, vector<128x512xbf16>, vector<8x512xf32> -> vector<8x512xf32>
    %386 = arith.addf %381, %385 : vector<8x512xf32>
    %387 = vector.extract_strided_slice %386 {offsets = [0, 0], sizes = [8, 128], strides = [1, 1]} : vector<8x512xf32> to vector<8x128xf32>
    %388 = arith.negf %387 : vector<8x128xf32>
    %389 = math.exp %388 : vector<8x128xf32>
    %cst_129 = arith.constant 1.000000e+00 : f32
    %390 = vector.broadcast %cst_129 : f32 to vector<8x128xf32>
    %391 = arith.addf %390, %389 : vector<8x128xf32>
    %392 = arith.divf %390, %391 : vector<8x128xf32>
    %393 = vector.extract_strided_slice %386 {offsets = [0, 128], sizes = [8, 128], strides = [1, 1]} : vector<8x512xf32> to vector<8x128xf32>
    %394 = arith.negf %393 : vector<8x128xf32>
    %395 = math.exp %394 : vector<8x128xf32>
    %cst_130 = arith.constant 1.000000e+00 : f32
    %396 = vector.broadcast %cst_130 : f32 to vector<8x128xf32>
    %397 = arith.addf %396, %395 : vector<8x128xf32>
    %398 = arith.divf %396, %397 : vector<8x128xf32>
    %399 = vector.extract_strided_slice %386 {offsets = [0, 256], sizes = [8, 128], strides = [1, 1]} : vector<8x512xf32> to vector<8x128xf32>
    %400 = math.tanh %399 : vector<8x128xf32>
    %401 = vector.extract_strided_slice %386 {offsets = [0, 384], sizes = [8, 128], strides = [1, 1]} : vector<8x512xf32> to vector<8x128xf32>
    %402 = arith.negf %401 : vector<8x128xf32>
    %403 = math.exp %402 : vector<8x128xf32>
    %cst_131 = arith.constant 1.000000e+00 : f32
    %404 = vector.broadcast %cst_131 : f32 to vector<8x128xf32>
    %405 = arith.addf %404, %403 : vector<8x128xf32>
    %406 = arith.divf %404, %405 : vector<8x128xf32>
    %407 = arith.mulf %398, %375 : vector<8x128xf32>
    %408 = arith.mulf %392, %400 : vector<8x128xf32>
    %409 = arith.addf %407, %408 : vector<8x128xf32>
    %410 = math.tanh %409 : vector<8x128xf32>
    %411 = arith.mulf %406, %410 : vector<8x128xf32>
    %c3_i32_132 = arith.constant 3 : i32
    %c8_i32_133 = arith.constant 8 : i32
    %412 = arith.muli %c3_i32_132, %c8_i32_133 : i32
    %413 = tpu.assume_multiple %412, 8 : i32
    %414 = arith.index_cast %413 : i32 to index
    %c0_134 = arith.constant 0 : index
    %415 = vector.load %arg7[%414, %c0_134] : memref<64x512xf32, #tpu.memory_space<vmem>>, vector<8x512xf32>
    %416 = arith.truncf %411 : vector<8x128xf32> to vector<8x128xbf16>
    %c1_135 = arith.constant 1 : index
    %c0_136 = arith.constant 0 : index
    %c0_137 = arith.constant 0 : index
    %417 = vector.load %arg3[%c1_135, %c0_136, %c0_137] : memref<2x128x512xbf16, #tpu.memory_space<vmem>>, vector<1x128x512xbf16>
    %418 = vector.shape_cast %417 : vector<1x128x512xbf16> to vector<128x512xbf16>
    %cst_138 = arith.constant dense<0.000000e+00> : vector<8x512xf32>
    %419 = tpu.matmul %416, %418, %cst_138 {dimension_numbers = #tpu.dot_dimension_numbers<[1], [0], [0], [1], [0, 0, 1, 1], [], []>} : vector<8x128xbf16>, vector<128x512xbf16>, vector<8x512xf32> -> vector<8x512xf32>
    %420 = arith.addf %415, %419 : vector<8x512xf32>
    %421 = vector.extract_strided_slice %420 {offsets = [0, 0], sizes = [8, 128], strides = [1, 1]} : vector<8x512xf32> to vector<8x128xf32>
    %422 = arith.negf %421 : vector<8x128xf32>
    %423 = math.exp %422 : vector<8x128xf32>
    %cst_139 = arith.constant 1.000000e+00 : f32
    %424 = vector.broadcast %cst_139 : f32 to vector<8x128xf32>
    %425 = arith.addf %424, %423 : vector<8x128xf32>
    %426 = arith.divf %424, %425 : vector<8x128xf32>
    %427 = vector.extract_strided_slice %420 {offsets = [0, 128], sizes = [8, 128], strides = [1, 1]} : vector<8x512xf32> to vector<8x128xf32>
    %428 = arith.negf %427 : vector<8x128xf32>
    %429 = math.exp %428 : vector<8x128xf32>
    %cst_140 = arith.constant 1.000000e+00 : f32
    %430 = vector.broadcast %cst_140 : f32 to vector<8x128xf32>
    %431 = arith.addf %430, %429 : vector<8x128xf32>
    %432 = arith.divf %430, %431 : vector<8x128xf32>
    %433 = vector.extract_strided_slice %420 {offsets = [0, 256], sizes = [8, 128], strides = [1, 1]} : vector<8x512xf32> to vector<8x128xf32>
    %434 = math.tanh %433 : vector<8x128xf32>
    %435 = vector.extract_strided_slice %420 {offsets = [0, 384], sizes = [8, 128], strides = [1, 1]} : vector<8x512xf32> to vector<8x128xf32>
    %436 = arith.negf %435 : vector<8x128xf32>
    %437 = math.exp %436 : vector<8x128xf32>
    %cst_141 = arith.constant 1.000000e+00 : f32
    %438 = vector.broadcast %cst_141 : f32 to vector<8x128xf32>
    %439 = arith.addf %438, %437 : vector<8x128xf32>
    %440 = arith.divf %438, %439 : vector<8x128xf32>
    %441 = arith.mulf %432, %409 : vector<8x128xf32>
    %442 = arith.mulf %426, %434 : vector<8x128xf32>
    %443 = arith.addf %441, %442 : vector<8x128xf32>
    %444 = math.tanh %443 : vector<8x128xf32>
    %445 = arith.mulf %440, %444 : vector<8x128xf32>
    %c4_i32_142 = arith.constant 4 : i32
    %c8_i32_143 = arith.constant 8 : i32
    %446 = arith.muli %c4_i32_142, %c8_i32_143 : i32
    %447 = tpu.assume_multiple %446, 8 : i32
    %448 = arith.index_cast %447 : i32 to index
    %c0_144 = arith.constant 0 : index
    %449 = vector.load %arg7[%448, %c0_144] : memref<64x512xf32, #tpu.memory_space<vmem>>, vector<8x512xf32>
    %450 = arith.truncf %445 : vector<8x128xf32> to vector<8x128xbf16>
    %c1_145 = arith.constant 1 : index
    %c0_146 = arith.constant 0 : index
    %c0_147 = arith.constant 0 : index
    %451 = vector.load %arg3[%c1_145, %c0_146, %c0_147] : memref<2x128x512xbf16, #tpu.memory_space<vmem>>, vector<1x128x512xbf16>
    %452 = vector.shape_cast %451 : vector<1x128x512xbf16> to vector<128x512xbf16>
    %cst_148 = arith.constant dense<0.000000e+00> : vector<8x512xf32>
    %453 = tpu.matmul %450, %452, %cst_148 {dimension_numbers = #tpu.dot_dimension_numbers<[1], [0], [0], [1], [0, 0, 1, 1], [], []>} : vector<8x128xbf16>, vector<128x512xbf16>, vector<8x512xf32> -> vector<8x512xf32>
    %454 = arith.addf %449, %453 : vector<8x512xf32>
    %455 = vector.extract_strided_slice %454 {offsets = [0, 0], sizes = [8, 128], strides = [1, 1]} : vector<8x512xf32> to vector<8x128xf32>
    %456 = arith.negf %455 : vector<8x128xf32>
    %457 = math.exp %456 : vector<8x128xf32>
    %cst_149 = arith.constant 1.000000e+00 : f32
    %458 = vector.broadcast %cst_149 : f32 to vector<8x128xf32>
    %459 = arith.addf %458, %457 : vector<8x128xf32>
    %460 = arith.divf %458, %459 : vector<8x128xf32>
    %461 = vector.extract_strided_slice %454 {offsets = [0, 128], sizes = [8, 128], strides = [1, 1]} : vector<8x512xf32> to vector<8x128xf32>
    %462 = arith.negf %461 : vector<8x128xf32>
    %463 = math.exp %462 : vector<8x128xf32>
    %cst_150 = arith.constant 1.000000e+00 : f32
    %464 = vector.broadcast %cst_150 : f32 to vector<8x128xf32>
    %465 = arith.addf %464, %463 : vector<8x128xf32>
    %466 = arith.divf %464, %465 : vector<8x128xf32>
    %467 = vector.extract_strided_slice %454 {offsets = [0, 256], sizes = [8, 128], strides = [1, 1]} : vector<8x512xf32> to vector<8x128xf32>
    %468 = math.tanh %467 : vector<8x128xf32>
    %469 = vector.extract_strided_slice %454 {offsets = [0, 384], sizes = [8, 128], strides = [1, 1]} : vector<8x512xf32> to vector<8x128xf32>
    %470 = arith.negf %469 : vector<8x128xf32>
    %471 = math.exp %470 : vector<8x128xf32>
    %cst_151 = arith.constant 1.000000e+00 : f32
    %472 = vector.broadcast %cst_151 : f32 to vector<8x128xf32>
    %473 = arith.addf %472, %471 : vector<8x128xf32>
    %474 = arith.divf %472, %473 : vector<8x128xf32>
    %475 = arith.mulf %466, %443 : vector<8x128xf32>
    %476 = arith.mulf %460, %468 : vector<8x128xf32>
    %477 = arith.addf %475, %476 : vector<8x128xf32>
    %478 = math.tanh %477 : vector<8x128xf32>
    %479 = arith.mulf %474, %478 : vector<8x128xf32>
    %c5_i32_152 = arith.constant 5 : i32
    %c8_i32_153 = arith.constant 8 : i32
    %480 = arith.muli %c5_i32_152, %c8_i32_153 : i32
    %481 = tpu.assume_multiple %480, 8 : i32
    %482 = arith.index_cast %481 : i32 to index
    %c0_154 = arith.constant 0 : index
    %483 = vector.load %arg7[%482, %c0_154] : memref<64x512xf32, #tpu.memory_space<vmem>>, vector<8x512xf32>
    %484 = arith.truncf %479 : vector<8x128xf32> to vector<8x128xbf16>
    %c1_155 = arith.constant 1 : index
    %c0_156 = arith.constant 0 : index
    %c0_157 = arith.constant 0 : index
    %485 = vector.load %arg3[%c1_155, %c0_156, %c0_157] : memref<2x128x512xbf16, #tpu.memory_space<vmem>>, vector<1x128x512xbf16>
    %486 = vector.shape_cast %485 : vector<1x128x512xbf16> to vector<128x512xbf16>
    %cst_158 = arith.constant dense<0.000000e+00> : vector<8x512xf32>
    %487 = tpu.matmul %484, %486, %cst_158 {dimension_numbers = #tpu.dot_dimension_numbers<[1], [0], [0], [1], [0, 0, 1, 1], [], []>} : vector<8x128xbf16>, vector<128x512xbf16>, vector<8x512xf32> -> vector<8x512xf32>
    %488 = arith.addf %483, %487 : vector<8x512xf32>
    %489 = vector.extract_strided_slice %488 {offsets = [0, 0], sizes = [8, 128], strides = [1, 1]} : vector<8x512xf32> to vector<8x128xf32>
    %490 = arith.negf %489 : vector<8x128xf32>
    %491 = math.exp %490 : vector<8x128xf32>
    %cst_159 = arith.constant 1.000000e+00 : f32
    %492 = vector.broadcast %cst_159 : f32 to vector<8x128xf32>
    %493 = arith.addf %492, %491 : vector<8x128xf32>
    %494 = arith.divf %492, %493 : vector<8x128xf32>
    %495 = vector.extract_strided_slice %488 {offsets = [0, 128], sizes = [8, 128], strides = [1, 1]} : vector<8x512xf32> to vector<8x128xf32>
    %496 = arith.negf %495 : vector<8x128xf32>
    %497 = math.exp %496 : vector<8x128xf32>
    %cst_160 = arith.constant 1.000000e+00 : f32
    %498 = vector.broadcast %cst_160 : f32 to vector<8x128xf32>
    %499 = arith.addf %498, %497 : vector<8x128xf32>
    %500 = arith.divf %498, %499 : vector<8x128xf32>
    %501 = vector.extract_strided_slice %488 {offsets = [0, 256], sizes = [8, 128], strides = [1, 1]} : vector<8x512xf32> to vector<8x128xf32>
    %502 = math.tanh %501 : vector<8x128xf32>
    %503 = vector.extract_strided_slice %488 {offsets = [0, 384], sizes = [8, 128], strides = [1, 1]} : vector<8x512xf32> to vector<8x128xf32>
    %504 = arith.negf %503 : vector<8x128xf32>
    %505 = math.exp %504 : vector<8x128xf32>
    %cst_161 = arith.constant 1.000000e+00 : f32
    %506 = vector.broadcast %cst_161 : f32 to vector<8x128xf32>
    %507 = arith.addf %506, %505 : vector<8x128xf32>
    %508 = arith.divf %506, %507 : vector<8x128xf32>
    %509 = arith.mulf %500, %477 : vector<8x128xf32>
    %510 = arith.mulf %494, %502 : vector<8x128xf32>
    %511 = arith.addf %509, %510 : vector<8x128xf32>
    %512 = math.tanh %511 : vector<8x128xf32>
    %513 = arith.mulf %508, %512 : vector<8x128xf32>
    %c6_i32_162 = arith.constant 6 : i32
    %c8_i32_163 = arith.constant 8 : i32
    %514 = arith.muli %c6_i32_162, %c8_i32_163 : i32
    %515 = tpu.assume_multiple %514, 8 : i32
    %516 = arith.index_cast %515 : i32 to index
    %c0_164 = arith.constant 0 : index
    %517 = vector.load %arg7[%516, %c0_164] : memref<64x512xf32, #tpu.memory_space<vmem>>, vector<8x512xf32>
    %518 = arith.truncf %513 : vector<8x128xf32> to vector<8x128xbf16>
    %c1_165 = arith.constant 1 : index
    %c0_166 = arith.constant 0 : index
    %c0_167 = arith.constant 0 : index
    %519 = vector.load %arg3[%c1_165, %c0_166, %c0_167] : memref<2x128x512xbf16, #tpu.memory_space<vmem>>, vector<1x128x512xbf16>
    %520 = vector.shape_cast %519 : vector<1x128x512xbf16> to vector<128x512xbf16>
    %cst_168 = arith.constant dense<0.000000e+00> : vector<8x512xf32>
    %521 = tpu.matmul %518, %520, %cst_168 {dimension_numbers = #tpu.dot_dimension_numbers<[1], [0], [0], [1], [0, 0, 1, 1], [], []>} : vector<8x128xbf16>, vector<128x512xbf16>, vector<8x512xf32> -> vector<8x512xf32>
    %522 = arith.addf %517, %521 : vector<8x512xf32>
    %523 = vector.extract_strided_slice %522 {offsets = [0, 0], sizes = [8, 128], strides = [1, 1]} : vector<8x512xf32> to vector<8x128xf32>
    %524 = arith.negf %523 : vector<8x128xf32>
    %525 = math.exp %524 : vector<8x128xf32>
    %cst_169 = arith.constant 1.000000e+00 : f32
    %526 = vector.broadcast %cst_169 : f32 to vector<8x128xf32>
    %527 = arith.addf %526, %525 : vector<8x128xf32>
    %528 = arith.divf %526, %527 : vector<8x128xf32>
    %529 = vector.extract_strided_slice %522 {offsets = [0, 128], sizes = [8, 128], strides = [1, 1]} : vector<8x512xf32> to vector<8x128xf32>
    %530 = arith.negf %529 : vector<8x128xf32>
    %531 = math.exp %530 : vector<8x128xf32>
    %cst_170 = arith.constant 1.000000e+00 : f32
    %532 = vector.broadcast %cst_170 : f32 to vector<8x128xf32>
    %533 = arith.addf %532, %531 : vector<8x128xf32>
    %534 = arith.divf %532, %533 : vector<8x128xf32>
    %535 = vector.extract_strided_slice %522 {offsets = [0, 256], sizes = [8, 128], strides = [1, 1]} : vector<8x512xf32> to vector<8x128xf32>
    %536 = math.tanh %535 : vector<8x128xf32>
    %537 = vector.extract_strided_slice %522 {offsets = [0, 384], sizes = [8, 128], strides = [1, 1]} : vector<8x512xf32> to vector<8x128xf32>
    %538 = arith.negf %537 : vector<8x128xf32>
    %539 = math.exp %538 : vector<8x128xf32>
    %cst_171 = arith.constant 1.000000e+00 : f32
    %540 = vector.broadcast %cst_171 : f32 to vector<8x128xf32>
    %541 = arith.addf %540, %539 : vector<8x128xf32>
    %542 = arith.divf %540, %541 : vector<8x128xf32>
    %543 = arith.mulf %534, %511 : vector<8x128xf32>
    %544 = arith.mulf %528, %536 : vector<8x128xf32>
    %545 = arith.addf %543, %544 : vector<8x128xf32>
    %546 = math.tanh %545 : vector<8x128xf32>
    %547 = arith.mulf %542, %546 : vector<8x128xf32>
    %c7_i32_172 = arith.constant 7 : i32
    %c8_i32_173 = arith.constant 8 : i32
    %548 = arith.muli %c7_i32_172, %c8_i32_173 : i32
    %549 = tpu.assume_multiple %548, 8 : i32
    %550 = arith.index_cast %549 : i32 to index
    %c0_174 = arith.constant 0 : index
    %551 = vector.load %arg7[%550, %c0_174] : memref<64x512xf32, #tpu.memory_space<vmem>>, vector<8x512xf32>
    %552 = arith.truncf %547 : vector<8x128xf32> to vector<8x128xbf16>
    %c1_175 = arith.constant 1 : index
    %c0_176 = arith.constant 0 : index
    %c0_177 = arith.constant 0 : index
    %553 = vector.load %arg3[%c1_175, %c0_176, %c0_177] : memref<2x128x512xbf16, #tpu.memory_space<vmem>>, vector<1x128x512xbf16>
    %554 = vector.shape_cast %553 : vector<1x128x512xbf16> to vector<128x512xbf16>
    %cst_178 = arith.constant dense<0.000000e+00> : vector<8x512xf32>
    %555 = tpu.matmul %552, %554, %cst_178 {dimension_numbers = #tpu.dot_dimension_numbers<[1], [0], [0], [1], [0, 0, 1, 1], [], []>} : vector<8x128xbf16>, vector<128x512xbf16>, vector<8x512xf32> -> vector<8x512xf32>
    %556 = arith.addf %551, %555 : vector<8x512xf32>
    %557 = vector.extract_strided_slice %556 {offsets = [0, 0], sizes = [8, 128], strides = [1, 1]} : vector<8x512xf32> to vector<8x128xf32>
    %558 = arith.negf %557 : vector<8x128xf32>
    %559 = math.exp %558 : vector<8x128xf32>
    %cst_179 = arith.constant 1.000000e+00 : f32
    %560 = vector.broadcast %cst_179 : f32 to vector<8x128xf32>
    %561 = arith.addf %560, %559 : vector<8x128xf32>
    %562 = arith.divf %560, %561 : vector<8x128xf32>
    %563 = vector.extract_strided_slice %556 {offsets = [0, 128], sizes = [8, 128], strides = [1, 1]} : vector<8x512xf32> to vector<8x128xf32>
    %564 = arith.negf %563 : vector<8x128xf32>
    %565 = math.exp %564 : vector<8x128xf32>
    %cst_180 = arith.constant 1.000000e+00 : f32
    %566 = vector.broadcast %cst_180 : f32 to vector<8x128xf32>
    %567 = arith.addf %566, %565 : vector<8x128xf32>
    %568 = arith.divf %566, %567 : vector<8x128xf32>
    %569 = vector.extract_strided_slice %556 {offsets = [0, 256], sizes = [8, 128], strides = [1, 1]} : vector<8x512xf32> to vector<8x128xf32>
    %570 = math.tanh %569 : vector<8x128xf32>
    %571 = vector.extract_strided_slice %556 {offsets = [0, 384], sizes = [8, 128], strides = [1, 1]} : vector<8x512xf32> to vector<8x128xf32>
    %572 = arith.negf %571 : vector<8x128xf32>
    %573 = math.exp %572 : vector<8x128xf32>
    %cst_181 = arith.constant 1.000000e+00 : f32
    %574 = vector.broadcast %cst_181 : f32 to vector<8x128xf32>
    %575 = arith.addf %574, %573 : vector<8x128xf32>
    %576 = arith.divf %574, %575 : vector<8x128xf32>
    %577 = arith.mulf %568, %545 : vector<8x128xf32>
    %578 = arith.mulf %562, %570 : vector<8x128xf32>
    %579 = arith.addf %577, %578 : vector<8x128xf32>
    %580 = math.tanh %579 : vector<8x128xf32>
    %581 = arith.mulf %576, %580 : vector<8x128xf32>
    %c8_i32_182 = arith.constant 8 : i32
    %c0_183 = arith.constant 0 : index
    %c0_184 = arith.constant 0 : index
    %582 = vector.load %arg5[%c0_183, %c0_184] : memref<8x128xf32, #tpu.memory_space<vmem>>, vector<8x128xf32>
    tpu.vector_store %arg5[%c0_183, %c0_184], %581 {strides = array<i32>} : memref<8x128xf32, #tpu.memory_space<vmem>>, vector<8x128xf32>,
    return
  }
}

</mosaic_0001>

<bundles_post_ra>
// kernel: tpu_custom_call.1
= control target key start
LH: loop header
LB: loop body
LE: loop exit
PB: predicated region body
PF: predicated region fallthrough
CT: control target
= control target key end

     0   :  { %10 = vsyncpa [#allocation5], 0  ;;  %s7696_s0 = inlined_call_operand.hbm [shape: bf16[64,128], index: 0, kind: input, shape index: {}]   ;;  %s7697_s1 = inlined_call_operand.hbm [shape: bf16[128,512], index: 1, kind: input, shape index: {}]   ;;  %s7698_s2 = inlined_call_operand.hbm [shape: bf16[1,128,512], index: 2, kind: input, shape index: {}]   ;;  %s7699_s3 = inlined_call_operand.hbm [shape: bf16[2,128,512], index: 3, kind: input, shape index: {}]   ;;  %s7700_s4 = inlined_call_operand.hbm [shape: f32[2,1,512], index: 4, kind: input, shape index: {}]   ;;  %s7701_s5 = inlined_call_operand.hbm [shape: f32[8,128], index: 5, kind: output, shape index: {}]  }
   0x1   :  { %11 = vsyncpa [#allocation8], 0 }
   0x2   :  { %12 = vsyncpa [#allocation11], 0  ;;  %s31_s20 = sshll.u32 %s7697_s1, 4  ;;  %s32_s20 = int_to_ptr.hbm [resolvable:$true] %s31_s20 }
   0x3   :  { %13 = vsyncpa [#allocation6], 0  ;;  %s6869_s21 = smov [#allocation7]   ;;  %s57_s25 = sshll.u32 %s7699_s3, 4  ;;  %s58_s25 = int_to_ptr.hbm [resolvable:$true] %s57_s25 }
   0x4   :  { %s33_s22 = sshll.u32 %s6869_s21, 4  ;;  %s6870_s26 = smov 256   ;;  %s34_s22 = int_to_ptr.vmem [resolvable:$true] %s33_s22 }
   0x5   :  { %s6871_s27 = smov 16   ;;  %s6872_s28 = smov [#allocation10]  }
   0x6   :  { %39 = dma.hbm_to_vmem [thread:$0]  %s32_s20, 4096, %s34_s22, [#allocation8], %s6870_s26, %s6870_s26, %s6871_s27  }
   0x7   :  { %s59_s29 = sshll.u32 %s6872_s28, 4  ;;  %s18_s7 = sshll.u32 %s7696_s0, 4  ;;  %s60_s29 = int_to_ptr.vmem [resolvable:$true] %s59_s29  ;;  %s19_s7 = int_to_ptr.hbm [resolvable:$true] %s18_s7 }
   0x8   :  { %65 = dma.hbm_to_vmem [thread:$0]  %s58_s25, 8192, %s60_s29, [#allocation11], %s6870_s26, %s6870_s26, %s6871_s27  }
   0x9   :  { %s6873_s1 = smov [#allocation4]   ;;  %s44_s3 = sshll.u32 %s7698_s2, 4  ;;  %s45_s3 = int_to_ptr.hbm [resolvable:$true] %s44_s3 }
   0xa   :  { %s20_s8 = sshll.u32 %s6873_s1, 4  ;;  %s6874_s11 = smov 64   ;;  %s21_s8 = int_to_ptr.vmem [resolvable:$true] %s20_s8 }
   0xb   :  { %s6875_s12 = smov 4   ;;  %s6876_s13 = smov [#allocation9]  }
   0xc   :  { %26 = dma.hbm_to_vmem [thread:$0]  %s19_s7, 512, %s21_s8, [#allocation5], %s6874_s11, %s6874_s11, %s6875_s12  }
   0xd   :  { %s46_s14 = sshll.u32 %s6876_s13, 4  ;;  %s70_s0 = sshll.u32 %s7700_s4, 4  ;;  %s47_s14 = int_to_ptr.vmem [resolvable:$true] %s46_s14  ;;  %s71_s0 = int_to_ptr.hbm [resolvable:$true] %s70_s0 }
   0xe   :  { %52 = dma.hbm_to_vmem [thread:$0]  %s45_s3, 4096, %s47_s14, [#allocation8], %s6870_s26, %s6870_s26, %s6871_s27  }
   0xf   :  { %s6877_s17 = smov [#allocation12]  }
  0x10   :  { %s72_s18 = sshll.u32 %s6877_s17, 4  ;;  %s73_s18 = int_to_ptr.vmem [resolvable:$true] %s72_s18 }
  0x11   :  { %78 = dma.hbm_to_vmem [thread:$0]  %s71_s0, 128, %s73_s18, [#allocation11], %s6874_s11, %s6874_s11, %s6875_s12  }
  0x12   :  { %6861 = dma.done.wait [#allocation5], 512  }
  0x13   :  { %6862 = vsyncadd [#allocation5], 4294966784 }
  0x14   :  { %6863 = dma.done.wait [#allocation8], 8192  }
  0x15   :  { %6864 = vsyncadd [#allocation8], 4294959104 }
  0x16   :  { %6865 = dma.done.wait [#allocation11], 8320  }
  0x17   :  { %6866 = vsyncadd [#allocation11], 4294958976  ;;  %v4752_v0 = vld [vmem:[#allocation7 + $0xe0] sm:$0xf]  ;;  %v6128_v1 = vld [vmem:[#allocation7 + $0xec] sm:$0xf0] }
  0x18   :  { %v6126_v2 = vld [vmem:[#allocation7 + $0xe4] sm:$0xf]  ;;  %v4753_v3 = vor.u32 %v6128_v1, %v4752_v0  ;;  %v4754_v4 = vld [vmem:[#allocation7 + $0xf0] sm:$0xf0]  ;;  %v4760_v5 = vld [vmem:[#allocation7 + $0xe8] sm:$0xf] }
  0x19   :  { %v6129_v6 = vld [vmem:[#allocation7 + $0xf4] sm:$0xf0]  ;;  %v4757_v7 = vor.u32 %v6126_v2, %v4754_v4  ;;  %v6127_v9 = vld [vmem:[#allocation7 + $0xec] sm:$0xf]  ;;  %v4762_v10 = vld [vmem:[#allocation7 + $0xf8] sm:$0xf0] }
  0x1a   :  { %v4761_v8 = vor.u32 %v6129_v6, %v4760_v5  ;;  %v4736_v11 = vld [vmem:[#allocation7 + $0xc0] sm:$0xf]  ;;  %334 = vmatpush.bf16.msra.mxu0 %v4753_v3  ;;  %v4765_v12 = vor.u32 %v6127_v9, %v4762_v10  ;;  %v6124_v13 = vld [vmem:[#allocation7 + $0xcc] sm:$0xf0]  ;;  %v6122_v14 = vld [vmem:[#allocation7 + $0xc4] sm:$0xf] }
  0x1b   :  { %v4738_v15 = vld [vmem:[#allocation7 + $0xd0] sm:$0xf0]  ;;  %363 = vmatpush.bf16.msra.mxu1 %v4757_v7  ;;  %v4737_v16 = vor.u32 %v6124_v13, %v4736_v11  ;;  %v4744_v18 = vld [vmem:[#allocation7 + $0xc8] sm:$0xf]  ;;  %v6125_v19 = vld [vmem:[#allocation7 + $0xd4] sm:$0xf0] }
  0x1c   :  { %392 = vmatpush.bf16.msra.mxu2 %v4761_v8  ;;  %v4741_v17 = vor.u32 %v6122_v14, %v4738_v15  ;;  %v6123_v20 = vld [vmem:[#allocation7 + $0xcc] sm:$0xf]  ;;  %421 = vmatpush.bf16.msra.mxu3 %v4765_v12  ;;  %v4745_v21 = vor.u32 %v6125_v19, %v4744_v18  ;;  %v4746_v22 = vld [vmem:[#allocation7 + $0xd8] sm:$0xf0]  ;;  %v4720_v23 = vld [vmem:[#allocation7 + $0xa0] sm:$0xf] }
  0x1d   :  { %v6120_v24 = vld [vmem:[#allocation7 + $0xac] sm:$0xf0]  ;;  %v4749_v25 = vor.u32 %v6123_v20, %v4746_v22  ;;  %v6118_v26 = vld [vmem:[#allocation7 + $0xa4] sm:$0xf]  ;;  %v4722_v27 = vld [vmem:[#allocation7 + $0xb0] sm:$0xf0] }
  0x1e   :  { %v4728_v28 = vld [vmem:[#allocation7 + $0xa8] sm:$0xf]  ;;  %335 = vmatpush.bf16.msra.mxu0 %v4737_v16  ;;  %v4721_v29 = vor.u32 %v6120_v24, %v4720_v23  ;;  %v6121_v30 = vld [vmem:[#allocation7 + $0xb4] sm:$0xf0]  ;;  %v6119_v31 = vld [vmem:[#allocation7 + $0xac] sm:$0xf]  ;;  %v4725_v33 = vor.u32 %v6118_v26, %v4722_v27 }
  0x1f   :  { %v4730_v32 = vld [vmem:[#allocation7 + $0xb8] sm:$0xf0]  ;;  %364 = vmatpush.bf16.msra.mxu1 %v4741_v17  ;;  %v4729_v34 = vor.u32 %v6121_v30, %v4728_v28  ;;  %v4704_v35 = vld [vmem:[#allocation7 + $0x80] sm:$0xf]  ;;  %v6116_v36 = vld [vmem:[#allocation7 + $0x8c] sm:$0xf0] }
  0x20   :  { %393 = vmatpush.bf16.msra.mxu2 %v4745_v21  ;;  %v6114_v37 = vld [vmem:[#allocation7 + $0x84] sm:$0xf]  ;;  %422 = vmatpush.bf16.msra.mxu3 %v4749_v25  ;;  %v4733_v38 = vor.u32 %v6119_v31, %v4730_v32  ;;  %v4706_v39 = vld [vmem:[#allocation7 + $0x90] sm:$0xf0]  ;;  %v4712_v40 = vld [vmem:[#allocation7 + $0x88] sm:$0xf]  ;;  %v4705_v44 = vor.u32 %v6116_v36, %v4704_v35 }
  0x21   :  { %v6117_v41 = vld [vmem:[#allocation7 + $0x94] sm:$0xf0]  ;;  %v6115_v42 = vld [vmem:[#allocation7 + $0x8c] sm:$0xf]  ;;  %v4714_v43 = vld [vmem:[#allocation7 + $0x98] sm:$0xf0]  ;;  %v4709_v45 = vor.u32 %v6114_v37, %v4706_v39 }
  0x22   :  { %336 = vmatpush.bf16.msra.mxu0 %v4721_v29  ;;  %v4713_v46 = vor.u32 %v6117_v41, %v4712_v40  ;;  %v4688_v47 = vld [vmem:[#allocation7 + $0x60] sm:$0xf]  ;;  %v6112_v48 = vld [vmem:[#allocation7 + $0x6c] sm:$0xf0]  ;;  %v6110_v49 = vld [vmem:[#allocation7 + $0x64] sm:$0xf]  ;;  %v4717_v50 = vor.u32 %v6115_v42, %v4714_v43 }
  0x23   :  { %365 = vmatpush.bf16.msra.mxu1 %v4725_v33  ;;  %v4690_v51 = vld [vmem:[#allocation7 + $0x70] sm:$0xf0]  ;;  %v4696_v52 = vld [vmem:[#allocation7 + $0x68] sm:$0xf]  ;;  %v6113_v53 = vld [vmem:[#allocation7 + $0x74] sm:$0xf0]  ;;  %v4689_v56 = vor.u32 %v6112_v48, %v4688_v47 }
  0x24   :  { %394 = vmatpush.bf16.msra.mxu2 %v4729_v34  ;;  %423 = vmatpush.bf16.msra.mxu3 %v4733_v38  ;;  %v6111_v54 = vld [vmem:[#allocation7 + $0x6c] sm:$0xf]  ;;  %v4698_v55 = vld [vmem:[#allocation7 + $0x78] sm:$0xf0]  ;;  %v4693_v57 = vor.u32 %v6110_v49, %v4690_v51  ;;  %v4697_v58 = vor.u32 %v6113_v53, %v4696_v52  ;;  %v4672_v59 = vld [vmem:[#allocation7 + $0x40] sm:$0xf] }
  0x25   :  { %v6108_v60 = vld [vmem:[#allocation7 + $0x4c] sm:$0xf0]  ;;  %v6106_v61 = vld [vmem:[#allocation7 + $0x44] sm:$0xf]  ;;  %v4701_v62 = vor.u32 %v6111_v54, %v4698_v55  ;;  %v4674_v63 = vld [vmem:[#allocation7 + $0x50] sm:$0xf0] }
  0x26   :  { %337 = vmatpush.bf16.msra.mxu0 %v4705_v44  ;;  %v4680_v0 = vld [vmem:[#allocation7 + $0x48] sm:$0xf]  ;;  %v6109_v1 = vld [vmem:[#allocation7 + $0x54] sm:$0xf0]  ;;  %v6107_v2 = vld [vmem:[#allocation7 + $0x4c] sm:$0xf]  ;;  %v4673_v4 = vor.u32 %v6108_v60, %v4672_v59  ;;  %v4677_v5 = vor.u32 %v6106_v61, %v4674_v63 }
  0x27   :  { %366 = vmatpush.bf16.msra.mxu1 %v4709_v45  ;;  %v4682_v3 = vld [vmem:[#allocation7 + $0x58] sm:$0xf0]  ;;  %v4681_v6 = vor.u32 %v6109_v1, %v4680_v0  ;;  %v4656_v7 = vld [vmem:[#allocation7 + $0x20] sm:$0xf]  ;;  %v6104_v8 = vld [vmem:[#allocation7 + $0x2c] sm:$0xf0] }
  0x28   :  { %395 = vmatpush.bf16.msra.mxu2 %v4713_v46  ;;  %424 = vmatpush.bf16.msra.mxu3 %v4717_v50  ;;  %v6102_v9 = vld [vmem:[#allocation7 + $0x24] sm:$0xf]  ;;  %v4685_v10 = vor.u32 %v6107_v2, %v4682_v3  ;;  %v4658_v11 = vld [vmem:[#allocation7 + $0x30] sm:$0xf0]  ;;  %v4664_v12 = vld [vmem:[#allocation7 + $0x28] sm:$0xf]  ;;  %v4657_v16 = vor.u32 %v6104_v8, %v4656_v7 }
  0x29   :  { %v6105_v13 = vld [vmem:[#allocation7 + $0x34] sm:$0xf0]  ;;  %v6103_v14 = vld [vmem:[#allocation7 + $0x2c] sm:$0xf]  ;;  %v4666_v15 = vld [vmem:[#allocation7 + $0x38] sm:$0xf0]  ;;  %v4661_v18 = vor.u32 %v6102_v9, %v4658_v11 }
  0x2a   :  { %338 = vmatpush.bf16.msra.mxu0 %v4689_v56  ;;  %v4640_v17 = vld [vmem:[#allocation7] sm:$0xf]  ;;  %v4665_v19 = vor.u32 %v6105_v13, %v4664_v12  ;;  %v6100_v20 = vld [vmem:[#allocation7 + $0xc] sm:$0xf0]  ;;  %v6098_v21 = vld [vmem:[#allocation7 + $0x4] sm:$0xf]  ;;  %v4669_v23 = vor.u32 %v6103_v14, %v4666_v15 }
  0x2b   :  { %367 = vmatpush.bf16.msra.mxu1 %v4693_v57  ;;  %v4642_v22 = vld [vmem:[#allocation7 + $0x10] sm:$0xf0]  ;;  %v4648_v24 = vld [vmem:[#allocation7 + $0x8] sm:$0xf]  ;;  %v6101_v25 = vld [vmem:[#allocation7 + $0x14] sm:$0xf0]  ;;  %v4641_v30 = vor.u32 %v6100_v20, %v4640_v17 }
  0x2c   :  { %396 = vmatpush.bf16.msra.mxu2 %v4697_v58  ;;  %425 = vmatpush.bf16.msra.mxu3 %v4701_v62  ;;  %v6099_v26 = vld [vmem:[#allocation7 + $0xc] sm:$0xf]  ;;  %v4650_v27 = vld [vmem:[#allocation7 + $0x18] sm:$0xf0]  ;;  %v4880_v28 = vld [vmem:[#allocation10 + $0xe0] sm:$0xf]  ;;  %v4645_v33 = vor.u32 %v6098_v21, %v4642_v22  ;;  %v4649_v34 = vor.u32 %v6101_v25, %v4648_v24 }
  0x2d   :  { %v6160_v29 = vld [vmem:[#allocation10 + $0xec] sm:$0xf0]  ;;  %v6158_v31 = vld [vmem:[#allocation10 + $0xe4] sm:$0xf]  ;;  %v4882_v32 = vld [vmem:[#allocation10 + $0xf0] sm:$0xf0]  ;;  %v4653_v36 = vor.u32 %v6099_v26, %v4650_v27 }
  0x2e   :  { %339 = vmatpush.bf16.msra.mxu0 %v4673_v4  ;;  %v6094_v35 = vld [vmem:[#allocation4] sm:$0xff]  ;;  %v4881_v37 = vor.u32 %v6160_v29, %v4880_v28  ;;  %v6159_v38 = vld [vmem:[#allocation10 + $0xec] sm:$0xf]  ;;  %v4888_v39 = vld [vmem:[#allocation10 + $0xe8] sm:$0xf]  ;;  %v4885_v41 = vor.u32 %v6158_v31, %v4882_v32  ;;  %s6879_s2 = smov [#allocation13]  }
  0x2f   :  { %368 = vmatpush.bf16.msra.mxu1 %v4677_v5  ;;  %v6161_v40 = vld [vmem:[#allocation10 + $0xf4] sm:$0xf0]  ;;  %v4890_v42 = vld [vmem:[#allocation10 + $0xf8] sm:$0xf0]  ;;  %v4864_v43 = vld [vmem:[#allocation10 + $0xc0] sm:$0xf] }
  0x30   :  { %397 = vmatpush.bf16.msra.mxu2 %v4681_v6  ;;  %426 = vmatpush.bf16.msra.mxu3 %v4685_v10  ;;  %v6156_v44 = vld [vmem:[#allocation10 + $0xcc] sm:$0xf0]  ;;  %v6154_v45 = vld [vmem:[#allocation10 + $0xc4] sm:$0xf]  ;;  %v4866_v46 = vld [vmem:[#allocation10 + $0xd0] sm:$0xf0]  ;;  %v4889_v47 = vor.u32 %v6161_v40, %v4888_v39  ;;  %v4893_v48 = vor.u32 %v6159_v38, %v4890_v42 }
  0x31   :  { %v4865_v49 = vor.u32 %v6156_v44, %v4864_v43  ;;  %v6155_v50 = vld [vmem:[#allocation10 + $0xcc] sm:$0xf]  ;;  %v4872_v51 = vld [vmem:[#allocation10 + $0xc8] sm:$0xf]  ;;  %v6157_v52 = vld [vmem:[#allocation10 + $0xd4] sm:$0xf0]  ;;  %v4869_v53 = vor.u32 %v6154_v45, %v4866_v46 }
  0x32   :  { %340 = vmatpush.bf16.msra.mxu0 %v4657_v16  ;;  %v4874_v54 = vld [vmem:[#allocation10 + $0xd8] sm:$0xf0]  ;;  %v4848_v55 = vld [vmem:[#allocation10 + $0xa0] sm:$0xf]  ;;  %v6152_v56 = vld [vmem:[#allocation10 + $0xac] sm:$0xf0]  ;;  %v4873_v59 = vor.u32 %v6157_v52, %v4872_v51 }
  0x33   :  { %369 = vmatpush.bf16.msra.mxu1 %v4661_v18  ;;  %v6150_v57 = vld [vmem:[#allocation10 + $0xa4] sm:$0xf]  ;;  %v4850_v58 = vld [vmem:[#allocation10 + $0xb0] sm:$0xf0]  ;;  %v4877_v60 = vor.u32 %v6155_v50, %v4874_v54  ;;  %v4849_v61 = vor.u32 %v6152_v56, %v4848_v55  ;;  %v6151_v62 = vld [vmem:[#allocation10 + $0xac] sm:$0xf] }
  0x34   :  { %398 = vmatpush.bf16.msra.mxu2 %v4665_v19  ;;  %427 = vmatpush.bf16.msra.mxu3 %v4669_v23  ;;  %v4856_v63 = vld [vmem:[#allocation10 + $0xa8] sm:$0xf]  ;;  %v6153_v0 = vld [vmem:[#allocation10 + $0xb4] sm:$0xf0]  ;;  %v4853_v1 = vor.u32 %v6150_v57, %v4850_v58  ;;  %v4858_v2 = vld [vmem:[#allocation10 + $0xb8] sm:$0xf0] }
  0x35   :  { %v4832_v3 = vld [vmem:[#allocation10 + $0x80] sm:$0xf]  ;;  %v6148_v4 = vld [vmem:[#allocation10 + $0x8c] sm:$0xf0]  ;;  %v6146_v5 = vld [vmem:[#allocation10 + $0x84] sm:$0xf]  ;;  %v4857_v7 = vor.u32 %v6153_v0, %v4856_v63  ;;  %v4861_v8 = vor.u32 %v6151_v62, %v4858_v2 }
  0x36   :  { %341 = vmatpush.bf16.msra.mxu0 %v4641_v30  ;;  %v4834_v6 = vld [vmem:[#allocation10 + $0x90] sm:$0xf0]  ;;  %v4833_v9 = vor.u32 %v6148_v4, %v4832_v3  ;;  %v6147_v10 = vld [vmem:[#allocation10 + $0x8c] sm:$0xf]  ;;  %v4840_v11 = vld [vmem:[#allocation10 + $0x88] sm:$0xf] }
  0x37   :  { %370 = vmatpush.bf16.msra.mxu1 %v4645_v33  ;;  %v6149_v12 = vld [vmem:[#allocation10 + $0x94] sm:$0xf0]  ;;  %v4837_v13 = vor.u32 %v6146_v5, %v4834_v6  ;;  %v4842_v14 = vld [vmem:[#allocation10 + $0x98] sm:$0xf0]  ;;  %v4816_v15 = vld [vmem:[#allocation10 + $0x60] sm:$0xf] }
  0x38   :  { %399 = vmatpush.bf16.msra.mxu2 %v4649_v34  ;;  %428 = vmatpush.bf16.msra.mxu3 %v4653_v36  ;;  %v6144_v16 = vld [vmem:[#allocation10 + $0x6c] sm:$0xf0]  ;;  %v6142_v17 = vld [vmem:[#allocation10 + $0x64] sm:$0xf]  ;;  %v4818_v18 = vld [vmem:[#allocation10 + $0x70] sm:$0xf0]  ;;  %v4841_v20 = vor.u32 %v6149_v12, %v4840_v11  ;;  %v4845_v21 = vor.u32 %v6147_v10, %v4842_v14 }
  0x39   :  { %342 = vmatmul.bf16.vlgmr.msra.gmra.mxu0 %v6094_v35  ;;  %v6095_v19 = vld [vmem:[#allocation4 + $0x8] sm:$0xff]  ;;  %v4817_v22 = vor.u32 %v6144_v16, %v4816_v15  ;;  %v6145_v25 = vld [vmem:[#allocation10 + $0x74] sm:$0xf0]  ;;  %v4821_v26 = vor.u32 %v6142_v17, %v4818_v18  ;;  %v4826_v27 = vld [vmem:[#allocation10 + $0x78] sm:$0xf0]  ;;  %v6878_v4 = vmov 0  }
  0x3a   :  { %681 = vmatpush.bf16.msrb.mxu0 %v4881_v37  ;;  %371 = vmatmul.bf16.vlgmr.msra.gmra.mxu1 %v6094_v35  ;;  %v6143_v23 = vld [vmem:[#allocation10 + $0x6c] sm:$0xf]  ;;  %v4824_v24 = vld [vmem:[#allocation10 + $0x68] sm:$0xf]  ;;  %v4800_v28 = vld [vmem:[#allocation10 + $0x40] sm:$0xf] }
  0x3b   :  { %694 = vmatpush.bf16.msrb.mxu1 %v4885_v41  ;;  %400 = vmatmul.bf16.vlgmr.msra.gmra.mxu2 %v6094_v35  ;;  %v6140_v29 = vld [vmem:[#allocation10 + $0x4c] sm:$0xf0]  ;;  %v6138_v30 = vld [vmem:[#allocation10 + $0x44] sm:$0xf]  ;;  %v4802_v31 = vld [vmem:[#allocation10 + $0x50] sm:$0xf0]  ;;  %v4825_v32 = vor.u32 %v6145_v25, %v4824_v24  ;;  %v4829_v33 = vor.u32 %v6143_v23, %v4826_v27 }
  0x3c   :  { %429 = vmatmul.bf16.vlgmr.msra.gmra.mxu3 %v6094_v35  ;;  %707 = vmatpush.bf16.msrb.mxu2 %v4889_v47  ;;  %v4801_v34 = vor.u32 %v6140_v29, %v4800_v28  ;;  %v4805_v35 = vor.u32 %v6138_v30, %v4802_v31  ;;  %v6139_v36 = vld [vmem:[#allocation10 + $0x4c] sm:$0xf]  ;;  %v4810_v37 = vld [vmem:[#allocation10 + $0x58] sm:$0xf0]  ;;  %v4784_v38 = vld [vmem:[#allocation10 + $0x20] sm:$0xf] }
  0x3d   :  { %720 = vmatpush.bf16.msrb.mxu3 %v4893_v48  ;;  %v6136_v39 = vld [vmem:[#allocation10 + $0x2c] sm:$0xf0]  ;;  %v6134_v40 = vld [vmem:[#allocation10 + $0x24] sm:$0xf]  ;;  %v4813_v41 = vor.u32 %v6139_v36, %v4810_v37  ;;  %v4786_v43 = vld [vmem:[#allocation10 + $0x30] sm:$0xf0] }
  0x3e   :  { %682 = vmatpush.bf16.msrb.mxu0 %v4865_v49  ;;  %v4785_v42 = vor.u32 %v6136_v39, %v4784_v38  ;;  %v4808_v44 = vld [vmem:[#allocation10 + $0x48] sm:$0xf]  ;;  %v6141_v45 = vld [vmem:[#allocation10 + $0x54] sm:$0xf0]  ;;  %v4789_v46 = vor.u32 %v6134_v40, %v4786_v43  ;;  %v6135_v48 = vld [vmem:[#allocation10 + $0x2c] sm:$0xf] }
  0x3f   :  { %695 = vmatpush.bf16.msrb.mxu1 %v4869_v53  ;;  %v4809_v47 = vor.u32 %v6141_v45, %v4808_v44  ;;  %v4794_v49 = vld [vmem:[#allocation10 + $0x38] sm:$0xf0]  ;;  %v4768_v50 = vld [vmem:[#allocation10] sm:$0xf]  ;;  %v6132_v51 = vld [vmem:[#allocation10 + $0xc] sm:$0xf0] }
  0x40   :  { %708 = vmatpush.bf16.msrb.mxu2 %v4873_v59  ;;  %v6130_v52 = vld [vmem:[#allocation10 + $0x4] sm:$0xf]  ;;  %v4770_v53 = vld [vmem:[#allocation10 + $0x10] sm:$0xf0]  ;;  %v4792_v54 = vld [vmem:[#allocation10 + $0x28] sm:$0xf]  ;;  %v4797_v56 = vor.u32 %v6135_v48, %v4794_v49  ;;  %v4769_v57 = vor.u32 %v6132_v51, %v4768_v50 }
  0x41   :  { %721 = vmatpush.bf16.msrb.mxu3 %v4877_v60  ;;  %v6137_v55 = vld [vmem:[#allocation10 + $0x34] sm:$0xf0]  ;;  %v4776_v59 = vld [vmem:[#allocation10 + $0x8] sm:$0xf]  ;;  %v6131_v62 = vld [vmem:[#allocation10 + $0xc] sm:$0xf] }
  0x42   :  { %683 = vmatpush.bf16.msrb.mxu0 %v4849_v61  ;;  %v4793_v58 = vor.u32 %v6137_v55, %v4792_v54  ;;  %v6133_v60 = vld [vmem:[#allocation10 + $0x14] sm:$0xf0]  ;;  %v4773_v61 = vor.u32 %v6130_v52, %v4770_v53  ;;  %v4778_v63 = vld [vmem:[#allocation10 + $0x18] sm:$0xf0]  ;;  %v6096_v2 = vld [vmem:[#allocation4 + $0x10] sm:$0xff]  ;;  %s4601_s4 = sshll.u32 %s6879_s2, 4  ;;  %s4602_s4 = int_to_ptr.vmem [resolvable:$true] %s4601_s4 }
  0x43   :  { %696 = vmatpush.bf16.msrb.mxu1 %v4853_v1  ;;  %v4777_v0 = vor.u32 %v6133_v60, %v4776_v59  ;;  %v4781_v1 = vor.u32 %v6131_v62, %v4778_v63  ;;  %v6097_v3 = vld [vmem:[#allocation4 + $0x18] sm:$0xff]  ;;  %v140_v11 = vld [vmem:[#allocation12] sm:$0xf]  ;;  %v5013_v45 = vld [vmem:[#allocation10 + $0xf0] sm:$0xf0]  ;;  %s4603_s21 = sshll.u32 %s7701_s5, 4  ;;  %s4604_s21 = int_to_ptr.hbm [resolvable:$true] %s4603_s21 }
  0x44   :  { %709 = vmatpush.bf16.msrb.mxu2 %v4857_v7  ;;  %v6941_v12 = vperm.slane %v140_v11, 0  ;;  %v6945_v14 = vperm.slane %v140_v11, 1  ;;  %v5011_v40 = vld [vmem:[#allocation10 + $0xe0] sm:$0xf]  ;;  %v6191_v52 = vld [vmem:[#allocation10 + $0xec] sm:$0xf] }
  0x45   :  { %722 = vmatpush.bf16.msrb.mxu3 %v4861_v8  ;;  %v5021_v53 = vld [vmem:[#allocation10 + $0xf8] sm:$0xf0]  ;;  %v6188_v59 = vld [vmem:[#allocation10 + $0xcc] sm:$0xf0]  ;;  %v6186_v60 = vld [vmem:[#allocation10 + $0xc4] sm:$0xf] }
  0x46   :  { %684 = vmatpush.bf16.msrb.mxu0 %v4833_v9  ;;  %v4997_v62 = vld [vmem:[#allocation10 + $0xd0] sm:$0xf0]  ;;  %v5003_v63 = vld [vmem:[#allocation10 + $0xc8] sm:$0xf] }
  0x47   :  { %697 = vmatpush.bf16.msrb.mxu1 %v4837_v13 }
  0x48   :  { %710 = vmatpush.bf16.msrb.mxu2 %v4841_v20  ;;  %v6955_v20 = vperm.slane %v140_v11, 2 }
  0x49   :  { %723 = vmatpush.bf16.msrb.mxu3 %v4845_v21  ;;  %347 = vmatmul.bf16.gmra.mxu0 %v6095_v19  ;;  %v6957_v21 = vperm.slane %v140_v11, 3  ;;  %v5005_v11 = vld [vmem:[#allocation10 + $0xd8] sm:$0xf0] }
  0x4a   :  { %685 = vmatpush.bf16.msrb.mxu0 %v4817_v22  ;;  %376 = vmatmul.bf16.gmra.mxu1 %v6095_v19 }
  0x4b   :  { %698 = vmatpush.bf16.msrb.mxu1 %v4821_v26  ;;  %405 = vmatmul.bf16.gmra.mxu2 %v6095_v19 }
  0x4c   :  { %434 = vmatmul.bf16.gmra.mxu3 %v6095_v19  ;;  %711 = vmatpush.bf16.msrb.mxu2 %v4825_v32 }
  0x4d   :  { %724 = vmatpush.bf16.msrb.mxu3 %v4829_v33 }
  0x4e   :  { %686 = vmatpush.bf16.msrb.mxu0 %v4801_v34 }
  0x4f   :  { %699 = vmatpush.bf16.msrb.mxu1 %v4805_v35 }
  0x50   :  { %712 = vmatpush.bf16.msrb.mxu2 %v4809_v47  ;;  %v6193_v47 = vld [vmem:[#allocation10 + $0xf4] sm:$0xf0] }
  0x51   :  { %725 = vmatpush.bf16.msrb.mxu3 %v4813_v41  ;;  %v6192_v41 = vld [vmem:[#allocation10 + $0xec] sm:$0xf0] }
  0x52   :  { %687 = vmatpush.bf16.msrb.mxu0 %v4785_v42  ;;  %v6190_v42 = vld [vmem:[#allocation10 + $0xe4] sm:$0xf]  ;;  %v5012_v44 = vor.u32 %v6192_v41, %v5011_v40  ;;  %v6185_v40 = vld [vmem:[#allocation10 + $0xb4] sm:$0xf0] }
  0x53   :  { %700 = vmatpush.bf16.msrb.mxu1 %v4789_v46  ;;  %v5019_v46 = vld [vmem:[#allocation10 + $0xe8] sm:$0xf]  ;;  %v5016_v50 = vor.u32 %v6190_v42, %v5013_v45 }
  0x54   :  { %713 = vmatpush.bf16.msrb.mxu2 %v4793_v58  ;;  %v5020_v51 = vor.u32 %v6193_v47, %v5019_v46  ;;  %v4995_v58 = vld [vmem:[#allocation10 + $0xc0] sm:$0xf]  ;;  %v6183_v47 = vld [vmem:[#allocation10 + $0xac] sm:$0xf] }
  0x55   :  { %726 = vmatpush.bf16.msrb.mxu3 %v4797_v56  ;;  %v5024_v56 = vor.u32 %v6191_v52, %v5021_v53  ;;  %v4963_v53 = vld [vmem:[#allocation10 + $0x80] sm:$0xf] }
  0x56   :  { %688 = vmatpush.bf16.msrb.mxu0 %v4769_v57 }
  0x57   :  { %701 = vmatpush.bf16.msrb.mxu1 %v4773_v61  ;;  %v4996_v61 = vor.u32 %v6188_v59, %v4995_v58  ;;  %v4965_v59 = vld [vmem:[#allocation10 + $0x90] sm:$0xf0] }
  0x58   :  { %714 = vmatpush.bf16.msrb.mxu2 %v4777_v0  ;;  %v6189_v0 = vld [vmem:[#allocation10 + $0xd4] sm:$0xf0] }
  0x59   :  { %727 = vmatpush.bf16.msrb.mxu3 %v4781_v1  ;;  %352 = vmatmul.bf16.gmra.mxu0 %v6096_v2  ;;  %v5000_v1 = vor.u32 %v6186_v60, %v4997_v62  ;;  %v4971_v60 = vld [vmem:[#allocation10 + $0x88] sm:$0xf] }
  0x5a   :  { %381 = vmatmul.bf16.gmra.mxu1 %v6096_v2  ;;  %1001 = vmatpush.bf16.msra.mxu0 %v5012_v44 }
  0x5b   :  { %410 = vmatmul.bf16.gmra.mxu2 %v6096_v2  ;;  %1014 = vmatpush.bf16.msra.mxu1 %v5016_v50 }
  0x5c   :  { %439 = vmatmul.bf16.gmra.mxu3 %v6096_v2  ;;  %1027 = vmatpush.bf16.msra.mxu2 %v5020_v51  ;;  %v5004_v2 = vor.u32 %v6189_v0, %v5003_v63  ;;  %v6179_v0 = vld [vmem:[#allocation10 + $0x8c] sm:$0xf] }
  0x5d   :  { %1040 = vmatpush.bf16.msra.mxu3 %v5024_v56  ;;  %v6178_v56 = vld [vmem:[#allocation10 + $0x84] sm:$0xf] }
  0x5e   :  { %1002 = vmatpush.bf16.msra.mxu0 %v4996_v61  ;;  %v6181_v61 = vld [vmem:[#allocation10 + $0x94] sm:$0xf0]  ;;  %v4968_v62 = vor.u32 %v6178_v56, %v4965_v59  ;;  %v4931_v56 = vld [vmem:[#allocation10 + $0x40] sm:$0xf]  ;;  %v6170_v59 = vld [vmem:[#allocation10 + $0x44] sm:$0xf] }
  0x5f   :  { %1015 = vmatpush.bf16.msra.mxu1 %v5000_v1  ;;  %v4972_v63 = vor.u32 %v6181_v61, %v4971_v60  ;;  %v4973_v1 = vld [vmem:[#allocation10 + $0x98] sm:$0xf0]  ;;  %v4933_v61 = vld [vmem:[#allocation10 + $0x50] sm:$0xf0] }
  0x60   :  { %1028 = vmatpush.bf16.msra.mxu2 %v5004_v2  ;;  %v4976_v2 = vor.u32 %v6179_v0, %v4973_v1  ;;  %v4936_v0 = vor.u32 %v6170_v59, %v4933_v61  ;;  %v6173_v1 = vld [vmem:[#allocation10 + $0x54] sm:$0xf0]  ;;  %v6164_v59 = vld [vmem:[#allocation10 + $0xc] sm:$0xf0] }
  0x69   :  { %357 = vmatmul.bf16.gmra.mxu0 %v6097_v3 }
  0x6a   :  { %386 = vmatmul.bf16.gmra.mxu1 %v6097_v3 }
  0x6b   :  { %415 = vmatmul.bf16.gmra.mxu2 %v6097_v3 }
  0x6c   :  { %444 = vmatmul.bf16.gmra.mxu3 %v6097_v3  ;;  %v6187_v3 = vld [vmem:[#allocation10 + $0xcc] sm:$0xf] }
  0x79   :  { %689 = vmatmul.bf16.vlgmr.msrb.gmra.mxu0 %v6878_v4 }
  0x7a   :  { %702 = vmatmul.bf16.vlgmr.msrb.gmra.mxu1 %v6878_v4 }
  0x7b   :  { %715 = vmatmul.bf16.vlgmr.msrb.gmra.mxu2 %v6878_v4 }
  0x7c   :  { %728 = vmatmul.bf16.vlgmr.msrb.gmra.mxu3 %v6878_v4 }
  0xb6   :  { %v6929_v5 = vpop.f32.mrf.mxu0 }
  0xb7   :  { %v6931_v6 = vpop.f32.mrf.mxu1 }
  0xbe   :  { %v6933_v7 = vpop.f32.mrf.mxu2  ;;  %v6937_v9 = vpop.f32.mrf.mxu0 }
  0xbf   :  { %v6935_v8 = vpop.f32.mrf.mxu3  ;;  %v6939_v10 = vpop.f32.mrf.mxu1 }
  0xc6   :  { %v6943_v13 = vpop.f32.mrf.mxu2  ;;  %v348_v16 = vpop.f32.mrf.mxu0 }
  0xc7   :  { %v6947_v15 = vpop.f32.mrf.mxu3  ;;  %v6950_v17 = vadd.f32 %v348_v16, %v6941_v12  ;;  %v377_v18 = vpop.f32.mrf.mxu1  ;;  %v5008_v16 = vor.u32 %v6187_v3, %v5005_v11  ;;  %v4947_v3 = vld [vmem:[#allocation10 + $0x60] sm:$0xf]  ;;  %v6176_v11 = vld [vmem:[#allocation10 + $0x6c] sm:$0xf0] }
  0xc8   :  { %v6953_v19 = vadd.f32 %v377_v18, %v6945_v14  ;;  %v4979_v18 = vld [vmem:[#allocation10 + $0xa0] sm:$0xf] }
  0xc9   :  { %1041 = vmatpush.bf16.msra.mxu3 %v5008_v16  ;;  %v6174_v16 = vld [vmem:[#allocation10 + $0x64] sm:$0xf] }
  0xce   :  { %v406_v22 = vpop.f32.mrf.mxu2  ;;  %v6962_v25 = vpop.f32.mrf.mxu0 }
  0xcf   :  { %v6960_v23 = vadd.f32 %v406_v22, %v6955_v20  ;;  %v435_v24 = vpop.f32.mrf.mxu3  ;;  %v6967_v27 = vpop.f32.mrf.mxu1  ;;  %v6184_v22 = vld [vmem:[#allocation10 + $0xac] sm:$0xf0] }
  0xd0   :  { %v6965_v26 = vadd.f32 %v435_v24, %v6957_v21  ;;  %v6182_v24 = vld [vmem:[#allocation10 + $0xa4] sm:$0xf] }
  0xd6   :  { %v6969_v28 = vpop.f32.mrf.mxu2  ;;  %v353_v30 = vpop.f32.mrf.mxu0 }
  0xd7   :  { %v6971_v29 = vpop.f32.mrf.mxu3  ;;  %v6974_v31 = vadd.f32 %v353_v30, %v6941_v12  ;;  %v382_v32 = vpop.f32.mrf.mxu1 }
  0xd8   :  { %v6977_v33 = vadd.f32 %v382_v32, %v6945_v14  ;;  %v4980_v32 = vor.u32 %v6184_v22, %v4979_v18  ;;  %v344_v18 = vadd.f32 %v6929_v5, %v6941_v12 }
  0xda   :  { %1003 = vmatpush.bf16.msra.mxu0 %v4980_v32  ;;  %v4955_v32 = vld [vmem:[#allocation10 + $0x68] sm:$0xf] }
  0xde   :  { %v411_v34 = vpop.f32.mrf.mxu2  ;;  %v6982_v37 = vpop.f32.mrf.mxu0 }
  0xdf   :  { %v6980_v35 = vadd.f32 %v411_v34, %v6955_v20  ;;  %v440_v36 = vpop.f32.mrf.mxu3  ;;  %v6987_v39 = vpop.f32.mrf.mxu1  ;;  %v4981_v34 = vld [vmem:[#allocation10 + $0xb0] sm:$0xf0] }
  0xe0   :  { %v6985_v38 = vadd.f32 %v440_v36, %v6957_v21  ;;  %v4987_v36 = vld [vmem:[#allocation10 + $0xa8] sm:$0xf]  ;;  %v4984_v45 = vor.u32 %v6182_v24, %v4981_v34  ;;  %v4948_v24 = vor.u32 %v6176_v11, %v4947_v3  ;;  %v6177_v34 = vld [vmem:[#allocation10 + $0x74] sm:$0xf0]  ;;  %v4941_v11 = vld [vmem:[#allocation10 + $0x58] sm:$0xf0] }
  0xe1   :  { %v4988_v46 = vor.u32 %v6185_v40, %v4987_v36  ;;  %v373_v36 = vadd.f32 %v6931_v6, %v6945_v14 }
  0xe2   :  { %1016 = vmatpush.bf16.msra.mxu1 %v4984_v45 }
  0xe3   :  { %1029 = vmatpush.bf16.msra.mxu2 %v4988_v46  ;;  %v4956_v46 = vor.u32 %v6177_v34, %v4955_v32  ;;  %v6166_v32 = vld [vmem:[#allocation10 + $0x24] sm:$0xf]  ;;  %v4917_v34 = vld [vmem:[#allocation10 + $0x30] sm:$0xf0] }
  0xe6   :  { %v6989_v43 = vpop.f32.mrf.mxu2  ;;  %v358_v49 = vpop.f32.mrf.mxu0  ;;  %1017 = vmatpush.bf16.msra.mxu1 %v4968_v62  ;;  %v4939_v62 = vld [vmem:[#allocation10 + $0x48] sm:$0xf] }
  0xe7   :  { %v6991_v48 = vpop.f32.mrf.mxu3  ;;  %v6994_v54 = vadd.f32 %v358_v49, %v6941_v12  ;;  %v387_v55 = vpop.f32.mrf.mxu1  ;;  %v4989_v49 = vld [vmem:[#allocation10 + $0xb8] sm:$0xf0]  ;;  %1030 = vmatpush.bf16.msra.mxu2 %v4972_v63  ;;  %v4940_v3 = vor.u32 %v6173_v1, %v4939_v62 }
  0xe8   :  { %v6997_v57 = vadd.f32 %v387_v55, %v6945_v14  ;;  %v4992_v52 = vor.u32 %v6183_v47, %v4989_v49  ;;  %v6180_v55 = vld [vmem:[#allocation10 + $0x8c] sm:$0xf0]  ;;  %v6175_v47 = vld [vmem:[#allocation10 + $0x6c] sm:$0xf]  ;;  %v4957_v49 = vld [vmem:[#allocation10 + $0x78] sm:$0xf0] }
  0xe9   :  { %v4964_v58 = vor.u32 %v6180_v55, %v4963_v53  ;;  %v4960_v5 = vor.u32 %v6175_v47, %v4957_v49  ;;  %v6169_v47 = vld [vmem:[#allocation10 + $0x34] sm:$0xf0]  ;;  %v6167_v49 = vld [vmem:[#allocation10 + $0x2c] sm:$0xf] }
  0xea   :  { %1042 = vmatpush.bf16.msra.mxu3 %v4992_v52 }
  0xeb   :  { %1004 = vmatpush.bf16.msra.mxu0 %v4964_v58  ;;  %1031 = vmatpush.bf16.msra.mxu2 %v4956_v46  ;;  %v6172_v58 = vld [vmem:[#allocation10 + $0x4c] sm:$0xf0]  ;;  %v4920_v46 = vor.u32 %v6166_v32, %v4917_v34 }
  0xec   :  { %v4932_v6 = vor.u32 %v6172_v58, %v4931_v56  ;;  %v4899_v58 = vld [vmem:[#allocation10] sm:$0xf] }
  0xed   :  { %v4900_v62 = vor.u32 %v6164_v59, %v4899_v58 }
  0xee   :  { %v416_v30 = vpop.f32.mrf.mxu2  ;;  %v7002_v44 = vpop.f32.mrf.mxu0  ;;  %1043 = vmatpush.bf16.msra.mxu3 %v4976_v2  ;;  %v6171_v2 = vld [vmem:[#allocation10 + $0x4c] sm:$0xf] }
  0xef   :  { %v7000_v41 = vadd.f32 %v416_v30, %v6955_v20  ;;  %v445_v42 = vpop.f32.mrf.mxu3  ;;  %v7007_v51 = vpop.f32.mrf.mxu1  ;;  %v4949_v30 = vld [vmem:[#allocation10 + $0x70] sm:$0xf0]  ;;  %1005 = vmatpush.bf16.msra.mxu0 %v4948_v24  ;;  %v4944_v24 = vor.u32 %v6171_v2, %v4941_v11  ;;  %1032 = vmatpush.bf16.msra.mxu2 %v4940_v3  ;;  %v6163_v2 = vld [vmem:[#allocation10 + $0xc] sm:$0xf]  ;;  %v4909_v3 = vld [vmem:[#allocation10 + $0x18] sm:$0xf0] }
  0xf0   :  { %v7005_v50 = vadd.f32 %v445_v42, %v6957_v21  ;;  %v4952_v45 = vor.u32 %v6174_v16, %v4949_v30  ;;  %v4915_v16 = vld [vmem:[#allocation10 + $0x20] sm:$0xf]  ;;  %v4912_v34 = vor.u32 %v6163_v2, %v4909_v3 }
  0xf2   :  { %1018 = vmatpush.bf16.msra.mxu1 %v4952_v45  ;;  %1044 = vmatpush.bf16.msra.mxu3 %v4960_v5 }
  0xf3   :  { %1006 = vmatpush.bf16.msra.mxu0 %v4932_v6 }
  0xf6   :  { %v7011_v22 = vpop.f32.mrf.mxu2  ;;  %v690_v42 = vpop.f32.mrf.mxu0  ;;  %1019 = vmatpush.bf16.msra.mxu1 %v4936_v0  ;;  %1045 = vmatpush.bf16.msra.mxu3 %v4944_v24  ;;  %v6165_v0 = vld [vmem:[#allocation10 + $0x14] sm:$0xf0] }
  0xf7   :  { %v7015_v40 = vpop.f32.mrf.mxu3  ;;  %v733_v52 = vadd.f32 %v690_v42, %v344_v18  ;;  %v703_v53 = vpop.f32.mrf.mxu1  ;;  %v6168_v18 = vld [vmem:[#allocation10 + $0x2c] sm:$0xf0]  ;;  %v431_v42 = vadd.f32 %v6935_v8, %v6957_v21  ;;  %v4907_v8 = vld [vmem:[#allocation10 + $0x8] sm:$0xf] }
  0xf8   :  { %v734_v55 = vadd.f32 %v703_v53, %v373_v36  ;;  %v4916_v30 = vor.u32 %v6168_v18, %v4915_v16  ;;  %v4923_v36 = vld [vmem:[#allocation10 + $0x28] sm:$0xf]  ;;  %v4908_v18 = vor.u32 %v6165_v0, %v4907_v8 }
  0xf9   :  { %v4894_v60 = vmul.f32 -1.442695, %v733_v52  ;;  %v4925_v52 = vld [vmem:[#allocation10 + $0x38] sm:$0xf0] }
  0xfa   :  { %v4895_v63 = vmul.f32 -1.442695, %v734_v55  ;;  %v4924_v55 = vor.u32 %v6169_v47, %v4923_v36  ;;  %v4928_v56 = vor.u32 %v6167_v49, %v4925_v52  ;;  %1007 = vmatpush.bf16.msra.mxu0 %v4916_v30  ;;  %1020 = vmatpush.bf16.msra.mxu1 %v4920_v46  ;;  %v402_v46 = vadd.f32 %v6933_v7, %v6955_v20 }
  0xfb   :  { %6461 = vpow2.f32 %v4894_v60  ;;  %v6162_v60 = vld [vmem:[#allocation10 + $0x4] sm:$0xf] }
  0xfc   :  { %6463 = vpow2.f32 %v4895_v63  ;;  %v4901_v63 = vld [vmem:[#allocation10 + $0x10] sm:$0xf0]  ;;  %1033 = vmatpush.bf16.msra.mxu2 %v4924_v55  ;;  %1046 = vmatpush.bf16.msra.mxu3 %v4928_v56 }
  0xfd   :  { %v4904_v1 = vor.u32 %v6162_v60, %v4901_v63 }
  0xfe   :  { %v716_v45 = vpop.f32.mrf.mxu2  ;;  %v692_v5 = vpop.f32.mrf.mxu0  ;;  %1008 = vmatpush.bf16.msra.mxu0 %v4900_v62 }
  0xff   :  { %v729_v53 = vpop.f32.mrf.mxu3  ;;  %v705_v61 = vpop.f32.mrf.mxu1  ;;  %1021 = vmatpush.bf16.msra.mxu1 %v4904_v1  ;;  %v735_v52 = vadd.f32 %v716_v45, %v402_v46 }
 0x100   :  { %v736_v6 = vadd.f32 %v729_v53, %v431_v42  ;;  %1034 = vmatpush.bf16.msra.mxu2 %v4908_v18  ;;  %1047 = vmatpush.bf16.msra.mxu3 %v4912_v34 }
 0x101   :  { %v6462_v11 = vpop.eup %6461 }
 0x102   :  { %v4896_v16 = vmul.f32 -1.442695, %v736_v6  ;;  %v6464_v24 = vpop.eup %6463  ;;  %v740_v32 = vadd.f32 1.0, %v6462_v11 }
 0x103   :  { %v759_v36 = vadd.f32 1.0, %v6464_v24 }
 0x104   :  { %6465 = vpow2.f32 %v4896_v16  ;;  %v752_v60 = vand.u32 2147483648, %v740_v32  ;;  %v750_v62 = vand.u32 2147483647, %v740_v32  ;;  %vm746_vm2 = vweird.f32 %v740_v32 }
 0x105   :  { %6467 = vrcp.f32 %v740_v32  ;;  %v771_v6 = vand.u32 2147483648, %v759_v36  ;;  %v769_v8 = vand.u32 2147483647, %v759_v36  ;;  %vm765_vm3 = vweird.f32 %v759_v36 }
 0x106   :  { %6469 = vrcp.f32 %v759_v36  ;;  %v718_v30 = vpop.f32.mrf.mxu2  ;;  %v753_v45 = vor.u32 1.1754944e-38, %v752_v60  ;;  %vm751_vm5 = vcmp.eq.f32.partialorder %v750_v62, 8.507059e+37  ;;  %v6222_v62 = vld [vmem:[#allocation10 + $0xe4] sm:$0xf] }
 0x107   :  { %v731_v42 = vpop.f32.mrf.mxu3  ;;  %v772_v2 = vor.u32 1.1754944e-38, %v771_v6  ;;  %vm770_vm7 = vcmp.eq.f32.partialorder %v769_v8, 8.507059e+37  ;;  %v5142_v6 = vld [vmem:[#allocation10 + $0xe0] sm:$0xf]  ;;  %v5150_v8 = vld [vmem:[#allocation10 + $0xe8] sm:$0xf] }
 0x10a   :  { %v6466_v47 = vpop.eup %6465 }
 0x10b   :  { %v6468_v49 = vpop.eup %6467  ;;  %v779_v53 = vadd.f32 1.0, %v6466_v47 }
 0x10c   :  { %v6470_v5 = vpop.eup %6469  ;;  %v742_v55 = vmul.f32 %v6468_v49, %v740_v32  ;;  %vm747_vm0 = vweird.f32 %v6468_v49 }
 0x10d   :  { %v761_v56 = vmul.f32 %v6470_v5, %v759_v36  ;;  %6471 = vrcp.f32 %v779_v53  ;;  %vm766_vm1 = vweird.f32 %v6470_v5  ;;  %vm748_vm4 = vmor %vm746_vm2, %vm747_vm0  ;;  %vm785_vm9 = vweird.f32 %v779_v53 }
 0x10e   :  { %v743_v58 = vsub.f32 1.0, %v742_v55  ;;  %6473 = vtanh.f32 %v735_v52  ;;  %vm767_vm6 = vmor %vm765_vm3, %vm766_vm1  ;;  %v791_v52 = vand.u32 2147483648, %v779_v53 }
 0x10f   :  { %v762_v59 = vsub.f32 1.0, %v761_v56 }
 0x110   :  { %v744_v61 = vmul.f32 %v6468_v49, %v743_v58  ;;  %v792_v56 = vor.u32 1.1754944e-38, %v791_v52  ;;  %v5136_v52 = vld [vmem:[#allocation10 + $0xd8] sm:$0xf0] }
 0x111   :  { %v763_v63 = vmul.f32 %v6470_v5, %v762_v59 }
 0x112   :  { %v745_v7 = vadd.f32 %v6468_v49, %v744_v61  ;;  %v6224_v61 = vld [vmem:[#allocation10 + $0xec] sm:$0xf0] }
 0x113   :  { %v6472_v0 = vpop.eup %6471  ;;  %v764_v1 = vadd.f32 %v6470_v5, %v763_v63  ;;  %v5143_v63 = vor.u32 %v6224_v61, %v5142_v6  ;;  %v5118_v6 = vld [vmem:[#allocation10 + $0xa8] sm:$0xf]  ;;  %v6217_v61 = vld [vmem:[#allocation10 + $0xb4] sm:$0xf0] }
 0x114   :  { %v749_v3 = vsel %vm748_vm4, %v6468_v49, %v745_v7  ;;  %v781_v11 = vmul.f32 %v6472_v0, %v779_v53  ;;  %v6474_v16 = vpop.eup %6473  ;;  %vm786_vm8 = vweird.f32 %v6472_v0  ;;  %v789_v49 = vand.u32 2147483647, %v779_v53  ;;  %v5144_v53 = vld [vmem:[#allocation10 + $0xf0] sm:$0xf0]  ;;  %v6225_v7 = vld [vmem:[#allocation10 + $0xf4] sm:$0xf0] }
 0x115   :  { %v754_v18 = vsel %vm751_vm5, %v753_v45, %v749_v3  ;;  %v768_v24 = vsel %vm767_vm6, %v6470_v5, %v764_v1  ;;  %vm787_vm10 = vmor %vm785_vm9, %vm786_vm8  ;;  %v5151_v45 = vor.u32 %v6225_v7, %v5150_v8  ;;  %v6223_v1 = vld [vmem:[#allocation10 + $0xec] sm:$0xf]  ;;  %1322 = vmatpush.bf16.msrb.mxu0 %v5143_v63  ;;  %v5119_v63 = vor.u32 %v6217_v61, %v5118_v6  ;;  %v5120_v8 = vld [vmem:[#allocation10 + $0xb8] sm:$0xf0] }
 0x116   :  { %v773_v34 = vsel %vm770_vm7, %v772_v2, %v768_v24  ;;  %v796_v30 = vmul.f32 %v6474_v16, %v754_v18  ;;  %v782_v42 = vsub.f32 1.0, %v781_v11  ;;  %vm790_vm11 = vcmp.eq.f32.partialorder %v789_v49, 8.507059e+37  ;;  %v5152_v2 = vld [vmem:[#allocation10 + $0xf8] sm:$0xf0]  ;;  %v5126_v11 = vld [vmem:[#allocation10 + $0xc0] sm:$0xf] }
 0x117   :  { %v795_v46 = vmul.f32 0.0, %v773_v34  ;;  %v5155_v3 = vor.u32 %v6223_v1, %v5152_v2  ;;  %1348 = vmatpush.bf16.msrb.mxu2 %v5151_v45  ;;  %v6220_v16 = vld [vmem:[#allocation10 + $0xcc] sm:$0xf0]  ;;  %v6218_v18 = vld [vmem:[#allocation10 + $0xc4] sm:$0xf] }
 0x118   :  { %v783_v47 = vmul.f32 %v6472_v0, %v782_v42  ;;  %v5127_v24 = vor.u32 %v6220_v16, %v5126_v11  ;;  %v5128_v34 = vld [vmem:[#allocation10 + $0xd0] sm:$0xf0]  ;;  %v6221_v42 = vld [vmem:[#allocation10 + $0xd4] sm:$0xf0]  ;;  %v6212_v45 = vld [vmem:[#allocation10 + $0x8c] sm:$0xf0] }
 0x119   :  { %v7021_v32 = vadd.f32 %v796_v30, %v795_v46  ;;  %1361 = vmatpush.bf16.msrb.mxu3 %v5155_v3  ;;  %v5134_v30 = vld [vmem:[#allocation10 + $0xc8] sm:$0xf]  ;;  %v5131_v46 = vor.u32 %v6218_v18, %v5128_v34  ;;  %v6210_v1 = vld [vmem:[#allocation10 + $0x84] sm:$0xf]  ;;  %v5096_v3 = vld [vmem:[#allocation10 + $0x90] sm:$0xf0] }
 0x11a   :  { %v784_v36 = vadd.f32 %v6472_v0, %v783_v47  ;;  %v5135_v47 = vor.u32 %v6221_v42, %v5134_v30  ;;  %1323 = vmatpush.bf16.msrb.mxu0 %v5127_v24  ;;  %v5102_v11 = vld [vmem:[#allocation10 + $0x88] sm:$0xf]  ;;  %v6213_v16 = vld [vmem:[#allocation10 + $0x94] sm:$0xf0]  ;;  %v5099_v18 = vor.u32 %v6210_v1, %v5096_v3  ;;  %v6211_v34 = vld [vmem:[#allocation10 + $0x8c] sm:$0xf] }
 0x11b   :  { %6475 = vtanh.f32 %v7021_v32  ;;  %v5103_v24 = vor.u32 %v6213_v16, %v5102_v11  ;;  %v5104_v30 = vld [vmem:[#allocation10 + $0x98] sm:$0xf0]  ;;  %v5064_v11 = vld [vmem:[#allocation10 + $0x50] sm:$0xf0] }
 0x11c   :  { %v788_v55 = vsel %vm787_vm10, %v6472_v0, %v784_v36  ;;  %v5147_v0 = vor.u32 %v6222_v62, %v5144_v53  ;;  %v6219_v36 = vld [vmem:[#allocation10 + $0xcc] sm:$0xf]  ;;  %1349 = vmatpush.bf16.msrb.mxu2 %v5135_v47  ;;  %v5107_v42 = vor.u32 %v6211_v34, %v5104_v30  ;;  %v6208_v47 = vld [vmem:[#allocation10 + $0x6c] sm:$0xf0] }
 0x11d   :  { %v793_v58 = vsel %vm790_vm11, %v792_v56, %v788_v55  ;;  %v5139_v49 = vor.u32 %v6219_v36, %v5136_v52  ;;  %v5110_v55 = vld [vmem:[#allocation10 + $0xa0] sm:$0xf]  ;;  %v6216_v56 = vld [vmem:[#allocation10 + $0xac] sm:$0xf0]  ;;  %v6215_v53 = vld [vmem:[#allocation10 + $0xac] sm:$0xf]  ;;  %v346_v52 = vadd.f32 %v6937_v9, %v6941_v12 }
 0x11e   :  { %1335 = vmatpush.bf16.msrb.mxu1 %v5147_v0  ;;  %v5123_v7 = vor.u32 %v6215_v53, %v5120_v8  ;;  %v5094_v0 = vld [vmem:[#allocation10 + $0x80] sm:$0xf]  ;;  %v6206_v36 = vld [vmem:[#allocation10 + $0x64] sm:$0xf]  ;;  %v5088_v53 = vld [vmem:[#allocation10 + $0x78] sm:$0xf0] }
 0x11f   :  { %1362 = vmatpush.bf16.msrb.mxu3 %v5139_v49  ;;  %v5095_v2 = vor.u32 %v6212_v45, %v5094_v0  ;;  %v375_v49 = vadd.f32 %v6939_v10, %v6945_v14  ;;  %v5062_v9 = vld [vmem:[#allocation10 + $0x40] sm:$0xf]  ;;  %v6204_v45 = vld [vmem:[#allocation10 + $0x4c] sm:$0xf0]  ;;  %v6202_v10 = vld [vmem:[#allocation10 + $0x44] sm:$0xf] }
 0x120   :  { %1350 = vmatpush.bf16.msrb.mxu2 %v5119_v63  ;;  %v6207_v63 = vld [vmem:[#allocation10 + $0x6c] sm:$0xf]  ;;  %v5063_v3 = vor.u32 %v6204_v45, %v5062_v9  ;;  %v5067_v16 = vor.u32 %v6202_v10, %v5064_v11  ;;  %v5030_v9 = vld [vmem:[#allocation10] sm:$0xf]  ;;  %v6196_v45 = vld [vmem:[#allocation10 + $0xc] sm:$0xf0] }
 0x121   :  { %v6476_v5 = vpop.eup %6475  ;;  %v5091_v0 = vor.u32 %v6207_v63, %v5088_v53  ;;  %v6203_v34 = vld [vmem:[#allocation10 + $0x4c] sm:$0xf]  ;;  %v5056_v63 = vld [vmem:[#allocation10 + $0x38] sm:$0xf0]  ;;  %v6194_v10 = vld [vmem:[#allocation10 + $0x4] sm:$0xf] }
 0x122   :  { %v7024_v59 = vmul.f32 %v6476_v5, %v793_v58  ;;  %1336 = vmatpush.bf16.msrb.mxu1 %v5131_v46  ;;  %v6214_v5 = vld [vmem:[#allocation10 + $0xa4] sm:$0xf]  ;;  %v5111_v58 = vor.u32 %v6216_v56, %v5110_v55  ;;  %v5078_v46 = vld [vmem:[#allocation10 + $0x60] sm:$0xf]  ;;  %v5080_v56 = vld [vmem:[#allocation10 + $0x70] sm:$0xf0] }
 0x123   :  { %1363 = vmatpush.bf16.msrb.mxu3 %v5123_v7  ;;  %v5079_v55 = vor.u32 %v6208_v47, %v5078_v46  ;;  %v5083_v61 = vor.u32 %v6206_v36, %v5080_v56  ;;  %v5046_v46 = vld [vmem:[#allocation10 + $0x20] sm:$0xf]  ;;  %v6200_v47 = vld [vmem:[#allocation10 + $0x2c] sm:$0xf0]  ;;  %v433_v36 = vadd.f32 %v6947_v15, %v6957_v21  ;;  %v5048_v56 = vld [vmem:[#allocation10 + $0x30] sm:$0xf0] }
 0x124   :  { %v808_v60 = vpack.c.bf16 %v7024_v59, %v7024_v59  ;;  %1324 = vmatpush.bf16.msrb.mxu0 %v5111_v58  ;;  %1351 = vmatpush.bf16.msrb.mxu2 %v5103_v24  ;;  %v6209_v58 = vld [vmem:[#allocation10 + $0x74] sm:$0xf0] }
 0x125   :  { %v6205_v24 = vld [vmem:[#allocation10 + $0x54] sm:$0xf0] }
 0x126   :  { %1009 = vmatmul.bf16.vlgmr.msra.gmra.mxu0 %v808_v60  ;;  %1022 = vmatmul.bf16.vlgmr.msra.gmra.mxu1 %v808_v60  ;;  %v6197_v11 = vld [vmem:[#allocation10 + $0x14] sm:$0xf0] }
 0x127   :  { %1035 = vmatmul.bf16.vlgmr.msra.gmra.mxu2 %v808_v60  ;;  %1048 = vmatmul.bf16.vlgmr.msra.gmra.mxu3 %v808_v60  ;;  %v5112_v60 = vld [vmem:[#allocation10 + $0xb0] sm:$0xf0] }
 0x128   :  { %v5115_v62 = vor.u32 %v6214_v5, %v5112_v60  ;;  %1325 = vmatpush.bf16.msrb.mxu0 %v5095_v2  ;;  %1364 = vmatpush.bf16.msrb.mxu3 %v5107_v42  ;;  %v5086_v5 = vld [vmem:[#allocation10 + $0x68] sm:$0xf]  ;;  %v5072_v42 = vld [vmem:[#allocation10 + $0x58] sm:$0xf0] }
 0x12a   :  { %1337 = vmatpush.bf16.msrb.mxu1 %v5115_v62  ;;  %v5087_v62 = vor.u32 %v6209_v58, %v5086_v5  ;;  %v5054_v5 = vld [vmem:[#allocation10 + $0x28] sm:$0xf] }
 0x12c   :  { %1326 = vmatpush.bf16.msrb.mxu0 %v5079_v55  ;;  %1352 = vmatpush.bf16.msrb.mxu2 %v5087_v62  ;;  %v6198_v55 = vld [vmem:[#allocation10 + $0x24] sm:$0xf]  ;;  %v6199_v62 = vld [vmem:[#allocation10 + $0x2c] sm:$0xf] }
 0x12d   :  { %1365 = vmatpush.bf16.msrb.mxu3 %v5091_v0  ;;  %v5059_v15 = vor.u32 %v6199_v62, %v5056_v63 }
 0x12e   :  { %1338 = vmatpush.bf16.msrb.mxu1 %v5099_v18  ;;  %v5070_v18 = vld [vmem:[#allocation10 + $0x48] sm:$0xf] }
 0x12f   :  { %v5071_v30 = vor.u32 %v6205_v24, %v5070_v18  ;;  %v6195_v24 = vld [vmem:[#allocation10 + $0xc] sm:$0xf] }
 0x130   :  { %1327 = vmatpush.bf16.msrb.mxu0 %v5063_v3  ;;  %v5038_v3 = vld [vmem:[#allocation10 + $0x8] sm:$0xf] }
 0x131   :  { %1353 = vmatpush.bf16.msrb.mxu2 %v5071_v30 }
 0x132   :  { %1339 = vmatpush.bf16.msrb.mxu1 %v5083_v61  ;;  %v6201_v61 = vld [vmem:[#allocation10 + $0x34] sm:$0xf0] }
 0x133   :  { %v5055_v0 = vor.u32 %v6201_v61, %v5054_v5  ;;  %v404_v5 = vadd.f32 %v6943_v13, %v6955_v20 }
 0x135   :  { %1354 = vmatpush.bf16.msrb.mxu2 %v5055_v0 }
 0x136   :  { %1340 = vmatpush.bf16.msrb.mxu1 %v5067_v16 }
 0x1a3   :  { %v1010_v60 = vpop.f32.mrf.mxu0  ;;  %v1023_v6 = vpop.f32.mrf.mxu1 }
 0x1a4   :  { %v1053_v8 = vadd.f32 %v1010_v60, %v346_v52  ;;  %v1054_v7 = vadd.f32 %v1023_v6, %v375_v49  ;;  %v5075_v52 = vor.u32 %v6203_v34, %v5072_v42  ;;  %v5047_v49 = vor.u32 %v6200_v47, %v5046_v46  ;;  %v5040_v34 = vld [vmem:[#allocation10 + $0x18] sm:$0xf0] }
 0x1a5   :  { %v5051_v6 = vor.u32 %v6198_v55, %v5048_v56  ;;  %v5039_v42 = vor.u32 %v6197_v11, %v5038_v3 }
 0x1a6   :  { %v5025_v1 = vmul.f32 -1.442695, %v1053_v8  ;;  %v5026_v2 = vmul.f32 -1.442695, %v1054_v7  ;;  %1366 = vmatpush.bf16.msrb.mxu3 %v5075_v52  ;;  %1328 = vmatpush.bf16.msrb.mxu0 %v5047_v49 }
 0x1a7   :  { %1341 = vmatpush.bf16.msrb.mxu1 %v5051_v6  ;;  %1355 = vmatpush.bf16.msrb.mxu2 %v5039_v42 }
 0x1a8   :  { %6477 = vpow2.f32 %v5025_v1  ;;  %v5031_v1 = vor.u32 %v6196_v45, %v5030_v9 }
 0x1a9   :  { %6479 = vpow2.f32 %v5026_v2  ;;  %v5032_v2 = vld [vmem:[#allocation10 + $0x10] sm:$0xf0] }
 0x1aa   :  { %v1036_v58 = vpop.f32.mrf.mxu2  ;;  %v1049_v60 = vpop.f32.mrf.mxu3  ;;  %v5035_v18 = vor.u32 %v6194_v10, %v5032_v2  ;;  %1367 = vmatpush.bf16.msrb.mxu3 %v5059_v15  ;;  %1329 = vmatpush.bf16.msrb.mxu0 %v5031_v1 }
 0x1ab   :  { %v1056_v53 = vadd.f32 %v1049_v60, %v433_v36  ;;  %v1012_v8 = vpop.f32.mrf.mxu0  ;;  %v1025_v7 = vpop.f32.mrf.mxu1  ;;  %v5043_v36 = vor.u32 %v6195_v24, %v5040_v34  ;;  %v1055_v61 = vadd.f32 %v1036_v58, %v404_v5 }
 0x1ac   :  { %1342 = vmatpush.bf16.msrb.mxu1 %v5035_v18 }
 0x1ad   :  { %v5027_v16 = vmul.f32 -1.442695, %v1056_v53 }
 0x1ae   :  { %v6478_v30 = vpop.eup %6477  ;;  %1368 = vmatpush.bf16.msrb.mxu3 %v5043_v36 }
 0x1af   :  { %v6480_v46 = vpop.eup %6479  ;;  %v1060_v47 = vadd.f32 1.0, %v6478_v30  ;;  %6481 = vpow2.f32 %v5027_v16 }
 0x1b0   :  { %v1079_v52 = vadd.f32 1.0, %v6480_v46 }
 0x1b1   :  { %6483 = vrcp.f32 %v1060_v47  ;;  %v1072_v0 = vand.u32 2147483648, %v1060_v47  ;;  %v1070_v45 = vand.u32 2147483647, %v1060_v47  ;;  %vm1066_vm14 = vweird.f32 %v1060_v47 }
 0x1b2   :  { %6485 = vrcp.f32 %v1079_v52  ;;  %v1038_v49 = vpop.f32.mrf.mxu2  ;;  %v1051_v55 = vpop.f32.mrf.mxu3  ;;  %v1091_v15 = vand.u32 2147483648, %v1079_v52  ;;  %v1089_v1 = vand.u32 2147483647, %v1079_v52  ;;  %vm1085_vm15 = vweird.f32 %v1079_v52 }
 0x1b3   :  { %v1073_v58 = vor.u32 1.1754944e-38, %v1072_v0  ;;  %vm1071_vm2 = vcmp.eq.f32.partialorder %v1070_v45, 8.507059e+37  ;;  %v6254_v0 = vld [vmem:[#allocation10 + $0xe4] sm:$0xf]  ;;  %v6257_v45 = vld [vmem:[#allocation10 + $0xf4] sm:$0xf0] }
 0x1b4   :  { %v1092_v16 = vor.u32 1.1754944e-38, %v1091_v15  ;;  %vm1090_vm3 = vcmp.eq.f32.partialorder %v1089_v1, 8.507059e+37 }
 0x1b5   :  { %v6482_v56 = vpop.eup %6481 }
 0x1b6   :  { %v1099_v60 = vadd.f32 1.0, %v6482_v56 }
 0x1b7   :  { %v6484_v6 = vpop.eup %6483 }
 0x1b8   :  { %v6486_v62 = vpop.eup %6485  ;;  %v1062_v63 = vmul.f32 %v6484_v6, %v1060_v47  ;;  %6487 = vrcp.f32 %v1099_v60  ;;  %vm1067_vm12 = vweird.f32 %v6484_v6  ;;  %v1111_v56 = vand.u32 2147483648, %v1099_v60 }
 0x1b9   :  { %v1081_v53 = vmul.f32 %v6486_v62, %v1079_v52  ;;  %6489 = vtanh.f32 %v1055_v61  ;;  %vm1086_vm13 = vweird.f32 %v6486_v62  ;;  %vm1068_vm0 = vmor %vm1066_vm14, %vm1067_vm12  ;;  %vm1105_vm5 = vweird.f32 %v1099_v60 }
 0x1ba   :  { %v1063_v8 = vsub.f32 1.0, %v1062_v63  ;;  %vm1087_vm1 = vmor %vm1085_vm15, %vm1086_vm13  ;;  %v1109_v5 = vand.u32 2147483647, %v1099_v60  ;;  %v1112_v61 = vor.u32 1.1754944e-38, %v1111_v56  ;;  %v6248_v56 = vld [vmem:[#allocation10 + $0xac] sm:$0xf0] }
 0x1bb   :  { %v1082_v7 = vsub.f32 1.0, %v1081_v53 }
 0x1bc   :  { %v1064_v9 = vmul.f32 %v6484_v6, %v1063_v8  ;;  %vm1110_vm7 = vcmp.eq.f32.partialorder %v1109_v5, 8.507059e+37  ;;  %v5273_v8 = vld [vmem:[#allocation10 + $0xe0] sm:$0xf]  ;;  %v6246_v5 = vld [vmem:[#allocation10 + $0xa4] sm:$0xf] }
 0x1bd   :  { %v1083_v10 = vmul.f32 %v6486_v62, %v1082_v7  ;;  %v6256_v7 = vld [vmem:[#allocation10 + $0xec] sm:$0xf0] }
 0x1be   :  { %v6488_v2 = vpop.eup %6487  ;;  %v1065_v13 = vadd.f32 %v6484_v6, %v1064_v9  ;;  %v5274_v15 = vor.u32 %v6256_v7, %v5273_v8  ;;  %v5281_v9 = vld [vmem:[#allocation10 + $0xe8] sm:$0xf]  ;;  %v6247_v7 = vld [vmem:[#allocation10 + $0xac] sm:$0xf] }
 0x1bf   :  { %v1084_v3 = vadd.f32 %v6486_v62, %v1083_v10  ;;  %v1101_v11 = vmul.f32 %v6488_v2, %v1099_v60  ;;  %v6490_v24 = vpop.eup %6489  ;;  %vm1106_vm4 = vweird.f32 %v6488_v2  ;;  %v5275_v60 = vld [vmem:[#allocation10 + $0xf0] sm:$0xf0]  ;;  %v5282_v1 = vor.u32 %v6257_v45, %v5281_v9  ;;  %v6244_v9 = vld [vmem:[#allocation10 + $0x8c] sm:$0xf0]  ;;  %v6242_v45 = vld [vmem:[#allocation10 + $0x84] sm:$0xf] }
 0x1c0   :  { %v1069_v18 = vsel %vm1068_vm0, %v6484_v6, %v1065_v13  ;;  %vm1107_vm6 = vmor %vm1105_vm5, %vm1106_vm4  ;;  %v5278_v10 = vor.u32 %v6254_v0, %v5275_v60  ;;  %v5283_v13 = vld [vmem:[#allocation10 + $0xf8] sm:$0xf0]  ;;  %1643 = vmatpush.bf16.msra.mxu0 %v5274_v15  ;;  %v5225_v60 = vld [vmem:[#allocation10 + $0x80] sm:$0xf] }
 0x1c1   :  { %v1074_v34 = vsel %vm1071_vm2, %v1073_v58, %v1069_v18  ;;  %v1088_v30 = vsel %vm1087_vm1, %v6486_v62, %v1084_v3  ;;  %v1102_v42 = vsub.f32 1.0, %v1101_v11  ;;  %1669 = vmatpush.bf16.msra.mxu2 %v5282_v1  ;;  %v5257_v3 = vld [vmem:[#allocation10 + $0xc0] sm:$0xf]  ;;  %v6252_v11 = vld [vmem:[#allocation10 + $0xcc] sm:$0xf0] }
 0x1c2   :  { %v1093_v46 = vsel %vm1090_vm3, %v1092_v16, %v1088_v30  ;;  %v1116_v36 = vmul.f32 %v6490_v24, %v1074_v34  ;;  %1656 = vmatpush.bf16.msra.mxu1 %v5278_v10  ;;  %v6250_v16 = vld [vmem:[#allocation10 + $0xc4] sm:$0xf]  ;;  %v5258_v18 = vor.u32 %v6252_v11, %v5257_v3  ;;  %v5259_v24 = vld [vmem:[#allocation10 + $0xd0] sm:$0xf0]  ;;  %v5265_v34 = vld [vmem:[#allocation10 + $0xc8] sm:$0xf]  ;;  %v5226_v10 = vor.u32 %v6244_v9, %v5225_v60 }
 0x1c3   :  { %v1115_v49 = vmul.f32 %v1093_v46, %v7021_v32  ;;  %v1103_v55 = vmul.f32 %v6488_v2, %v1102_v42  ;;  %v6253_v30 = vld [vmem:[#allocation10 + $0xd4] sm:$0xf0]  ;;  %v5262_v42 = vor.u32 %v6250_v16, %v5259_v24  ;;  %v5251_v0 = vld [vmem:[#allocation10 + $0xb8] sm:$0xf0]  ;;  %v5227_v1 = vld [vmem:[#allocation10 + $0x90] sm:$0xf0] }
 0x1c4   :  { %v5266_v46 = vor.u32 %v6253_v30, %v5265_v34  ;;  %1644 = vmatpush.bf16.msra.mxu0 %v5258_v18  ;;  %v5254_v15 = vor.u32 %v6247_v7, %v5251_v0  ;;  %v6243_v11 = vld [vmem:[#allocation10 + $0x8c] sm:$0xf]  ;;  %v5235_v16 = vld [vmem:[#allocation10 + $0x98] sm:$0xf0]  ;;  %v5209_v24 = vld [vmem:[#allocation10 + $0x60] sm:$0xf] }
 0x1c5   :  { %v7037_v47 = vadd.f32 %v1116_v36, %v1115_v49  ;;  %v1104_v52 = vadd.f32 %v6488_v2, %v1103_v55  ;;  %v6251_v36 = vld [vmem:[#allocation10 + $0xcc] sm:$0xf]  ;;  %v5267_v49 = vld [vmem:[#allocation10 + $0xd8] sm:$0xf0]  ;;  %v5238_v18 = vor.u32 %v6243_v11, %v5235_v16  ;;  %v6240_v34 = vld [vmem:[#allocation10 + $0x6c] sm:$0xf0] }
 0x1c6   :  { %v5270_v55 = vor.u32 %v6251_v36, %v5267_v49  ;;  %1657 = vmatpush.bf16.msra.mxu1 %v5262_v42  ;;  %1670 = vmatpush.bf16.msra.mxu2 %v5266_v46  ;;  %v6238_v30 = vld [vmem:[#allocation10 + $0x64] sm:$0xf]  ;;  %v5210_v42 = vor.u32 %v6240_v34, %v5209_v24  ;;  %v5211_v46 = vld [vmem:[#allocation10 + $0x70] sm:$0xf0]  ;;  %v5217_v36 = vld [vmem:[#allocation10 + $0x68] sm:$0xf] }
 0x1c7   :  { %6491 = vtanh.f32 %v7037_v47  ;;  %v1108_v6 = vsel %vm1107_vm6, %v6488_v2, %v1104_v52  ;;  %v6255_v2 = vld [vmem:[#allocation10 + $0xec] sm:$0xf]  ;;  %v5241_v52 = vld [vmem:[#allocation10 + $0xa0] sm:$0xf]  ;;  %v6241_v49 = vld [vmem:[#allocation10 + $0x74] sm:$0xf0] }
 0x1c8   :  { %v1113_v63 = vsel %vm1110_vm7, %v1112_v61, %v1108_v6  ;;  %v5286_v58 = vor.u32 %v6255_v2, %v5283_v13  ;;  %v5242_v6 = vor.u32 %v6248_v56, %v5241_v52  ;;  %v5243_v61 = vld [vmem:[#allocation10 + $0xb0] sm:$0xf0]  ;;  %v5233_v2 = vld [vmem:[#allocation10 + $0x88] sm:$0xf]  ;;  %v6245_v13 = vld [vmem:[#allocation10 + $0x94] sm:$0xf0]  ;;  %v5218_v52 = vor.u32 %v6241_v49, %v5217_v36 }
 0x1c9   :  { %v5234_v3 = vor.u32 %v6245_v13, %v5233_v2  ;;  %v6239_v56 = vld [vmem:[#allocation10 + $0x6c] sm:$0xf]  ;;  %v6236_v7 = vld [vmem:[#allocation10 + $0x4c] sm:$0xf0]  ;;  %v6234_v0 = vld [vmem:[#allocation10 + $0x44] sm:$0xf] }
 0x1ca   :  { %1682 = vmatpush.bf16.msra.mxu3 %v5286_v58  ;;  %1645 = vmatpush.bf16.msra.mxu0 %v5242_v6  ;;  %v5230_v58 = vor.u32 %v6242_v45, %v5227_v1  ;;  %v5195_v60 = vld [vmem:[#allocation10 + $0x50] sm:$0xf0]  ;;  %v5201_v9 = vld [vmem:[#allocation10 + $0x48] sm:$0xf]  ;;  %v6237_v45 = vld [vmem:[#allocation10 + $0x54] sm:$0xf0] }
 0x1cb   :  { %v5198_v2 = vor.u32 %v6234_v0, %v5195_v60  ;;  %v5202_v13 = vor.u32 %v6237_v45, %v5201_v9  ;;  %v6232_v11 = vld [vmem:[#allocation10 + $0x2c] sm:$0xf0]  ;;  %v5179_v24 = vld [vmem:[#allocation10 + $0x30] sm:$0xf0]  ;;  %v5185_v34 = vld [vmem:[#allocation10 + $0x28] sm:$0xf] }
 0x1cc   :  { %v5187_v36 = vld [vmem:[#allocation10 + $0x38] sm:$0xf0]  ;;  %v5169_v0 = vld [vmem:[#allocation10 + $0x8] sm:$0xf]  ;;  %v6227_v45 = vld [vmem:[#allocation10 + $0xc] sm:$0xf] }
 0x1cd   :  { %v6492_v62 = vpop.eup %6491 }
 0x1ce   :  { %v7040_v53 = vmul.f32 %v6492_v62, %v1113_v63  ;;  %1683 = vmatpush.bf16.msra.mxu3 %v5270_v55  ;;  %v5249_v62 = vld [vmem:[#allocation10 + $0xa8] sm:$0xf]  ;;  %v6249_v63 = vld [vmem:[#allocation10 + $0xb4] sm:$0xf0]  ;;  %1646 = vmatpush.bf16.msra.mxu0 %v5226_v10  ;;  %v5214_v55 = vor.u32 %v6238_v30, %v5211_v46  ;;  %v6231_v46 = vld [vmem:[#allocation10 + $0x2c] sm:$0xf] }
 0x1cf   :  { %v5250_v8 = vor.u32 %v6249_v63, %v5249_v62 }
 0x1d0   :  { %v1129_v32 = vpack.c.bf16 %v7040_v53, %v7040_v53 }
 0x1d1   :  { %1671 = vmatpush.bf16.msra.mxu2 %v5250_v8  ;;  %v5193_v8 = vld [vmem:[#allocation10 + $0x40] sm:$0xf] }
 0x1d2   :  { %1330 = vmatmul.bf16.vlgmr.msrb.gmra.mxu0 %v1129_v32  ;;  %1343 = vmatmul.bf16.vlgmr.msrb.gmra.mxu1 %v1129_v32 }
 0x1d3   :  { %1356 = vmatmul.bf16.vlgmr.msrb.gmra.mxu2 %v1129_v32  ;;  %1369 = vmatmul.bf16.vlgmr.msrb.gmra.mxu3 %v1129_v32  ;;  %v5246_v32 = vor.u32 %v6246_v5, %v5243_v61  ;;  %v5219_v5 = vld [vmem:[#allocation10 + $0x78] sm:$0xf0] }
 0x1d4   :  { %1684 = vmatpush.bf16.msra.mxu3 %v5254_v15  ;;  %1647 = vmatpush.bf16.msra.mxu0 %v5210_v42  ;;  %v5222_v62 = vor.u32 %v6239_v56, %v5219_v5  ;;  %v5194_v15 = vor.u32 %v6236_v7, %v5193_v8  ;;  %v6233_v42 = vld [vmem:[#allocation10 + $0x34] sm:$0xf0]  ;;  %v5190_v56 = vor.u32 %v6231_v46, %v5187_v36  ;;  %v5161_v5 = vld [vmem:[#allocation10] sm:$0xf]  ;;  %v5163_v7 = vld [vmem:[#allocation10 + $0x10] sm:$0xf0] }
 0x1d5   :  { %1658 = vmatpush.bf16.msra.mxu1 %v5246_v32  ;;  %1672 = vmatpush.bf16.msra.mxu2 %v5234_v3  ;;  %v5203_v3 = vld [vmem:[#allocation10 + $0x58] sm:$0xf0] }
 0x1d8   :  { %1685 = vmatpush.bf16.msra.mxu3 %v5238_v18  ;;  %1648 = vmatpush.bf16.msra.mxu0 %v5194_v15  ;;  %v6230_v18 = vld [vmem:[#allocation10 + $0x24] sm:$0xf]  ;;  %v6229_v15 = vld [vmem:[#allocation10 + $0x14] sm:$0xf0] }
 0x1d9   :  { %1659 = vmatpush.bf16.msra.mxu1 %v5230_v58  ;;  %1673 = vmatpush.bf16.msra.mxu2 %v5218_v52  ;;  %v6235_v58 = vld [vmem:[#allocation10 + $0x4c] sm:$0xf]  ;;  %v5182_v30 = vor.u32 %v6230_v18, %v5179_v24  ;;  %v5186_v52 = vor.u32 %v6233_v42, %v5185_v34  ;;  %v5170_v9 = vor.u32 %v6229_v15, %v5169_v0 }
 0x1dc   :  { %1686 = vmatpush.bf16.msra.mxu3 %v5222_v62 }
 0x1dd   :  { %1660 = vmatpush.bf16.msra.mxu1 %v5214_v55  ;;  %1674 = vmatpush.bf16.msra.mxu2 %v5202_v13 }
 0x1e1   :  { %1661 = vmatpush.bf16.msra.mxu1 %v5198_v2  ;;  %1675 = vmatpush.bf16.msra.mxu2 %v5186_v52 }
 0x1e5   :  { %1662 = vmatpush.bf16.msra.mxu1 %v5182_v30  ;;  %1676 = vmatpush.bf16.msra.mxu2 %v5170_v9 }
 0x24f   :  { %v1331_v6 = vpop.f32.mrf.mxu0  ;;  %v1344_v61 = vpop.f32.mrf.mxu1 }
 0x250   :  { %v1374_v63 = vadd.f32 %v1331_v6, %v6950_v17  ;;  %v1375_v32 = vadd.f32 %v1344_v61, %v6953_v19  ;;  %v5177_v17 = vld [vmem:[#allocation10 + $0x20] sm:$0xf]  ;;  %v5206_v19 = vor.u32 %v6235_v58, %v5203_v3  ;;  %v6228_v6 = vld [vmem:[#allocation10 + $0xc] sm:$0xf0]  ;;  %v6226_v61 = vld [vmem:[#allocation10 + $0x4] sm:$0xf] }
 0x251   :  { %v5178_v16 = vor.u32 %v6232_v11, %v5177_v17  ;;  %v5162_v8 = vor.u32 %v6228_v6, %v5161_v5  ;;  %v5166_v60 = vor.u32 %v6226_v61, %v5163_v7 }
 0x252   :  { %v5156_v10 = vmul.f32 -1.442695, %v1374_v63  ;;  %v5157_v1 = vmul.f32 -1.442695, %v1375_v32  ;;  %1687 = vmatpush.bf16.msra.mxu3 %v5206_v19 }
 0x253   :  { %1649 = vmatpush.bf16.msra.mxu0 %v5178_v16  ;;  %1663 = vmatpush.bf16.msra.mxu1 %v5166_v60 }
 0x254   :  { %6493 = vpow2.f32 %v5156_v10  ;;  %v5171_v10 = vld [vmem:[#allocation10 + $0x18] sm:$0xf0] }
 0x255   :  { %6495 = vpow2.f32 %v5157_v1  ;;  %v5174_v13 = vor.u32 %v6227_v45, %v5171_v10 }
 0x256   :  { %v1357_v49 = vpop.f32.mrf.mxu2  ;;  %v1370_v55 = vpop.f32.mrf.mxu3  ;;  %1688 = vmatpush.bf16.msra.mxu3 %v5190_v56 }
 0x257   :  { %v1377_v62 = vadd.f32 %v1370_v55, %v6965_v26  ;;  %v1333_v63 = vpop.f32.mrf.mxu0  ;;  %v1346_v32 = vpop.f32.mrf.mxu1  ;;  %1650 = vmatpush.bf16.msra.mxu0 %v5162_v8  ;;  %v1376_v24 = vadd.f32 %v1357_v49, %v6960_v23 }
 0x259   :  { %v5158_v1 = vmul.f32 -1.442695, %v1377_v62 }
 0x25a   :  { %v6494_v2 = vpop.eup %6493  ;;  %1689 = vmatpush.bf16.msra.mxu3 %v5174_v13 }
 0x25b   :  { %v6496_v58 = vpop.eup %6495  ;;  %v1381_v3 = vadd.f32 1.0, %v6494_v2  ;;  %6497 = vpow2.f32 %v5158_v1 }
 0x25c   :  { %v1400_v26 = vadd.f32 1.0, %v6496_v58 }
 0x25d   :  { %6499 = vrcp.f32 %v1381_v3  ;;  %v1393_v55 = vand.u32 2147483648, %v1381_v3  ;;  %v1391_v5 = vand.u32 2147483647, %v1381_v3  ;;  %vm1387_vm10 = vweird.f32 %v1381_v3 }
 0x25e   :  { %6501 = vrcp.f32 %v1400_v26  ;;  %v1359_v17 = vpop.f32.mrf.mxu2  ;;  %v1372_v11 = vpop.f32.mrf.mxu3  ;;  %v1412_v52 = vand.u32 2147483648, %v1400_v26  ;;  %v1410_v61 = vand.u32 2147483647, %v1400_v26  ;;  %vm1406_vm11 = vweird.f32 %v1400_v26 }
 0x25f   :  { %v1394_v23 = vor.u32 1.1754944e-38, %v1393_v55  ;;  %vm1392_vm14 = vcmp.eq.f32.partialorder %v1391_v5, 8.507059e+37  ;;  %v6289_v55 = vld [vmem:[#allocation10 + $0xf4] sm:$0xf0]  ;;  %v6287_v5 = vld [vmem:[#allocation10 + $0xec] sm:$0xf] }
 0x260   :  { %v1413_v8 = vor.u32 1.1754944e-38, %v1412_v52  ;;  %vm1411_vm15 = vcmp.eq.f32.partialorder %v1410_v61, 8.507059e+37 }
 0x261   :  { %v6498_v19 = vpop.eup %6497 }
 0x262   :  { %v1420_v16 = vadd.f32 1.0, %v6498_v19 }
 0x263   :  { %v6500_v18 = vpop.eup %6499 }
 0x264   :  { %v6502_v34 = vpop.eup %6501  ;;  %v1383_v30 = vmul.f32 %v6500_v18, %v1381_v3  ;;  %6503 = vrcp.f32 %v1420_v16  ;;  %vm1388_vm8 = vweird.f32 %v6500_v18  ;;  %v1432_v3 = vand.u32 2147483648, %v1420_v16 }
 0x265   :  { %v1402_v42 = vmul.f32 %v6502_v34, %v1400_v26  ;;  %6505 = vtanh.f32 %v1376_v24  ;;  %vm1407_vm9 = vweird.f32 %v6502_v34  ;;  %vm1389_vm12 = vmor %vm1387_vm10, %vm1388_vm8  ;;  %vm1426_vm1 = vweird.f32 %v1420_v16 }
 0x266   :  { %v1384_v46 = vsub.f32 1.0, %v1383_v30  ;;  %vm1408_vm13 = vmor %vm1406_vm11, %vm1407_vm9  ;;  %v1430_v26 = vand.u32 2147483647, %v1420_v16  ;;  %v1433_v11 = vor.u32 1.1754944e-38, %v1432_v3  ;;  %v6288_v30 = vld [vmem:[#allocation10 + $0xec] sm:$0xf0] }
 0x267   :  { %v1403_v36 = vsub.f32 1.0, %v1402_v42  ;;  %v6286_v42 = vld [vmem:[#allocation10 + $0xe4] sm:$0xf]  ;;  %v5374_v3 = vld [vmem:[#allocation10 + $0xb0] sm:$0xf0] }
 0x268   :  { %v1385_v56 = vmul.f32 %v6500_v18, %v1384_v46  ;;  %vm1431_vm3 = vcmp.eq.f32.partialorder %v1430_v26, 8.507059e+37  ;;  %v5380_v26 = vld [vmem:[#allocation10 + $0xa8] sm:$0xf] }
 0x269   :  { %v1404_v6 = vmul.f32 %v6502_v34, %v1403_v36  ;;  %v5412_v36 = vld [vmem:[#allocation10 + $0xe8] sm:$0xf] }
 0x26a   :  { %v6504_v62 = vpop.eup %6503  ;;  %v1386_v63 = vadd.f32 %v6500_v18, %v1385_v56  ;;  %v5413_v56 = vor.u32 %v6289_v55, %v5412_v36  ;;  %v5358_v36 = vld [vmem:[#allocation10 + $0x90] sm:$0xf0]  ;;  %v5364_v55 = vld [vmem:[#allocation10 + $0x88] sm:$0xf] }
 0x26b   :  { %v1405_v49 = vadd.f32 %v6502_v34, %v1404_v6  ;;  %v1422_v32 = vmul.f32 %v6504_v62, %v1420_v16  ;;  %v6506_v0 = vpop.eup %6505  ;;  %vm1427_vm0 = vweird.f32 %v6504_v62  ;;  %v5406_v16 = vld [vmem:[#allocation10 + $0xf0] sm:$0xf0]  ;;  %v5414_v6 = vld [vmem:[#allocation10 + $0xf8] sm:$0xf0] }
 0x26c   :  { %v1390_v7 = vsel %vm1389_vm12, %v6500_v18, %v1386_v63  ;;  %vm1428_vm2 = vmor %vm1426_vm1, %vm1427_vm0  ;;  %v5409_v52 = vor.u32 %v6286_v42, %v5406_v16  ;;  %v5417_v61 = vor.u32 %v6287_v5, %v5414_v6  ;;  %1990 = vmatpush.bf16.msrb.mxu2 %v5413_v56  ;;  %v6284_v63 = vld [vmem:[#allocation10 + $0xcc] sm:$0xf0]  ;;  %v6275_v6 = vld [vmem:[#allocation10 + $0x8c] sm:$0xf] }
 0x26d   :  { %v1395_v15 = vsel %vm1392_vm14, %v1394_v23, %v1390_v7  ;;  %v1409_v60 = vsel %vm1408_vm13, %v6502_v34, %v1405_v49  ;;  %v1423_v9 = vsub.f32 1.0, %v1422_v32  ;;  %v5404_v34 = vld [vmem:[#allocation10 + $0xe0] sm:$0xf]  ;;  %v6282_v23 = vld [vmem:[#allocation10 + $0xc4] sm:$0xf] }
 0x26e   :  { %v1414_v45 = vsel %vm1411_vm15, %v1413_v8, %v1409_v60  ;;  %v1437_v10 = vmul.f32 %v6506_v0, %v1395_v15  ;;  %v5405_v46 = vor.u32 %v6288_v30, %v5404_v34  ;;  %1977 = vmatpush.bf16.msrb.mxu1 %v5409_v52  ;;  %2003 = vmatpush.bf16.msrb.mxu3 %v5417_v61  ;;  %v5390_v32 = vld [vmem:[#allocation10 + $0xd0] sm:$0xf0]  ;;  %v5396_v8 = vld [vmem:[#allocation10 + $0xc8] sm:$0xf]  ;;  %v6285_v7 = vld [vmem:[#allocation10 + $0xd4] sm:$0xf0] }
 0x26f   :  { %v1436_v1 = vmul.f32 %v1414_v45, %v7037_v47  ;;  %v1424_v2 = vmul.f32 %v6504_v62, %v1423_v9  ;;  %v5393_v0 = vor.u32 %v6282_v23, %v5390_v32  ;;  %v5397_v15 = vor.u32 %v6285_v7, %v5396_v8  ;;  %v6283_v60 = vld [vmem:[#allocation10 + $0xcc] sm:$0xf]  ;;  %v5398_v9 = vld [vmem:[#allocation10 + $0xd8] sm:$0xf0]  ;;  %v5356_v30 = vld [vmem:[#allocation10 + $0x80] sm:$0xf] }
 0x270   :  { %1964 = vmatpush.bf16.msrb.mxu0 %v5405_v46  ;;  %v5401_v45 = vor.u32 %v6283_v60, %v5398_v9  ;;  %v6276_v42 = vld [vmem:[#allocation10 + $0x8c] sm:$0xf0]  ;;  %v6274_v46 = vld [vmem:[#allocation10 + $0x84] sm:$0xf]  ;;  %v6277_v52 = vld [vmem:[#allocation10 + $0x94] sm:$0xf0]  ;;  %v380_v60 = vadd.f32 %v6967_v27, %v6945_v14 }
 0x271   :  { %v7049_v13 = vadd.f32 %v1437_v10, %v1436_v1  ;;  %v1425_v58 = vadd.f32 %v6504_v62, %v1424_v2  ;;  %1991 = vmatpush.bf16.msrb.mxu2 %v5397_v15  ;;  %v5372_v10 = vld [vmem:[#allocation10 + $0xa0] sm:$0xf]  ;;  %v6280_v1 = vld [vmem:[#allocation10 + $0xac] sm:$0xf0]  ;;  %v6278_v2 = vld [vmem:[#allocation10 + $0xa4] sm:$0xf]  ;;  %v5357_v16 = vor.u32 %v6276_v42, %v5356_v30  ;;  %v5361_v56 = vor.u32 %v6274_v46, %v5358_v36 }
 0x272   :  { %1978 = vmatpush.bf16.msrb.mxu1 %v5393_v0  ;;  %2004 = vmatpush.bf16.msrb.mxu3 %v5401_v45  ;;  %v5365_v5 = vor.u32 %v6277_v52, %v5364_v55  ;;  %v5366_v61 = vld [vmem:[#allocation10 + $0x98] sm:$0xf0]  ;;  %v6272_v23 = vld [vmem:[#allocation10 + $0x6c] sm:$0xf0]  ;;  %v5342_v8 = vld [vmem:[#allocation10 + $0x70] sm:$0xf0]  ;;  %v351_v15 = vadd.f32 %v6962_v25, %v6941_v12 }
 0x273   :  { %6507 = vtanh.f32 %v7049_v13  ;;  %v1429_v17 = vsel %vm1428_vm2, %v6504_v62, %v1425_v58  ;;  %v5388_v62 = vld [vmem:[#allocation10 + $0xc0] sm:$0xf]  ;;  %v5373_v58 = vor.u32 %v6280_v1, %v5372_v10  ;;  %v5348_v7 = vld [vmem:[#allocation10 + $0x68] sm:$0xf]  ;;  %v6273_v0 = vld [vmem:[#allocation10 + $0x74] sm:$0xf0] }
 0x274   :  { %v1434_v18 = vsel %vm1431_vm3, %v1433_v11, %v1429_v17  ;;  %v5389_v49 = vor.u32 %v6284_v63, %v5388_v62  ;;  %v6281_v17 = vld [vmem:[#allocation10 + $0xb4] sm:$0xf0]  ;;  %v5377_v11 = vor.u32 %v6278_v2, %v5374_v3  ;;  %v5369_v62 = vor.u32 %v6275_v6, %v5366_v61  ;;  %v5340_v63 = vld [vmem:[#allocation10 + $0x60] sm:$0xf]  ;;  %v6271_v10 = vld [vmem:[#allocation10 + $0x6c] sm:$0xf] }
 0x275   :  { %v5341_v32 = vor.u32 %v6272_v23, %v5340_v63  ;;  %v5349_v45 = vor.u32 %v6273_v0, %v5348_v7  ;;  %v5350_v1 = vld [vmem:[#allocation10 + $0x78] sm:$0xf0]  ;;  %v6269_v27 = vld [vmem:[#allocation10 + $0x54] sm:$0xf0]  ;;  %v6267_v36 = vld [vmem:[#allocation10 + $0x4c] sm:$0xf]  ;;  %v438_v23 = vadd.f32 %v6971_v29, %v6957_v21 }
 0x276   :  { %1965 = vmatpush.bf16.msrb.mxu0 %v5389_v49  ;;  %1979 = vmatpush.bf16.msrb.mxu1 %v5377_v11  ;;  %v6270_v49 = vld [vmem:[#allocation10 + $0x64] sm:$0xf]  ;;  %v5353_v3 = vor.u32 %v6271_v10, %v5350_v1  ;;  %v5324_v11 = vld [vmem:[#allocation10 + $0x40] sm:$0xf]  ;;  %v5334_v55 = vld [vmem:[#allocation10 + $0x58] sm:$0xf0] }
 0x277   :  { %v5345_v9 = vor.u32 %v6270_v49, %v5342_v8  ;;  %v5308_v52 = vld [vmem:[#allocation10 + $0x20] sm:$0xf]  ;;  %v6262_v61 = vld [vmem:[#allocation10 + $0x24] sm:$0xf]  ;;  %v5316_v63 = vld [vmem:[#allocation10 + $0x28] sm:$0xf] }
 0x278   :  { %v6263_v8 = vld [vmem:[#allocation10 + $0x2c] sm:$0xf]  ;;  %v5318_v7 = vld [vmem:[#allocation10 + $0x38] sm:$0xf0]  ;;  %v6260_v10 = vld [vmem:[#allocation10 + $0xc] sm:$0xf0] }
 0x279   :  { %v6508_v19 = vpop.eup %6507  ;;  %v6258_v1 = vld [vmem:[#allocation10 + $0x4] sm:$0xf]  ;;  %v5300_v29 = vld [vmem:[#allocation10 + $0x8] sm:$0xf] }
 0x27a   :  { %v7052_v24 = vmul.f32 %v6508_v19, %v1434_v18  ;;  %v5381_v19 = vor.u32 %v6281_v17, %v5380_v26  ;;  %v6279_v18 = vld [vmem:[#allocation10 + $0xac] sm:$0xf]  ;;  %1966 = vmatpush.bf16.msrb.mxu0 %v5373_v58  ;;  %1980 = vmatpush.bf16.msrb.mxu1 %v5361_v56  ;;  %v6264_v56 = vld [vmem:[#allocation10 + $0x2c] sm:$0xf0] }
 0x27b   :  { %v5309_v6 = vor.u32 %v6264_v56, %v5308_v52  ;;  %v409_v56 = vadd.f32 %v6969_v28, %v6955_v20 }
 0x27c   :  { %v1450_v47 = vpack.c.bf16 %v7052_v24, %v7052_v24  ;;  %1992 = vmatpush.bf16.msrb.mxu2 %v5381_v19  ;;  %v6268_v19 = vld [vmem:[#allocation10 + $0x4c] sm:$0xf0] }
 0x27d   :  { %v5325_v25 = vor.u32 %v6268_v19, %v5324_v11  ;;  %v6261_v11 = vld [vmem:[#allocation10 + $0x14] sm:$0xf0] }
 0x27e   :  { %1651 = vmatmul.bf16.vlgmr.msra.gmra.mxu0 %v1450_v47  ;;  %1664 = vmatmul.bf16.vlgmr.msra.gmra.mxu1 %v1450_v47 }
 0x27f   :  { %1677 = vmatmul.bf16.vlgmr.msra.gmra.mxu2 %v1450_v47  ;;  %1690 = vmatmul.bf16.vlgmr.msra.gmra.mxu3 %v1450_v47  ;;  %v5382_v47 = vld [vmem:[#allocation10 + $0xb8] sm:$0xf0] }
 0x280   :  { %v5385_v34 = vor.u32 %v6279_v18, %v5382_v47  ;;  %1967 = vmatpush.bf16.msrb.mxu0 %v5357_v16  ;;  %1993 = vmatpush.bf16.msrb.mxu2 %v5365_v5  ;;  %v6266_v18 = vld [vmem:[#allocation10 + $0x44] sm:$0xf]  ;;  %v5326_v47 = vld [vmem:[#allocation10 + $0x50] sm:$0xf0]  ;;  %v5337_v5 = vor.u32 %v6267_v36, %v5334_v55 }
 0x281   :  { %1981 = vmatpush.bf16.msrb.mxu1 %v5345_v9  ;;  %v5329_v46 = vor.u32 %v6266_v18, %v5326_v47  ;;  %v5321_v9 = vor.u32 %v6263_v8, %v5318_v7  ;;  %v5301_v18 = vor.u32 %v6261_v11, %v5300_v29  ;;  %v5302_v47 = vld [vmem:[#allocation10 + $0x18] sm:$0xf0] }
 0x282   :  { %2005 = vmatpush.bf16.msrb.mxu3 %v5385_v34  ;;  %v5332_v34 = vld [vmem:[#allocation10 + $0x48] sm:$0xf] }
 0x283   :  { %v5333_v16 = vor.u32 %v6269_v27, %v5332_v34 }
 0x284   :  { %1968 = vmatpush.bf16.msrb.mxu0 %v5341_v32  ;;  %1994 = vmatpush.bf16.msrb.mxu2 %v5349_v45  ;;  %v6265_v32 = vld [vmem:[#allocation10 + $0x34] sm:$0xf0]  ;;  %v5292_v45 = vld [vmem:[#allocation10] sm:$0xf] }
 0x285   :  { %1982 = vmatpush.bf16.msrb.mxu1 %v5329_v46 }
 0x286   :  { %2006 = vmatpush.bf16.msrb.mxu3 %v5369_v62  ;;  %v5310_v62 = vld [vmem:[#allocation10 + $0x30] sm:$0xf0] }
 0x287   :  { %v5313_v49 = vor.u32 %v6262_v61, %v5310_v62 }
 0x288   :  { %1969 = vmatpush.bf16.msrb.mxu0 %v5325_v25  ;;  %1995 = vmatpush.bf16.msrb.mxu2 %v5333_v16  ;;  %v6259_v25 = vld [vmem:[#allocation10 + $0xc] sm:$0xf] }
 0x289   :  { %1983 = vmatpush.bf16.msrb.mxu1 %v5313_v49 }
 0x28a   :  { %2007 = vmatpush.bf16.msrb.mxu3 %v5353_v3 }
 0x28c   :  { %1970 = vmatpush.bf16.msrb.mxu0 %v5309_v6 }
 0x28e   :  { %2008 = vmatpush.bf16.msrb.mxu3 %v5337_v5 }
 0x292   :  { %2009 = vmatpush.bf16.msrb.mxu3 %v5321_v9 }
 0x2fb   :  { %v1652_v2 = vpop.f32.mrf.mxu0  ;;  %v1665_v58 = vpop.f32.mrf.mxu1 }
 0x2fc   :  { %v1695_v26 = vadd.f32 %v1652_v2, %v351_v15  ;;  %v1696_v17 = vadd.f32 %v1665_v58, %v380_v60  ;;  %v5317_v60 = vor.u32 %v6265_v32, %v5316_v63 }
 0x2fe   :  { %v5287_v30 = vmul.f32 -1.442695, %v1695_v26  ;;  %v5288_v42 = vmul.f32 -1.442695, %v1696_v17  ;;  %v5293_v26 = vor.u32 %v6260_v10, %v5292_v45  ;;  %v5294_v17 = vld [vmem:[#allocation10 + $0x10] sm:$0xf0]  ;;  %1996 = vmatpush.bf16.msrb.mxu2 %v5317_v60 }
 0x2ff   :  { %v5297_v19 = vor.u32 %v6258_v1, %v5294_v17 }
 0x300   :  { %6509 = vpow2.f32 %v5287_v30  ;;  %v5305_v30 = vor.u32 %v6259_v25, %v5302_v47  ;;  %1971 = vmatpush.bf16.msrb.mxu0 %v5293_v26 }
 0x301   :  { %6511 = vpow2.f32 %v5288_v42  ;;  %1984 = vmatpush.bf16.msrb.mxu1 %v5297_v19 }
 0x302   :  { %v1678_v0 = vpop.f32.mrf.mxu2  ;;  %v1691_v15 = vpop.f32.mrf.mxu3  ;;  %1997 = vmatpush.bf16.msrb.mxu2 %v5301_v18  ;;  %2010 = vmatpush.bf16.msrb.mxu3 %v5305_v30 }
 0x303   :  { %v1698_v2 = vadd.f32 %v1691_v15, %v438_v23  ;;  %v1654_v58 = vpop.f32.mrf.mxu0  ;;  %v1667_v3 = vpop.f32.mrf.mxu1  ;;  %v1697_v61 = vadd.f32 %v1678_v0, %v409_v56  ;;  %v5535_v56 = vld [vmem:[#allocation10 + $0xe0] sm:$0xf] }
 0x305   :  { %v5289_v34 = vmul.f32 -1.442695, %v1698_v2 }
 0x306   :  { %v6510_v27 = vpop.eup %6509 }
 0x307   :  { %v6512_v42 = vpop.eup %6511  ;;  %v1702_v46 = vadd.f32 1.0, %v6510_v27  ;;  %6513 = vpow2.f32 %v5289_v34 }
 0x308   :  { %v1721_v16 = vadd.f32 1.0, %v6512_v42 }
 0x309   :  { %6515 = vrcp.f32 %v1702_v46  ;;  %v1714_v8 = vand.u32 2147483648, %v1702_v46  ;;  %v1712_v60 = vand.u32 2147483647, %v1702_v46  ;;  %vm1708_vm6 = vweird.f32 %v1702_v46 }
 0x30a   :  { %6517 = vrcp.f32 %v1721_v16  ;;  %v1680_v36 = vpop.f32.mrf.mxu2  ;;  %v1693_v55 = vpop.f32.mrf.mxu3  ;;  %v1733_v7 = vand.u32 2147483648, %v1721_v16  ;;  %v1731_v45 = vand.u32 2147483647, %v1721_v16  ;;  %vm1727_vm7 = vweird.f32 %v1721_v16 }
 0x30b   :  { %v1715_v0 = vor.u32 1.1754944e-38, %v1714_v8  ;;  %vm1713_vm10 = vcmp.eq.f32.partialorder %v1712_v60, 8.507059e+37  ;;  %v6319_v8 = vld [vmem:[#allocation10 + $0xec] sm:$0xf]  ;;  %v5519_v60 = vld [vmem:[#allocation10 + $0xc0] sm:$0xf] }
 0x30c   :  { %v1734_v58 = vor.u32 1.1754944e-38, %v1733_v7  ;;  %vm1732_vm11 = vcmp.eq.f32.partialorder %v1731_v45, 8.507059e+37  ;;  %v5545_v7 = vld [vmem:[#allocation10 + $0xf8] sm:$0xf0]  ;;  %v6314_v45 = vld [vmem:[#allocation10 + $0xc4] sm:$0xf] }
 0x30d   :  { %v6514_v52 = vpop.eup %6513 }
 0x30e   :  { %v1741_v5 = vadd.f32 1.0, %v6514_v52 }
 0x30f   :  { %v6516_v6 = vpop.eup %6515 }
 0x310   :  { %v6518_v62 = vpop.eup %6517  ;;  %v1704_v63 = vmul.f32 %v6516_v6, %v1702_v46  ;;  %6519 = vrcp.f32 %v1741_v5  ;;  %vm1709_vm4 = vweird.f32 %v6516_v6  ;;  %v1753_v30 = vand.u32 2147483648, %v1741_v5 }
 0x311   :  { %v1723_v23 = vmul.f32 %v6518_v62, %v1721_v16  ;;  %6521 = vtanh.f32 %v1697_v61  ;;  %vm1728_vm5 = vweird.f32 %v6518_v62  ;;  %vm1710_vm8 = vmor %vm1708_vm6, %vm1709_vm4  ;;  %vm1747_vm13 = vweird.f32 %v1741_v5  ;;  %v6318_v61 = vld [vmem:[#allocation10 + $0xe4] sm:$0xf] }
 0x312   :  { %v1705_v49 = vsub.f32 1.0, %v1704_v63  ;;  %vm1729_vm9 = vmor %vm1727_vm7, %vm1728_vm5  ;;  %v1751_v42 = vand.u32 2147483647, %v1741_v5  ;;  %v1754_v16 = vor.u32 1.1754944e-38, %v1753_v30  ;;  %v5543_v63 = vld [vmem:[#allocation10 + $0xe8] sm:$0xf] }
 0x313   :  { %v1724_v32 = vsub.f32 1.0, %v1723_v23  ;;  %v6321_v23 = vld [vmem:[#allocation10 + $0xf4] sm:$0xf0] }
 0x314   :  { %v1706_v15 = vmul.f32 %v6516_v6, %v1705_v49  ;;  %vm1752_vm15 = vcmp.eq.f32.partialorder %v1751_v42, 8.507059e+37 }
 0x315   :  { %v1725_v9 = vmul.f32 %v6518_v62, %v1724_v32  ;;  %v5544_v32 = vor.u32 %v6321_v23, %v5543_v63 }
 0x316   :  { %v6520_v10 = vpop.eup %6519  ;;  %v1707_v28 = vadd.f32 %v6516_v6, %v1706_v15  ;;  %v5548_v15 = vor.u32 %v6319_v8, %v5545_v7  ;;  %v5471_v7 = vld [vmem:[#allocation10 + $0x60] sm:$0xf] }
 0x317   :  { %v1726_v1 = vadd.f32 %v6518_v62, %v1725_v9  ;;  %v1743_v2 = vmul.f32 %v6520_v10, %v1741_v5  ;;  %v6522_v26 = vpop.eup %6521  ;;  %vm1748_vm12 = vweird.f32 %v6520_v10  ;;  %v5537_v5 = vld [vmem:[#allocation10 + $0xf0] sm:$0xf0]  ;;  %2311 = vmatpush.bf16.msra.mxu2 %v5544_v32  ;;  %v6316_v9 = vld [vmem:[#allocation10 + $0xcc] sm:$0xf0]  ;;  %v5497_v32 = vld [vmem:[#allocation10 + $0x98] sm:$0xf0] }
 0x318   :  { %v1711_v3 = vsel %vm1710_vm8, %v6516_v6, %v1707_v28  ;;  %vm1749_vm14 = vmor %vm1747_vm13, %vm1748_vm12  ;;  %v6320_v6 = vld [vmem:[#allocation10 + $0xec] sm:$0xf0]  ;;  %v5540_v49 = vor.u32 %v6318_v61, %v5537_v5  ;;  %2324 = vmatpush.bf16.msra.mxu3 %v5548_v15  ;;  %v5521_v28 = vld [vmem:[#allocation10 + $0xd0] sm:$0xf0] }
 0x319   :  { %v1716_v17 = vsel %vm1713_vm10, %v1715_v0, %v1711_v3  ;;  %v1730_v29 = vsel %vm1729_vm9, %v6518_v62, %v1726_v1  ;;  %v1744_v11 = vsub.f32 1.0, %v1743_v2  ;;  %v5536_v62 = vor.u32 %v6320_v6, %v5535_v56  ;;  %v5527_v0 = vld [vmem:[#allocation10 + $0xc8] sm:$0xf]  ;;  %v6317_v1 = vld [vmem:[#allocation10 + $0xd4] sm:$0xf0] }
 0x31a   :  { %v1735_v19 = vsel %vm1732_vm11, %v1734_v58, %v1730_v29  ;;  %v1758_v18 = vmul.f32 %v6522_v26, %v1716_v17  ;;  %2298 = vmatpush.bf16.msra.mxu1 %v5540_v49  ;;  %v5524_v2 = vor.u32 %v6314_v45, %v5521_v28  ;;  %v5528_v58 = vor.u32 %v6317_v1, %v5527_v0  ;;  %v6315_v3 = vld [vmem:[#allocation10 + $0xcc] sm:$0xf]  ;;  %v5529_v26 = vld [vmem:[#allocation10 + $0xd8] sm:$0xf0]  ;;  %v5503_v29 = vld [vmem:[#allocation10 + $0xa0] sm:$0xf] }
 0x31b   :  { %v1757_v25 = vmul.f32 %v1735_v19, %v7049_v13  ;;  %v1745_v47 = vmul.f32 %v6520_v10, %v1744_v11  ;;  %2285 = vmatpush.bf16.msra.mxu0 %v5536_v62  ;;  %v5532_v17 = vor.u32 %v6315_v3, %v5529_v26  ;;  %v6312_v11 = vld [vmem:[#allocation10 + $0xac] sm:$0xf0]  ;;  %v6310_v19 = vld [vmem:[#allocation10 + $0xa4] sm:$0xf]  ;;  %v5489_v61 = vld [vmem:[#allocation10 + $0x90] sm:$0xf0] }
 0x31c   :  { %2312 = vmatpush.bf16.msra.mxu2 %v5528_v58  ;;  %v6306_v56 = vld [vmem:[#allocation10 + $0x84] sm:$0xf]  ;;  %v5495_v62 = vld [vmem:[#allocation10 + $0x88] sm:$0xf]  ;;  %v6309_v5 = vld [vmem:[#allocation10 + $0x94] sm:$0xf0] }
 0x31d   :  { %v7065_v34 = vadd.f32 %v1758_v18, %v1757_v25  ;;  %v1746_v27 = vadd.f32 %v6520_v10, %v1745_v47  ;;  %2325 = vmatpush.bf16.msra.mxu3 %v5532_v17  ;;  %v5504_v18 = vor.u32 %v6312_v11, %v5503_v29  ;;  %v5505_v25 = vld [vmem:[#allocation10 + $0xb0] sm:$0xf0]  ;;  %v5511_v47 = vld [vmem:[#allocation10 + $0xa8] sm:$0xf]  ;;  %v5492_v63 = vor.u32 %v6306_v56, %v5489_v61  ;;  %v6307_v49 = vld [vmem:[#allocation10 + $0x8c] sm:$0xf] }
 0x31e   :  { %2299 = vmatpush.bf16.msra.mxu1 %v5524_v2  ;;  %v5508_v30 = vor.u32 %v6310_v19, %v5505_v25  ;;  %v5496_v23 = vor.u32 %v6309_v5, %v5495_v62  ;;  %v5500_v8 = vor.u32 %v6307_v49, %v5497_v32  ;;  %v6304_v15 = vld [vmem:[#allocation10 + $0x6c] sm:$0xf0]  ;;  %v5473_v45 = vld [vmem:[#allocation10 + $0x70] sm:$0xf0]  ;;  %v6305_v28 = vld [vmem:[#allocation10 + $0x74] sm:$0xf0] }
 0x31f   :  { %6523 = vtanh.f32 %v7065_v34  ;;  %v1750_v46 = vsel %vm1749_vm14, %v6520_v10, %v1746_v27  ;;  %v5520_v10 = vor.u32 %v6316_v9, %v5519_v60  ;;  %v6313_v27 = vld [vmem:[#allocation10 + $0xb4] sm:$0xf0]  ;;  %v6302_v60 = vld [vmem:[#allocation10 + $0x64] sm:$0xf]  ;;  %v5472_v9 = vor.u32 %v6304_v15, %v5471_v7  ;;  %v6303_v2 = vld [vmem:[#allocation10 + $0x6c] sm:$0xf] }
 0x320   :  { %v1755_v55 = vsel %vm1752_vm15, %v1754_v16, %v1750_v46  ;;  %v5512_v42 = vor.u32 %v6313_v27, %v5511_v47  ;;  %v6311_v46 = vld [vmem:[#allocation10 + $0xac] sm:$0xf]  ;;  %v5513_v16 = vld [vmem:[#allocation10 + $0xb8] sm:$0xf0]  ;;  %v5476_v0 = vor.u32 %v6302_v60, %v5473_v45  ;;  %v5455_v19 = vld [vmem:[#allocation10 + $0x40] sm:$0xf] }
 0x321   :  { %2286 = vmatpush.bf16.msra.mxu0 %v5520_v10  ;;  %v5479_v10 = vld [vmem:[#allocation10 + $0x68] sm:$0xf]  ;;  %v5481_v58 = vld [vmem:[#allocation10 + $0x78] sm:$0xf0]  ;;  %v6298_v25 = vld [vmem:[#allocation10 + $0x44] sm:$0xf] }
 0x322   :  { %2300 = vmatpush.bf16.msra.mxu1 %v5508_v30  ;;  %2313 = vmatpush.bf16.msra.mxu2 %v5512_v42  ;;  %v5480_v1 = vor.u32 %v6305_v28, %v5479_v10  ;;  %v5484_v17 = vor.u32 %v6303_v2, %v5481_v58  ;;  %v5457_v27 = vld [vmem:[#allocation10 + $0x50] sm:$0xf0]  ;;  %v5463_v30 = vld [vmem:[#allocation10 + $0x48] sm:$0xf]  ;;  %v6301_v42 = vld [vmem:[#allocation10 + $0x54] sm:$0xf0] }
 0x323   :  { %v5465_v56 = vld [vmem:[#allocation10 + $0x58] sm:$0xf0]  ;;  %v6294_v62 = vld [vmem:[#allocation10 + $0x24] sm:$0xf]  ;;  %v5441_v5 = vld [vmem:[#allocation10 + $0x30] sm:$0xf0] }
 0x324   :  { %v6297_v49 = vld [vmem:[#allocation10 + $0x34] sm:$0xf0]  ;;  %v6295_v32 = vld [vmem:[#allocation10 + $0x2c] sm:$0xf]  ;;  %v5423_v45 = vld [vmem:[#allocation10] sm:$0xf] }
 0x325   :  { %v6524_v36 = vpop.eup %6523  ;;  %2287 = vmatpush.bf16.msra.mxu0 %v5504_v18  ;;  %v6300_v18 = vld [vmem:[#allocation10 + $0x4c] sm:$0xf0]  ;;  %v6290_v28 = vld [vmem:[#allocation10 + $0x4] sm:$0xf] }
 0x326   :  { %v7068_v52 = vmul.f32 %v6524_v36, %v1755_v55  ;;  %v5516_v36 = vor.u32 %v6311_v46, %v5513_v16  ;;  %v5487_v55 = vld [vmem:[#allocation10 + $0x80] sm:$0xf]  ;;  %2301 = vmatpush.bf16.msra.mxu1 %v5492_v63  ;;  %2314 = vmatpush.bf16.msra.mxu2 %v5496_v23  ;;  %v5456_v47 = vor.u32 %v6300_v18, %v5455_v19  ;;  %v5447_v63 = vld [vmem:[#allocation10 + $0x28] sm:$0xf]  ;;  %v6292_v10 = vld [vmem:[#allocation10 + $0xc] sm:$0xf0] }
 0x327   :  { %v5444_v23 = vor.u32 %v6294_v62, %v5441_v5  ;;  %v5448_v60 = vor.u32 %v6297_v49, %v5447_v63  ;;  %v5424_v58 = vor.u32 %v6292_v10, %v5423_v45  ;;  %v6291_v19 = vld [vmem:[#allocation10 + $0xc] sm:$0xf]  ;;  %v5433_v18 = vld [vmem:[#allocation10 + $0x18] sm:$0xf0] }
 0x328   :  { %v1771_v13 = vpack.c.bf16 %v7068_v52, %v7068_v52  ;;  %2326 = vmatpush.bf16.msra.mxu3 %v5516_v36  ;;  %v5460_v36 = vor.u32 %v6298_v25, %v5457_v27  ;;  %v5436_v27 = vor.u32 %v6291_v19, %v5433_v18 }
 0x32a   :  { %1972 = vmatmul.bf16.vlgmr.msrb.gmra.mxu0 %v1771_v13  ;;  %1985 = vmatmul.bf16.vlgmr.msrb.gmra.mxu1 %v1771_v13 }
 0x32b   :  { %1998 = vmatmul.bf16.vlgmr.msrb.gmra.mxu2 %v1771_v13  ;;  %2011 = vmatmul.bf16.vlgmr.msrb.gmra.mxu3 %v1771_v13  ;;  %v6308_v13 = vld [vmem:[#allocation10 + $0x8c] sm:$0xf0] }
 0x32c   :  { %v5488_v6 = vor.u32 %v6308_v13, %v5487_v55  ;;  %2327 = vmatpush.bf16.msra.mxu3 %v5500_v8  ;;  %2302 = vmatpush.bf16.msra.mxu1 %v5476_v0  ;;  %v5464_v55 = vor.u32 %v6301_v42, %v5463_v30  ;;  %v6299_v13 = vld [vmem:[#allocation10 + $0x4c] sm:$0xf]  ;;  %v5449_v8 = vld [vmem:[#allocation10 + $0x38] sm:$0xf0] }
 0x32d   :  { %2315 = vmatpush.bf16.msra.mxu2 %v5480_v1 }
 0x32e   :  { %2288 = vmatpush.bf16.msra.mxu0 %v5488_v6  ;;  %v6296_v6 = vld [vmem:[#allocation10 + $0x2c] sm:$0xf0] }
 0x330   :  { %2328 = vmatpush.bf16.msra.mxu3 %v5484_v17  ;;  %2303 = vmatpush.bf16.msra.mxu1 %v5460_v36  ;;  %v6293_v17 = vld [vmem:[#allocation10 + $0x14] sm:$0xf0] }
 0x331   :  { %2316 = vmatpush.bf16.msra.mxu2 %v5464_v55 }
 0x332   :  { %2289 = vmatpush.bf16.msra.mxu0 %v5472_v9  ;;  %v5452_v9 = vor.u32 %v6295_v32, %v5449_v8 }
 0x334   :  { %2304 = vmatpush.bf16.msra.mxu1 %v5444_v23 }
 0x335   :  { %2317 = vmatpush.bf16.msra.mxu2 %v5448_v60 }
 0x336   :  { %2290 = vmatpush.bf16.msra.mxu0 %v5456_v47 }
 0x3a7   :  { %v1973_v3 = vpop.f32.mrf.mxu0  ;;  %v1986_v26 = vpop.f32.mrf.mxu1 }
 0x3a8   :  { %v2016_v29 = vadd.f32 %v1973_v3, %v6974_v31  ;;  %v2017_v11 = vadd.f32 %v1986_v26, %v6977_v33  ;;  %v5439_v31 = vld [vmem:[#allocation10 + $0x20] sm:$0xf]  ;;  %v5468_v33 = vor.u32 %v6299_v13, %v5465_v56  ;;  %v5425_v3 = vld [vmem:[#allocation10 + $0x10] sm:$0xf0]  ;;  %v5431_v26 = vld [vmem:[#allocation10 + $0x8] sm:$0xf] }
 0x3a9   :  { %v5440_v61 = vor.u32 %v6296_v6, %v5439_v31 }
 0x3aa   :  { %v5418_v46 = vmul.f32 -1.442695, %v2016_v29  ;;  %v5419_v16 = vmul.f32 -1.442695, %v2017_v11  ;;  %2329 = vmatpush.bf16.msra.mxu3 %v5468_v33  ;;  %v5428_v29 = vor.u32 %v6290_v28, %v5425_v3  ;;  %v5432_v11 = vor.u32 %v6293_v17, %v5431_v26 }
 0x3ab   :  { %2291 = vmatpush.bf16.msra.mxu0 %v5440_v61 }
 0x3ac   :  { %6525 = vpow2.f32 %v5418_v46  ;;  %2305 = vmatpush.bf16.msra.mxu1 %v5428_v29  ;;  %2318 = vmatpush.bf16.msra.mxu2 %v5432_v11 }
 0x3ad   :  { %6527 = vpow2.f32 %v5419_v16 }
 0x3ae   :  { %v1999_v7 = vpop.f32.mrf.mxu2  ;;  %v2012_v15 = vpop.f32.mrf.mxu3  ;;  %2330 = vmatpush.bf16.msra.mxu3 %v5452_v9 }
 0x3af   :  { %v2019_v0 = vadd.f32 %v2012_v15, %v6985_v38  ;;  %v1975_v1 = vpop.f32.mrf.mxu0  ;;  %v1988_v2 = vpop.f32.mrf.mxu1  ;;  %2292 = vmatpush.bf16.msra.mxu0 %v5424_v58  ;;  %v2018_v56 = vadd.f32 %v1999_v7, %v6980_v35 }
 0x3b1   :  { %v5420_v25 = vmul.f32 -1.442695, %v2019_v0 }
 0x3b2   :  { %v6526_v47 = vpop.eup %6525  ;;  %2331 = vmatpush.bf16.msra.mxu3 %v5436_v27 }
 0x3b3   :  { %v6528_v30 = vpop.eup %6527  ;;  %v2023_v42 = vadd.f32 1.0, %v6526_v47  ;;  %6529 = vpow2.f32 %v5420_v25 }
 0x3b4   :  { %v2042_v38 = vadd.f32 1.0, %v6528_v30 }
 0x3b5   :  { %6531 = vrcp.f32 %v2023_v42  ;;  %v2035_v5 = vand.u32 2147483648, %v2023_v42  ;;  %v2033_v49 = vand.u32 2147483647, %v2023_v42  ;;  %vm2029_vm2 = vweird.f32 %v2023_v42 }
 0x3b6   :  { %6533 = vrcp.f32 %v2042_v38  ;;  %v2001_v46 = vpop.f32.mrf.mxu2  ;;  %v2014_v16 = vpop.f32.mrf.mxu3  ;;  %v2054_v63 = vand.u32 2147483648, %v2042_v38  ;;  %v2052_v8 = vand.u32 2147483647, %v2042_v38  ;;  %vm2048_vm3 = vweird.f32 %v2042_v38 }
 0x3b7   :  { %v2036_v35 = vor.u32 1.1754944e-38, %v2035_v5  ;;  %vm2034_vm6 = vcmp.eq.f32.partialorder %v2033_v49, 8.507059e+37  ;;  %v6352_v46 = vld [vmem:[#allocation10 + $0xec] sm:$0xf0]  ;;  %v6350_v16 = vld [vmem:[#allocation10 + $0xe4] sm:$0xf] }
 0x3b8   :  { %v2055_v45 = vor.u32 1.1754944e-38, %v2054_v63  ;;  %vm2053_vm7 = vcmp.eq.f32.partialorder %v2052_v8, 8.507059e+37  ;;  %v5650_v5 = vld [vmem:[#allocation10 + $0xc0] sm:$0xf]  ;;  %v6348_v63 = vld [vmem:[#allocation10 + $0xcc] sm:$0xf0] }
 0x3b9   :  { %v6530_v36 = vpop.eup %6529  ;;  %v5651_v49 = vor.u32 %v6348_v63, %v5650_v5  ;;  %v5658_v8 = vld [vmem:[#allocation10 + $0xc8] sm:$0xf]  ;;  %v6337_v63 = vld [vmem:[#allocation10 + $0x74] sm:$0xf0] }
 0x3ba   :  { %v2062_v55 = vadd.f32 1.0, %v6530_v36  ;;  %v5610_v5 = vld [vmem:[#allocation10 + $0x68] sm:$0xf] }
 0x3bb   :  { %v6532_v13 = vpop.eup %6531 }
 0x3bc   :  { %v6534_v31 = vpop.eup %6533  ;;  %v2025_v6 = vmul.f32 %v6532_v13, %v2023_v42  ;;  %6535 = vrcp.f32 %v2062_v55  ;;  %vm2030_vm0 = vweird.f32 %v6532_v13  ;;  %v2074_v19 = vand.u32 2147483648, %v2062_v55 }
 0x3bd   :  { %v2044_v33 = vmul.f32 %v6534_v31, %v2042_v38  ;;  %6537 = vtanh.f32 %v2018_v56  ;;  %vm2049_vm1 = vweird.f32 %v6534_v31  ;;  %vm2031_vm4 = vmor %vm2029_vm2, %vm2030_vm0  ;;  %vm2068_vm9 = vweird.f32 %v2062_v55  ;;  %v5666_v38 = vld [vmem:[#allocation10 + $0xe0] sm:$0xf]  ;;  %v6353_v56 = vld [vmem:[#allocation10 + $0xf4] sm:$0xf0] }
 0x3be   :  { %v2026_v61 = vsub.f32 1.0, %v2025_v6  ;;  %vm2050_vm5 = vmor %vm2048_vm3, %vm2049_vm1  ;;  %v2072_v18 = vand.u32 2147483647, %v2062_v55  ;;  %v2075_v47 = vor.u32 1.1754944e-38, %v2074_v19  ;;  %v5667_v36 = vor.u32 %v6352_v46, %v5666_v38  ;;  %v5644_v19 = vld [vmem:[#allocation10 + $0xb8] sm:$0xf0] }
 0x3bf   :  { %v2045_v62 = vsub.f32 1.0, %v2044_v33  ;;  %v6351_v33 = vld [vmem:[#allocation10 + $0xec] sm:$0xf]  ;;  %v5626_v38 = vld [vmem:[#allocation10 + $0x88] sm:$0xf] }
 0x3c0   :  { %v2027_v23 = vmul.f32 %v6532_v13, %v2026_v61  ;;  %vm2073_vm11 = vcmp.eq.f32.partialorder %v2072_v18, 8.507059e+37  ;;  %v5676_v61 = vld [vmem:[#allocation10 + $0xf8] sm:$0xf0]  ;;  %2606 = vmatpush.bf16.msrb.mxu0 %v5667_v36  ;;  %v6341_v46 = vld [vmem:[#allocation10 + $0x94] sm:$0xf0] }
 0x3c1   :  { %v2046_v32 = vmul.f32 %v6534_v31, %v2045_v62  ;;  %v5679_v62 = vor.u32 %v6351_v33, %v5676_v61  ;;  %v5627_v36 = vor.u32 %v6341_v46, %v5626_v38  ;;  %v6334_v33 = vld [vmem:[#allocation10 + $0x64] sm:$0xf]  ;;  %v5572_v38 = vld [vmem:[#allocation10 + $0x30] sm:$0xf0]  ;;  %v5578_v46 = vld [vmem:[#allocation10 + $0x28] sm:$0xf] }
 0x3c2   :  { %v6536_v15 = vpop.eup %6535  ;;  %v2028_v60 = vadd.f32 %v6532_v13, %v2027_v23  ;;  %v6346_v23 = vld [vmem:[#allocation10 + $0xc4] sm:$0xf] }
 0x3c3   :  { %v2047_v7 = vadd.f32 %v6534_v31, %v2046_v32  ;;  %v2064_v9 = vmul.f32 %v6536_v15, %v2062_v55  ;;  %v6538_v28 = vpop.eup %6537  ;;  %vm2069_vm8 = vweird.f32 %v6536_v15  ;;  %v5668_v55 = vld [vmem:[#allocation10 + $0xf0] sm:$0xf0]  ;;  %2645 = vmatpush.bf16.msrb.mxu3 %v5679_v62 }
 0x3c4   :  { %v2032_v10 = vsel %vm2031_vm4, %v6532_v13, %v2028_v60  ;;  %vm2070_vm10 = vmor %vm2068_vm9, %vm2069_vm8  ;;  %v5674_v13 = vld [vmem:[#allocation10 + $0xe8] sm:$0xf]  ;;  %v5652_v32 = vld [vmem:[#allocation10 + $0xd0] sm:$0xf0]  ;;  %2607 = vmatpush.bf16.msrb.mxu0 %v5651_v49  ;;  %v385_v49 = vadd.f32 %v6987_v39, %v6945_v14 }
 0x3c5   :  { %v2037_v0 = vsel %vm2034_vm6, %v2036_v35, %v2032_v10  ;;  %v2051_v1 = vsel %vm2050_vm5, %v6534_v31, %v2047_v7  ;;  %v2065_v2 = vsub.f32 1.0, %v2064_v9  ;;  %v5671_v31 = vor.u32 %v6350_v16, %v5668_v55  ;;  %v6347_v7 = vld [vmem:[#allocation10 + $0xcc] sm:$0xf]  ;;  %v5660_v9 = vld [vmem:[#allocation10 + $0xd8] sm:$0xf0] }
 0x3c6   :  { %v2056_v58 = vsel %vm2053_vm7, %v2055_v45, %v2051_v1  ;;  %v2079_v3 = vmul.f32 %v6538_v28, %v2037_v0  ;;  %v5675_v6 = vor.u32 %v6353_v56, %v5674_v13  ;;  %v5655_v60 = vor.u32 %v6346_v23, %v5652_v32  ;;  %v5634_v10 = vld [vmem:[#allocation10 + $0xa0] sm:$0xf]  ;;  %v6344_v28 = vld [vmem:[#allocation10 + $0xac] sm:$0xf0]  ;;  %v6342_v0 = vld [vmem:[#allocation10 + $0xa4] sm:$0xf] }
 0x3c7   :  { %v2078_v26 = vmul.f32 %v2056_v58, %v7065_v34  ;;  %v2066_v17 = vmul.f32 %v6536_v15, %v2065_v2  ;;  %2619 = vmatpush.bf16.msrb.mxu1 %v5671_v31  ;;  %v5663_v45 = vor.u32 %v6347_v7, %v5660_v9  ;;  %v5635_v1 = vor.u32 %v6344_v28, %v5634_v10  ;;  %v5636_v2 = vld [vmem:[#allocation10 + $0xb0] sm:$0xf0]  ;;  %v5642_v58 = vld [vmem:[#allocation10 + $0xa8] sm:$0xf]  ;;  %v6339_v55 = vld [vmem:[#allocation10 + $0x8c] sm:$0xf] }
 0x3c8   :  { %2632 = vmatpush.bf16.msrb.mxu2 %v5675_v6  ;;  %v5628_v13 = vld [vmem:[#allocation10 + $0x98] sm:$0xf0]  ;;  %v5602_v31 = vld [vmem:[#allocation10 + $0x60] sm:$0xf]  ;;  %v6336_v6 = vld [vmem:[#allocation10 + $0x6c] sm:$0xf0]  ;;  %v356_v23 = vadd.f32 %v6982_v37, %v6941_v12 }
 0x3c9   :  { %v7077_v29 = vadd.f32 %v2079_v3, %v2078_v26  ;;  %v2067_v11 = vadd.f32 %v6536_v15, %v2066_v17  ;;  %2646 = vmatpush.bf16.msrb.mxu3 %v5663_v45  ;;  %v6345_v3 = vld [vmem:[#allocation10 + $0xb4] sm:$0xf0]  ;;  %v5639_v26 = vor.u32 %v6342_v0, %v5636_v2  ;;  %2608 = vmatpush.bf16.msrb.mxu0 %v5635_v1  ;;  %v5604_v62 = vld [vmem:[#allocation10 + $0x70] sm:$0xf0]  ;;  %v5586_v28 = vld [vmem:[#allocation10 + $0x40] sm:$0xf] }
 0x3ca   :  { %v5643_v17 = vor.u32 %v6345_v3, %v5642_v58  ;;  %v5631_v56 = vor.u32 %v6339_v55, %v5628_v13  ;;  %v5603_v61 = vor.u32 %v6336_v6, %v5602_v31  ;;  %v5607_v32 = vor.u32 %v6334_v33, %v5604_v62  ;;  %v6332_v0 = vld [vmem:[#allocation10 + $0x4c] sm:$0xf0]  ;;  %v6330_v1 = vld [vmem:[#allocation10 + $0x44] sm:$0xf]  ;;  %v5588_v2 = vld [vmem:[#allocation10 + $0x50] sm:$0xf0] }
 0x3cb   :  { %6539 = vtanh.f32 %v7077_v29  ;;  %v2071_v25 = vsel %vm2070_vm10, %v6536_v15, %v2067_v11  ;;  %v6349_v15 = vld [vmem:[#allocation10 + $0xd4] sm:$0xf0]  ;;  %2620 = vmatpush.bf16.msrb.mxu1 %v5655_v60  ;;  %v6343_v11 = vld [vmem:[#allocation10 + $0xac] sm:$0xf]  ;;  %v5612_v60 = vld [vmem:[#allocation10 + $0x78] sm:$0xf0]  ;;  %v5587_v37 = vor.u32 %v6332_v0, %v5586_v28 }
 0x3cc   :  { %v2076_v30 = vsel %vm2073_vm11, %v2075_v47, %v2071_v25  ;;  %v5659_v35 = vor.u32 %v6349_v15, %v5658_v8  ;;  %v5647_v18 = vor.u32 %v6343_v11, %v5644_v19  ;;  %v5618_v25 = vld [vmem:[#allocation10 + $0x80] sm:$0xf]  ;;  %v6340_v47 = vld [vmem:[#allocation10 + $0x8c] sm:$0xf0]  ;;  %v5611_v8 = vor.u32 %v6337_v63, %v5610_v5  ;;  %v6335_v15 = vld [vmem:[#allocation10 + $0x6c] sm:$0xf] }
 0x3cd   :  { %v5615_v9 = vor.u32 %v6335_v15, %v5612_v60  ;;  %v5594_v58 = vld [vmem:[#allocation10 + $0x48] sm:$0xf]  ;;  %v6333_v39 = vld [vmem:[#allocation10 + $0x54] sm:$0xf0]  ;;  %v6331_v19 = vld [vmem:[#allocation10 + $0x4c] sm:$0xf] }
 0x3ce   :  { %2633 = vmatpush.bf16.msrb.mxu2 %v5659_v35  ;;  %2647 = vmatpush.bf16.msrb.mxu3 %v5647_v18  ;;  %v5595_v11 = vor.u32 %v6333_v39, %v5594_v58  ;;  %v5596_v18 = vld [vmem:[#allocation10 + $0x58] sm:$0xf0]  ;;  %v6329_v55 = vld [vmem:[#allocation10 + $0x34] sm:$0xf0]  ;;  %v6327_v13 = vld [vmem:[#allocation10 + $0x2c] sm:$0xf] }
 0x3cf   :  { %2621 = vmatpush.bf16.msrb.mxu1 %v5639_v26  ;;  %v5579_v33 = vor.u32 %v6329_v55, %v5578_v46  ;;  %v5554_v62 = vld [vmem:[#allocation10] sm:$0xf]  ;;  %v6324_v5 = vld [vmem:[#allocation10 + $0xc] sm:$0xf0]  ;;  %v6322_v63 = vld [vmem:[#allocation10 + $0x4] sm:$0xf] }
 0x3d0   :  { %v5556_v15 = vld [vmem:[#allocation10 + $0x10] sm:$0xf0]  ;;  %v6325_v60 = vld [vmem:[#allocation10 + $0x14] sm:$0xf0] }
 0x3d1   :  { %v6540_v27 = vpop.eup %6539 }
 0x3d2   :  { %v7080_v42 = vmul.f32 %v6540_v27, %v2076_v30  ;;  %2634 = vmatpush.bf16.msrb.mxu2 %v5643_v17  ;;  %v6338_v27 = vld [vmem:[#allocation10 + $0x84] sm:$0xf]  ;;  %v5619_v30 = vor.u32 %v6340_v47, %v5618_v25  ;;  %2648 = vmatpush.bf16.msrb.mxu3 %v5631_v56  ;;  %v5591_v17 = vor.u32 %v6330_v1, %v5588_v2  ;;  %v5570_v25 = vld [vmem:[#allocation10 + $0x20] sm:$0xf]  ;;  %v6328_v47 = vld [vmem:[#allocation10 + $0x2c] sm:$0xf0] }
 0x3d3   :  { %v5580_v56 = vld [vmem:[#allocation10 + $0x38] sm:$0xf0] }
 0x3d4   :  { %v2092_v34 = vpack.c.bf16 %v7080_v42, %v7080_v42  ;;  %2609 = vmatpush.bf16.msrb.mxu0 %v5619_v30  ;;  %v5571_v30 = vor.u32 %v6328_v47, %v5570_v25 }
 0x3d6   :  { %2293 = vmatmul.bf16.vlgmr.msra.gmra.mxu0 %v2092_v34  ;;  %2306 = vmatmul.bf16.vlgmr.msra.gmra.mxu1 %v2092_v34 }
 0x3d7   :  { %2319 = vmatmul.bf16.vlgmr.msra.gmra.mxu2 %v2092_v34  ;;  %2332 = vmatmul.bf16.vlgmr.msra.gmra.mxu3 %v2092_v34  ;;  %v5620_v34 = vld [vmem:[#allocation10 + $0x90] sm:$0xf0] }
 0x3d8   :  { %v5623_v16 = vor.u32 %v6338_v27, %v5620_v34  ;;  %2635 = vmatpush.bf16.msrb.mxu2 %v5627_v36  ;;  %2610 = vmatpush.bf16.msrb.mxu0 %v5603_v61  ;;  %v5599_v27 = vor.u32 %v6331_v19, %v5596_v18  ;;  %v6326_v34 = vld [vmem:[#allocation10 + $0x24] sm:$0xf]  ;;  %v5583_v61 = vor.u32 %v6327_v13, %v5580_v56 }
 0x3d9   :  { %2649 = vmatpush.bf16.msrb.mxu3 %v5615_v9  ;;  %v5575_v36 = vor.u32 %v6326_v34, %v5572_v38  ;;  %v6323_v9 = vld [vmem:[#allocation10 + $0xc] sm:$0xf] }
 0x3da   :  { %2622 = vmatpush.bf16.msrb.mxu1 %v5623_v16  ;;  %v443_v16 = vadd.f32 %v6991_v48, %v6957_v21  ;;  %v5562_v48 = vld [vmem:[#allocation10 + $0x8] sm:$0xf] }
 0x3dc   :  { %2636 = vmatpush.bf16.msrb.mxu2 %v5611_v8  ;;  %2611 = vmatpush.bf16.msrb.mxu0 %v5587_v37  ;;  %v5555_v8 = vor.u32 %v6324_v5, %v5554_v62 }
 0x3dd   :  { %2650 = vmatpush.bf16.msrb.mxu3 %v5599_v27 }
 0x3de   :  { %2623 = vmatpush.bf16.msrb.mxu1 %v5607_v32 }
 0x3e0   :  { %2637 = vmatpush.bf16.msrb.mxu2 %v5595_v11  ;;  %2612 = vmatpush.bf16.msrb.mxu0 %v5571_v30 }
 0x3e1   :  { %2651 = vmatpush.bf16.msrb.mxu3 %v5583_v61 }
 0x3e2   :  { %2624 = vmatpush.bf16.msrb.mxu1 %v5591_v17 }
 0x3e4   :  { %2638 = vmatpush.bf16.msrb.mxu2 %v5579_v33  ;;  %2613 = vmatpush.bf16.msrb.mxu0 %v5555_v8 }
 0x3e6   :  { %2625 = vmatpush.bf16.msrb.mxu1 %v5575_v36 }
 0x453   :  { %v2294_v35 = vpop.f32.mrf.mxu0  ;;  %v2307_v7 = vpop.f32.mrf.mxu1 }
 0x454   :  { %v2337_v45 = vadd.f32 %v2294_v35, %v356_v23  ;;  %v2338_v10 = vadd.f32 %v2307_v7, %v385_v49  ;;  %v5559_v35 = vor.u32 %v6322_v63, %v5556_v15  ;;  %v5563_v7 = vor.u32 %v6325_v60, %v5562_v48 }
 0x456   :  { %v5549_v3 = vmul.f32 -1.442695, %v2337_v45  ;;  %v5550_v26 = vmul.f32 -1.442695, %v2338_v10  ;;  %v5564_v45 = vld [vmem:[#allocation10 + $0x18] sm:$0xf0]  ;;  %2626 = vmatpush.bf16.msrb.mxu1 %v5559_v35  ;;  %2639 = vmatpush.bf16.msrb.mxu2 %v5563_v7 }
 0x457   :  { %v5567_v0 = vor.u32 %v6323_v9, %v5564_v45 }
 0x458   :  { %6541 = vpow2.f32 %v5549_v3 }
 0x459   :  { %6543 = vpow2.f32 %v5550_v26  ;;  %2652 = vmatpush.bf16.msrb.mxu3 %v5567_v0  ;;  %v414_v26 = vadd.f32 %v6989_v43, %v6955_v20 }
 0x45a   :  { %v2320_v31 = vpop.f32.mrf.mxu2  ;;  %v2333_v6 = vpop.f32.mrf.mxu3 }
 0x45b   :  { %v2340_v23 = vadd.f32 %v2333_v6, %v443_v16  ;;  %v2296_v49 = vpop.f32.mrf.mxu0  ;;  %v2309_v32 = vpop.f32.mrf.mxu1  ;;  %v2339_v19 = vadd.f32 %v2320_v31, %v414_v26  ;;  %v6385_v26 = vld [vmem:[#allocation10 + $0xf4] sm:$0xf0] }
 0x45d   :  { %v5551_v10 = vmul.f32 -1.442695, %v2340_v23 }
 0x45e   :  { %v6542_v28 = vpop.eup %6541 }
 0x45f   :  { %v6544_v1 = vpop.eup %6543  ;;  %v2344_v37 = vadd.f32 1.0, %v6542_v28  ;;  %6545 = vpow2.f32 %v5551_v10 }
 0x460   :  { %v2363_v2 = vadd.f32 1.0, %v6544_v1  ;;  %v5797_v1 = vld [vmem:[#allocation10 + $0xe0] sm:$0xf] }
 0x461   :  { %6547 = vrcp.f32 %v2344_v37  ;;  %v2356_v34 = vand.u32 2147483648, %v2344_v37  ;;  %v2354_v16 = vand.u32 2147483647, %v2344_v37  ;;  %vm2350_vm14 = vweird.f32 %v2344_v37 }
 0x462   :  { %6549 = vrcp.f32 %v2363_v2  ;;  %v2322_v58 = vpop.f32.mrf.mxu2  ;;  %v2335_v39 = vpop.f32.mrf.mxu3  ;;  %v2375_v38 = vand.u32 2147483648, %v2363_v2  ;;  %v2373_v55 = vand.u32 2147483647, %v2363_v2  ;;  %vm2369_vm15 = vweird.f32 %v2363_v2 }
 0x463   :  { %v2357_v56 = vor.u32 1.1754944e-38, %v2356_v34  ;;  %vm2355_vm2 = vcmp.eq.f32.partialorder %v2354_v16, 8.507059e+37  ;;  %v5799_v39 = vld [vmem:[#allocation10 + $0xf0] sm:$0xf0]  ;;  %v6381_v16 = vld [vmem:[#allocation10 + $0xd4] sm:$0xf0] }
 0x464   :  { %v2376_v33 = vor.u32 1.1754944e-38, %v2375_v38  ;;  %vm2374_vm3 = vcmp.eq.f32.partialorder %v2373_v55, 8.507059e+37  ;;  %v5783_v38 = vld [vmem:[#allocation10 + $0xd0] sm:$0xf0] }
 0x465   :  { %v6546_v3 = vpop.eup %6545 }
 0x466   :  { %v2383_v17 = vadd.f32 1.0, %v6546_v3  ;;  %v5805_v3 = vld [vmem:[#allocation10 + $0xe8] sm:$0xf] }
 0x467   :  { %v6548_v11 = vpop.eup %6547 }
 0x468   :  { %v6550_v18 = vpop.eup %6549  ;;  %v2346_v25 = vmul.f32 %v6548_v11, %v2344_v37  ;;  %6551 = vrcp.f32 %v2383_v17  ;;  %vm2351_vm12 = vweird.f32 %v6548_v11  ;;  %v2395_v35 = vand.u32 2147483648, %v2383_v17  ;;  %v6384_v37 = vld [vmem:[#allocation10 + $0xec] sm:$0xf0] }
 0x469   :  { %v2365_v47 = vmul.f32 %v6550_v18, %v2363_v2  ;;  %6553 = vtanh.f32 %v2339_v19  ;;  %vm2370_vm13 = vweird.f32 %v6550_v18  ;;  %vm2352_vm0 = vmor %vm2350_vm14, %vm2351_vm12  ;;  %vm2389_vm5 = vweird.f32 %v2383_v17  ;;  %v6382_v2 = vld [vmem:[#allocation10 + $0xe4] sm:$0xf]  ;;  %v6383_v19 = vld [vmem:[#allocation10 + $0xec] sm:$0xf] }
 0x46a   :  { %v2347_v27 = vsub.f32 1.0, %v2346_v25  ;;  %vm2371_vm1 = vmor %vm2369_vm15, %vm2370_vm13  ;;  %v2393_v7 = vand.u32 2147483647, %v2383_v17  ;;  %v2396_v45 = vor.u32 1.1754944e-38, %v2395_v35  ;;  %v5798_v58 = vor.u32 %v6384_v37, %v5797_v1  ;;  %v6372_v35 = vld [vmem:[#allocation10 + $0x8c] sm:$0xf0] }
 0x46b   :  { %v2366_v30 = vsub.f32 1.0, %v2365_v47  ;;  %v5781_v47 = vld [vmem:[#allocation10 + $0xc0] sm:$0xf]  ;;  %v6371_v37 = vld [vmem:[#allocation10 + $0x8c] sm:$0xf] }
 0x46c   :  { %v2348_v46 = vmul.f32 %v6548_v11, %v2347_v27  ;;  %vm2394_vm7 = vcmp.eq.f32.partialorder %v2393_v7, 8.507059e+37  ;;  %2927 = vmatpush.bf16.msra.mxu0 %v5798_v58  ;;  %v6380_v27 = vld [vmem:[#allocation10 + $0xcc] sm:$0xf0]  ;;  %v6370_v7 = vld [vmem:[#allocation10 + $0x84] sm:$0xf] }
 0x46d   :  { %v2367_v36 = vmul.f32 %v6550_v18, %v2366_v30  ;;  %v6378_v30 = vld [vmem:[#allocation10 + $0xc4] sm:$0xf]  ;;  %v5782_v34 = vor.u32 %v6380_v27, %v5781_v47  ;;  %v6367_v27 = vld [vmem:[#allocation10 + $0x6c] sm:$0xf] }
 0x46e   :  { %v6552_v13 = vpop.eup %6551  ;;  %v2349_v43 = vadd.f32 %v6548_v11, %v2348_v46  ;;  %v5789_v46 = vld [vmem:[#allocation10 + $0xc8] sm:$0xf] }
 0x46f   :  { %v2368_v31 = vadd.f32 %v6550_v18, %v2367_v36  ;;  %v2385_v6 = vmul.f32 %v6552_v13, %v2383_v17  ;;  %v6554_v62 = vpop.eup %6553  ;;  %vm2390_vm4 = vweird.f32 %v6552_v13  ;;  %v5802_v17 = vor.u32 %v6382_v2, %v5799_v39  ;;  %v5759_v2 = vld [vmem:[#allocation10 + $0x98] sm:$0xf0]  ;;  %v5733_v39 = vld [vmem:[#allocation10 + $0x60] sm:$0xf] }
 0x470   :  { %v2353_v61 = vsel %vm2352_vm0, %v6548_v11, %v2349_v43  ;;  %vm2391_vm6 = vmor %vm2389_vm5, %vm2390_vm4  ;;  %v5806_v11 = vor.u32 %v6385_v26, %v5805_v3  ;;  %v5786_v36 = vor.u32 %v6378_v30, %v5783_v38  ;;  %v5790_v55 = vor.u32 %v6381_v16, %v5789_v46  ;;  %v5791_v43 = vld [vmem:[#allocation10 + $0xd8] sm:$0xf0]  ;;  %2928 = vmatpush.bf16.msra.mxu0 %v5782_v34  ;;  %v6368_v3 = vld [vmem:[#allocation10 + $0x6c] sm:$0xf0] }
 0x471   :  { %v2358_v5 = vsel %vm2355_vm2, %v2357_v56, %v2353_v61  ;;  %v2372_v63 = vsel %vm2371_vm1, %v6550_v18, %v2368_v31  ;;  %v2386_v23 = vsub.f32 1.0, %v2385_v6  ;;  %v5807_v18 = vld [vmem:[#allocation10 + $0xf8] sm:$0xf0]  ;;  %2940 = vmatpush.bf16.msra.mxu1 %v5802_v17  ;;  %v5765_v31 = vld [vmem:[#allocation10 + $0xa0] sm:$0xf]  ;;  %v5762_v58 = vor.u32 %v6371_v37, %v5759_v2 }
 0x472   :  { %v2377_v49 = vsel %vm2374_vm3, %v2376_v33, %v2372_v63  ;;  %v2400_v32 = vmul.f32 %v6554_v62, %v2358_v5  ;;  %v5810_v25 = vor.u32 %v6383_v19, %v5807_v18  ;;  %2953 = vmatpush.bf16.msra.mxu2 %v5806_v11  ;;  %v6376_v6 = vld [vmem:[#allocation10 + $0xac] sm:$0xf0]  ;;  %v6374_v33 = vld [vmem:[#allocation10 + $0xa4] sm:$0xf]  ;;  %v5767_v62 = vld [vmem:[#allocation10 + $0xb0] sm:$0xf0]  ;;  %v5734_v17 = vor.u32 %v6368_v3, %v5733_v39 }
 0x473   :  { %v2399_v8 = vmul.f32 %v2377_v49, %v7077_v29  ;;  %v2387_v15 = vmul.f32 %v6552_v13, %v2386_v23  ;;  %v5766_v61 = vor.u32 %v6376_v6, %v5765_v31  ;;  %v5773_v5 = vld [vmem:[#allocation10 + $0xa8] sm:$0xf]  ;;  %v6377_v63 = vld [vmem:[#allocation10 + $0xb4] sm:$0xf0]  ;;  %v5770_v23 = vor.u32 %v6374_v33, %v5767_v62  ;;  %v6366_v26 = vld [vmem:[#allocation10 + $0x64] sm:$0xf] }
 0x474   :  { %2966 = vmatpush.bf16.msra.mxu3 %v5810_v25  ;;  %v5774_v49 = vor.u32 %v6377_v63, %v5773_v5  ;;  %v5735_v11 = vld [vmem:[#allocation10 + $0x70] sm:$0xf0]  ;;  %v5741_v19 = vld [vmem:[#allocation10 + $0x68] sm:$0xf]  ;;  %v6369_v18 = vld [vmem:[#allocation10 + $0x74] sm:$0xf0] }
 0x475   :  { %v7093_v48 = vadd.f32 %v2400_v32, %v2399_v8  ;;  %v2388_v60 = vadd.f32 %v6552_v13, %v2387_v15  ;;  %2941 = vmatpush.bf16.msra.mxu1 %v5786_v36  ;;  %v6375_v32 = vld [vmem:[#allocation10 + $0xac] sm:$0xf]  ;;  %v5775_v8 = vld [vmem:[#allocation10 + $0xb8] sm:$0xf0]  ;;  %2929 = vmatpush.bf16.msra.mxu0 %v5766_v61  ;;  %v5738_v25 = vor.u32 %v6366_v26, %v5735_v11  ;;  %v5717_v38 = vld [vmem:[#allocation10 + $0x40] sm:$0xf] }
 0x476   :  { %2954 = vmatpush.bf16.msra.mxu2 %v5790_v55  ;;  %v5778_v15 = vor.u32 %v6375_v32, %v5775_v8  ;;  %v5742_v47 = vor.u32 %v6369_v18, %v5741_v19  ;;  %v5743_v30 = vld [vmem:[#allocation10 + $0x78] sm:$0xf0]  ;;  %v6364_v46 = vld [vmem:[#allocation10 + $0x4c] sm:$0xf0]  ;;  %v6362_v16 = vld [vmem:[#allocation10 + $0x44] sm:$0xf] }
 0x477   :  { %6555 = vtanh.f32 %v7093_v48  ;;  %v2392_v9 = vsel %vm2391_vm6, %v6552_v13, %v2388_v60  ;;  %v6379_v13 = vld [vmem:[#allocation10 + $0xcc] sm:$0xf]  ;;  %v5749_v60 = vld [vmem:[#allocation10 + $0x80] sm:$0xf]  ;;  %v5746_v34 = vor.u32 %v6367_v27, %v5743_v30  ;;  %v5718_v36 = vor.u32 %v6364_v46, %v5717_v38  ;;  %v5719_v55 = vld [vmem:[#allocation10 + $0x50] sm:$0xf0] }
 0x478   :  { %v2397_v28 = vsel %vm2394_vm7, %v2396_v45, %v2392_v9  ;;  %v5794_v56 = vor.u32 %v6379_v13, %v5791_v43  ;;  %v5750_v9 = vor.u32 %v6372_v35, %v5749_v60  ;;  %v5751_v45 = vld [vmem:[#allocation10 + $0x90] sm:$0xf0]  ;;  %v5725_v13 = vld [vmem:[#allocation10 + $0x48] sm:$0xf]  ;;  %v6365_v43 = vld [vmem:[#allocation10 + $0x54] sm:$0xf0] }
 0x479   :  { %2942 = vmatpush.bf16.msra.mxu1 %v5770_v23  ;;  %v5726_v31 = vor.u32 %v6365_v43, %v5725_v13  ;;  %v6363_v6 = vld [vmem:[#allocation10 + $0x4c] sm:$0xf]  ;;  %v5727_v33 = vld [vmem:[#allocation10 + $0x58] sm:$0xf0]  ;;  %v5701_v62 = vld [vmem:[#allocation10 + $0x20] sm:$0xf] }
 0x47a   :  { %2967 = vmatpush.bf16.msra.mxu3 %v5794_v56  ;;  %2955 = vmatpush.bf16.msra.mxu2 %v5774_v49  ;;  %v5722_v56 = vor.u32 %v6362_v16, %v5719_v55  ;;  %v5730_v61 = vor.u32 %v6363_v6, %v5727_v33  ;;  %v6360_v5 = vld [vmem:[#allocation10 + $0x2c] sm:$0xf0]  ;;  %v6358_v63 = vld [vmem:[#allocation10 + $0x24] sm:$0xf]  ;;  %v5703_v49 = vld [vmem:[#allocation10 + $0x30] sm:$0xf0] }
 0x47b   :  { %2930 = vmatpush.bf16.msra.mxu0 %v5750_v9  ;;  %v5702_v23 = vor.u32 %v6360_v5, %v5701_v62  ;;  %v5709_v32 = vld [vmem:[#allocation10 + $0x28] sm:$0xf]  ;;  %v6361_v8 = vld [vmem:[#allocation10 + $0x34] sm:$0xf0]  ;;  %v6359_v35 = vld [vmem:[#allocation10 + $0x2c] sm:$0xf] }
 0x47c   :  { %v5710_v60 = vor.u32 %v6361_v8, %v5709_v32  ;;  %v5693_v37 = vld [vmem:[#allocation10 + $0x8] sm:$0xf]  ;;  %v6357_v2 = vld [vmem:[#allocation10 + $0x14] sm:$0xf0]  ;;  %v6355_v3 = vld [vmem:[#allocation10 + $0xc] sm:$0xf] }
 0x47d   :  { %v6556_v10 = vpop.eup %6555  ;;  %v5694_v39 = vor.u32 %v6357_v2, %v5693_v37  ;;  %v5695_v26 = vld [vmem:[#allocation10 + $0x18] sm:$0xf0]  ;;  %v6416_v19 = vld [vmem:[#allocation9 + $0xec] sm:$0xf0]  ;;  %v6414_v18 = vld [vmem:[#allocation9 + $0xe4] sm:$0xf] }
 0x47e   :  { %v7096_v0 = vmul.f32 %v6556_v10, %v2397_v28  ;;  %2968 = vmatpush.bf16.msra.mxu3 %v5778_v15  ;;  %v5757_v10 = vld [vmem:[#allocation10 + $0x88] sm:$0xf]  ;;  %v6373_v28 = vld [vmem:[#allocation10 + $0x94] sm:$0xf0]  ;;  %v5706_v15 = vor.u32 %v6358_v63, %v5703_v49  ;;  %v5698_v11 = vor.u32 %v6355_v3, %v5695_v26  ;;  %v6415_v16 = vld [vmem:[#allocation9 + $0xec] sm:$0xf] }
 0x47f   :  { %v5758_v1 = vor.u32 %v6373_v28, %v5757_v10  ;;  %2931 = vmatpush.bf16.msra.mxu0 %v5734_v17  ;;  %v6356_v10 = vld [vmem:[#allocation10 + $0xc] sm:$0xf0]  ;;  %v6354_v28 = vld [vmem:[#allocation10 + $0x4] sm:$0xf]  ;;  %v5928_v17 = vld [vmem:[#allocation9 + $0xe0] sm:$0xf] }
 0x480   :  { %v2413_v29 = vpack.c.bf16 %v7096_v0, %v7096_v0  ;;  %v5929_v30 = vor.u32 %v6416_v19, %v5928_v17  ;;  %v5936_v38 = vld [vmem:[#allocation9 + $0xe8] sm:$0xf]  ;;  %v6417_v46 = vld [vmem:[#allocation9 + $0xf4] sm:$0xf0]  ;;  %v5938_v43 = vld [vmem:[#allocation9 + $0xf8] sm:$0xf0] }
 0x481   :  { %2956 = vmatpush.bf16.msra.mxu2 %v5758_v1  ;;  %v5687_v1 = vld [vmem:[#allocation10 + $0x10] sm:$0xf0]  ;;  %v5937_v13 = vor.u32 %v6417_v46, %v5936_v38  ;;  %v5941_v6 = vor.u32 %v6415_v16, %v5938_v43  ;;  %v5920_v5 = vld [vmem:[#allocation9 + $0xc8] sm:$0xf]  ;;  %v6413_v32 = vld [vmem:[#allocation9 + $0xd4] sm:$0xf0] }
 0x482   :  { %2614 = vmatmul.bf16.vlgmr.msrb.gmra.mxu0 %v2413_v29  ;;  %2627 = vmatmul.bf16.vlgmr.msrb.gmra.mxu1 %v2413_v29  ;;  %v5914_v62 = vld [vmem:[#allocation9 + $0xd0] sm:$0xf0]  ;;  %v5922_v8 = vld [vmem:[#allocation9 + $0xd8] sm:$0xf0]  ;;  %v5880_v3 = vld [vmem:[#allocation9 + $0x80] sm:$0xf] }
 0x483   :  { %2640 = vmatmul.bf16.vlgmr.msrb.gmra.mxu2 %v2413_v29  ;;  %2653 = vmatmul.bf16.vlgmr.msrb.gmra.mxu3 %v2413_v29  ;;  %v5754_v29 = vor.u32 %v6370_v7, %v5751_v45  ;;  %v5711_v7 = vld [vmem:[#allocation10 + $0x38] sm:$0xf0]  ;;  %v5685_v45 = vld [vmem:[#allocation10] sm:$0xf]  ;;  %v6404_v26 = vld [vmem:[#allocation9 + $0x8c] sm:$0xf0] }
 0x484   :  { %2969 = vmatpush.bf16.msra.mxu3 %v5762_v58  ;;  %2932 = vmatpush.bf16.msra.mxu0 %v5718_v36  ;;  %v5714_v9 = vor.u32 %v6359_v35, %v5711_v7  ;;  %v5690_v58 = vor.u32 %v6354_v28, %v5687_v1  ;;  %v6408_v35 = vld [vmem:[#allocation9 + $0xac] sm:$0xf0]  ;;  %v6406_v7 = vld [vmem:[#allocation9 + $0xa4] sm:$0xf]  ;;  %v5904_v28 = vld [vmem:[#allocation9 + $0xa8] sm:$0xf]  ;;  %v5881_v16 = vor.u32 %v6404_v26, %v5880_v3 }
 0x485   :  { %2943 = vmatpush.bf16.msra.mxu1 %v5754_v29  ;;  %2957 = vmatpush.bf16.msra.mxu2 %v5742_v47  ;;  %v5686_v29 = vor.u32 %v6356_v10, %v5685_v45  ;;  %v6407_v1 = vld [vmem:[#allocation9 + $0xac] sm:$0xf]  ;;  %v5890_v38 = vld [vmem:[#allocation9 + $0x98] sm:$0xf0]  ;;  %v6397_v3 = vld [vmem:[#allocation9 + $0x54] sm:$0xf0] }
 0x488   :  { %2970 = vmatpush.bf16.msra.mxu3 %v5746_v34  ;;  %2933 = vmatpush.bf16.msra.mxu0 %v5702_v23 }
 0x489   :  { %2944 = vmatpush.bf16.msra.mxu1 %v5738_v25  ;;  %2958 = vmatpush.bf16.msra.mxu2 %v5726_v31  ;;  %v5930_v25 = vld [vmem:[#allocation9 + $0xf0] sm:$0xf0]  ;;  %v6412_v31 = vld [vmem:[#allocation9 + $0xcc] sm:$0xf0] }
 0x48a   :  { %v5933_v34 = vor.u32 %v6414_v18, %v5930_v25  ;;  %v6402_v25 = vld [vmem:[#allocation9 + $0x84] sm:$0xf] }
 0x48c   :  { %2971 = vmatpush.bf16.msra.mxu3 %v5730_v61  ;;  %2934 = vmatpush.bf16.msra.mxu0 %v5686_v29  ;;  %v6410_v61 = vld [vmem:[#allocation9 + $0xc4] sm:$0xf]  ;;  %v6409_v29 = vld [vmem:[#allocation9 + $0xb4] sm:$0xf0] }
 0x48d   :  { %2945 = vmatpush.bf16.msra.mxu1 %v5722_v56  ;;  %2959 = vmatpush.bf16.msra.mxu2 %v5710_v60  ;;  %v5912_v56 = vld [vmem:[#allocation9 + $0xc0] sm:$0xf]  ;;  %v5917_v49 = vor.u32 %v6410_v61, %v5914_v62  ;;  %v6400_v62 = vld [vmem:[#allocation9 + $0x6c] sm:$0xf0] }
 0x48e   :  { %v5913_v33 = vor.u32 %v6412_v31, %v5912_v56 }
 0x490   :  { %2972 = vmatpush.bf16.msra.mxu3 %v5714_v9  ;;  %3263 = vmatpush.bf16.msrb.mxu0 %v5929_v30  ;;  %v5898_v9 = vld [vmem:[#allocation9 + $0xb0] sm:$0xf0]  ;;  %v6405_v30 = vld [vmem:[#allocation9 + $0x94] sm:$0xf0] }
 0x491   :  { %2946 = vmatpush.bf16.msra.mxu1 %v5706_v15  ;;  %2960 = vmatpush.bf16.msra.mxu2 %v5694_v39  ;;  %v5896_v15 = vld [vmem:[#allocation9 + $0xa0] sm:$0xf]  ;;  %v5901_v10 = vor.u32 %v6406_v7, %v5898_v9  ;;  %v5906_v39 = vld [vmem:[#allocation9 + $0xb8] sm:$0xf0] }
 0x492   :  { %v5897_v45 = vor.u32 %v6408_v35, %v5896_v15  ;;  %v5909_v18 = vor.u32 %v6407_v1, %v5906_v39  ;;  %v6399_v35 = vld [vmem:[#allocation9 + $0x6c] sm:$0xf]  ;;  %v5874_v7 = vld [vmem:[#allocation9 + $0x78] sm:$0xf0]  ;;  %v5848_v9 = vld [vmem:[#allocation9 + $0x40] sm:$0xf] }
 0x493   :  { %v5856_v39 = vld [vmem:[#allocation9 + $0x48] sm:$0xf] }
 0x494   :  { %2973 = vmatpush.bf16.msra.mxu3 %v5698_v11  ;;  %3264 = vmatpush.bf16.msrb.mxu0 %v5913_v33 }
 0x495   :  { %2947 = vmatpush.bf16.msra.mxu1 %v5690_v58  ;;  %3321 = vmatpush.bf16.msrb.mxu2 %v5937_v13  ;;  %v5905_v58 = vor.u32 %v6409_v29, %v5904_v28  ;;  %v6396_v28 = vld [vmem:[#allocation9 + $0x4c] sm:$0xf0]  ;;  %v6394_v29 = vld [vmem:[#allocation9 + $0x44] sm:$0xf] }
 0x498   :  { %3350 = vmatpush.bf16.msrb.mxu3 %v5941_v6  ;;  %3265 = vmatpush.bf16.msrb.mxu0 %v5897_v45  ;;  %v5864_v6 = vld [vmem:[#allocation9 + $0x60] sm:$0xf] }
 0x499   :  { %3292 = vmatpush.bf16.msrb.mxu1 %v5933_v34  ;;  %v6403_v34 = vld [vmem:[#allocation9 + $0x8c] sm:$0xf] }
 0x49a   :  { %v5893_v56 = vor.u32 %v6403_v34, %v5890_v38  ;;  %v5857_v34 = vor.u32 %v6397_v3, %v5856_v39  ;;  %v6387_v39 = vld [vmem:[#allocation9 + $0xc] sm:$0xf]  ;;  %v5826_v3 = vld [vmem:[#allocation9 + $0x18] sm:$0xf0] }
 0x49c   :  { %3266 = vmatpush.bf16.msrb.mxu0 %v5881_v16  ;;  %v5834_v16 = vld [vmem:[#allocation9 + $0x30] sm:$0xf0] }
 0x49d   :  { %3293 = vmatpush.bf16.msrb.mxu1 %v5917_v49 }
 0x4a1   :  { %3294 = vmatpush.bf16.msrb.mxu1 %v5901_v10  ;;  %v5877_v10 = vor.u32 %v6399_v35, %v5874_v7  ;;  %v5818_v35 = vld [vmem:[#allocation9 + $0x10] sm:$0xf0]  ;;  %v5824_v7 = vld [vmem:[#allocation9 + $0x8] sm:$0xf] }
 0x4ff   :  { %v2615_v47 = vpop.f32.mrf.mxu0  ;;  %v2628_v27 = vpop.f32.mrf.mxu1 }
 0x500   :  { %v2658_v36 = vadd.f32 %v2615_v47, %v6994_v54  ;;  %v2659_v55 = vadd.f32 %v2628_v27, %v6997_v57  ;;  %v5921_v54 = vor.u32 %v6413_v32, %v5920_v5  ;;  %v6411_v57 = vld [vmem:[#allocation9 + $0xcc] sm:$0xf]  ;;  %v5882_v47 = vld [vmem:[#allocation9 + $0x90] sm:$0xf0]  ;;  %v5888_v27 = vld [vmem:[#allocation9 + $0x88] sm:$0xf]  ;;  %v5865_v5 = vor.u32 %v6400_v62, %v5864_v6 }
 0x501   :  { %v5925_v60 = vor.u32 %v6411_v57, %v5922_v8  ;;  %v5889_v13 = vor.u32 %v6405_v30, %v5888_v27  ;;  %v6401_v57 = vld [vmem:[#allocation9 + $0x74] sm:$0xf0]  ;;  %v6391_v62 = vld [vmem:[#allocation9 + $0x2c] sm:$0xf] }
 0x502   :  { %v5680_v63 = vmul.f32 -1.442695, %v2658_v36  ;;  %v5681_v23 = vmul.f32 -1.442695, %v2659_v55  ;;  %3322 = vmatpush.bf16.msrb.mxu2 %v5921_v54  ;;  %v5885_v36 = vor.u32 %v6402_v25, %v5882_v47  ;;  %v5872_v54 = vld [vmem:[#allocation9 + $0x68] sm:$0xf]  ;;  %3267 = vmatpush.bf16.msrb.mxu0 %v5865_v5 }
 0x503   :  { %3351 = vmatpush.bf16.msrb.mxu3 %v5925_v60  ;;  %v5873_v60 = vor.u32 %v6401_v57, %v5872_v54  ;;  %v6392_v47 = vld [vmem:[#allocation9 + $0x2c] sm:$0xf0]  ;;  %v5842_v5 = vld [vmem:[#allocation9 + $0x38] sm:$0xf0]  ;;  %v6386_v57 = vld [vmem:[#allocation9 + $0x4] sm:$0xf] }
 0x504   :  { %6557 = vpow2.f32 %v5680_v63  ;;  %3295 = vmatpush.bf16.msrb.mxu1 %v5885_v36  ;;  %v6398_v63 = vld [vmem:[#allocation9 + $0x64] sm:$0xf]  ;;  %v6388_v54 = vld [vmem:[#allocation9 + $0xc] sm:$0xf0] }
 0x505   :  { %6559 = vpow2.f32 %v5681_v23  ;;  %v5866_v23 = vld [vmem:[#allocation9 + $0x70] sm:$0xf0] }
 0x506   :  { %v2641_v37 = vpop.f32.mrf.mxu2  ;;  %v2654_v2 = vpop.f32.mrf.mxu3  ;;  %3323 = vmatpush.bf16.msrb.mxu2 %v5905_v58  ;;  %v5869_v32 = vor.u32 %v6398_v63, %v5866_v23  ;;  %v5850_v58 = vld [vmem:[#allocation9 + $0x50] sm:$0xf0] }
 0x507   :  { %v2661_v17 = vadd.f32 %v2654_v2, %v7005_v50  ;;  %v2617_v11 = vpop.f32.mrf.mxu0  ;;  %v2630_v19 = vpop.f32.mrf.mxu1  ;;  %3352 = vmatpush.bf16.msrb.mxu3 %v5909_v18  ;;  %v2660_v15 = vadd.f32 %v2641_v37, %v7000_v41  ;;  %v5849_v2 = vor.u32 %v6396_v28, %v5848_v9  ;;  %v6395_v37 = vld [vmem:[#allocation9 + $0x4c] sm:$0xf]  ;;  %v5853_v30 = vor.u32 %v6394_v29, %v5850_v58  ;;  %v6389_v9 = vld [vmem:[#allocation9 + $0x14] sm:$0xf0] }
 0x508   :  { %3296 = vmatpush.bf16.msrb.mxu1 %v5869_v32  ;;  %v5832_v11 = vld [vmem:[#allocation9 + $0x20] sm:$0xf] }
 0x509   :  { %v5682_v46 = vmul.f32 -1.442695, %v2661_v17  ;;  %v5858_v17 = vld [vmem:[#allocation9 + $0x58] sm:$0xf0]  ;;  %3268 = vmatpush.bf16.msrb.mxu0 %v5849_v2  ;;  %v5816_v32 = vld [vmem:[#allocation9] sm:$0xf] }
 0x50a   :  { %v6558_v55 = vpop.eup %6557  ;;  %3324 = vmatpush.bf16.msrb.mxu2 %v5889_v13  ;;  %v5861_v38 = vor.u32 %v6395_v37, %v5858_v17  ;;  %v5825_v37 = vor.u32 %v6389_v9, %v5824_v7  ;;  %v6042_v7 = vld [vmem:[#allocation10 + $0x1d0] sm:$0xf0]  ;;  %v6443_v9 = vld [vmem:[#allocation10 + $0x1cc] sm:$0xf] }
 0x50b   :  { %v6560_v43 = vpop.eup %6559  ;;  %v7103_v50 = vadd.f32 1.0, %v6558_v55  ;;  %6561 = vpow2.f32 %v5682_v46  ;;  %3353 = vmatpush.bf16.msrb.mxu3 %v5893_v56  ;;  %v6390_v46 = vld [vmem:[#allocation9 + $0x24] sm:$0xf]  ;;  %v5840_v56 = vld [vmem:[#allocation9 + $0x28] sm:$0xf] }
 0x50c   :  { %v7105_v31 = vadd.f32 1.0, %v6560_v43  ;;  %v5833_v43 = vor.u32 %v6392_v47, %v5832_v11  ;;  %3297 = vmatpush.bf16.msrb.mxu1 %v5853_v30 }
 0x50d   :  { %6563 = vrcp.f32 %v7103_v50  ;;  %v2675_v49 = vand.u32 2147483647, %v7103_v50  ;;  %v2677_v25 = vand.u32 2147483648, %v7103_v50  ;;  %vm2671_vm12 = vweird.f32 %v7103_v50 }
 0x50e   :  { %6565 = vrcp.f32 %v7105_v31  ;;  %v2643_v33 = vpop.f32.mrf.mxu2  ;;  %v2656_v61 = vpop.f32.mrf.mxu3  ;;  %3325 = vmatpush.bf16.msrb.mxu2 %v5873_v60  ;;  %v2696_v18 = vand.u32 2147483648, %v7105_v31  ;;  %v2694_v13 = vand.u32 2147483647, %v7105_v31  ;;  %3269 = vmatpush.bf16.msrb.mxu0 %v5833_v43  ;;  %vm2690_vm11 = vweird.f32 %v7105_v31  ;;  %v6448_v43 = vld [vmem:[#allocation10 + $0x1ec] sm:$0xf0] }
 0x50f   :  { %3354 = vmatpush.bf16.msrb.mxu3 %v5877_v10  ;;  %vm7124_vm8 = vcmp.eq.f32.partialorder %v2675_v49, 8.507059e+37  ;;  %v5837_v33 = vor.u32 %v6390_v46, %v5834_v16  ;;  %v6393_v61 = vld [vmem:[#allocation9 + $0x34] sm:$0xf0]  ;;  %v5845_v49 = vor.u32 %v6391_v62, %v5842_v5  ;;  %v5817_v60 = vor.u32 %v6388_v54, %v5816_v32  ;;  %v6066_v5 = vld [vmem:[#allocation10 + $0x1f8] sm:$0xf0] }
 0x510   :  { %v5841_v23 = vor.u32 %v6393_v61, %v5840_v56  ;;  %v2697_v28 = vor.u32 1.1754944e-38, %v2696_v18  ;;  %v2678_v29 = vor.u32 1.1754944e-38, %v2677_v25  ;;  %vm2695_vm15 = vcmp.eq.f32.partialorder %v2694_v13, 8.507059e+37  ;;  %v6446_v56 = vld [vmem:[#allocation10 + $0x1e4] sm:$0xf] }
 0x511   :  { %v6562_v8 = vpop.eup %6561  ;;  %3298 = vmatpush.bf16.msrb.mxu1 %v5837_v33  ;;  %v5829_v18 = vor.u32 %v6387_v39, %v5826_v3  ;;  %v3056_v13 = vpack.c.bf16 %v7040_v53, %v7024_v59  ;;  %v6058_v33 = vld [vmem:[#allocation10 + $0x1f0] sm:$0xf0]  ;;  %v3057_v62 = vpack.c.bf16 %v7068_v52, %v7052_v24  ;;  %v3058_v59 = vpack.c.bf16 %v7096_v0, %v7080_v42  ;;  %v6447_v53 = vld [vmem:[#allocation10 + $0x1ec] sm:$0xf] }
 0x512   :  { %v7111_v45 = vadd.f32 1.0, %v6562_v8  ;;  %3326 = vmatpush.bf16.msrb.mxu2 %v5857_v34  ;;  %3270 = vmatpush.bf16.msrb.mxu0 %v5817_v60  ;;  %v7163_v61 = vor.u32 %v6446_v56, %v6058_v33  ;;  %v361_v52 = vadd.f32 %v7002_v44, %v6941_v12  ;;  %v390_v42 = vadd.f32 %v7007_v51, %v6945_v14  ;;  %v6442_v60 = vld [vmem:[#allocation10 + $0x1c4] sm:$0xf]  ;;  %v6048_v14 = vld [vmem:[#allocation10 + $0x1c8] sm:$0xf] }
 0x513   :  { %v7113_v1 = vpop.eup %6563  ;;  %3355 = vmatpush.bf16.msrb.mxu3 %v5861_v38  ;;  %v7183_v12 = vor.u32 %v6442_v60, %v6042_v7  ;;  %v6024_v51 = vld [vmem:[#allocation10 + $0x1a0] sm:$0xf]  ;;  %v6026_v3 = vld [vmem:[#allocation10 + $0x1b0] sm:$0xf0]  ;;  %v6432_v56 = vld [vmem:[#allocation10 + $0x16c] sm:$0xf0] }
 0x514   :  { %v7115_v26 = vpop.eup %6565  ;;  %v2667_v41 = vmul.f32 %v7113_v1, %v7103_v50  ;;  %6567 = vrcp.f32 %v7111_v45  ;;  %vm2672_vm9 = vweird.f32 %v7113_v1  ;;  %vm2710_vm1 = vweird.f32 %v7111_v45  ;;  %v6430_v33 = vld [vmem:[#allocation10 + $0x164] sm:$0xf]  ;;  %v5976_v60 = vld [vmem:[#allocation10 + $0x140] sm:$0xf]  ;;  %v6428_v7 = vld [vmem:[#allocation10 + $0x14c] sm:$0xf0] }
 0x515   :  { %v2686_v19 = vmul.f32 %v7115_v26, %v7105_v31  ;;  %6569 = vtanh.f32 %v2660_v15  ;;  %vm2691_vm10 = vweird.f32 %v7115_v26  ;;  %vm2673_vm13 = vmor %vm2671_vm12, %vm2672_vm9  ;;  %v2714_v34 = vand.u32 2147483647, %v7111_v45 }
 0x516   :  { %v2668_v27 = vsub.f32 1.0, %v2667_v41  ;;  %vm2692_vm14 = vmor %vm2690_vm11, %vm2691_vm10  ;;  %3327 = vmatpush.bf16.msrb.mxu2 %v5841_v23  ;;  %v5821_v41 = vor.u32 %v6386_v57, %v5818_v35  ;;  %v6064_v23 = vld [vmem:[#allocation10 + $0x1e8] sm:$0xf] }
 0x517   :  { %v2687_v36 = vsub.f32 1.0, %v2686_v19  ;;  %3356 = vmatpush.bf16.msrb.mxu3 %v5845_v49  ;;  %vm2715_vm3 = vcmp.eq.f32.partialorder %v2714_v34, 8.507059e+37  ;;  %v6449_v49 = vld [vmem:[#allocation10 + $0x1f4] sm:$0xf0]  ;;  %v6435_v34 = vld [vmem:[#allocation10 + $0x18c] sm:$0xf] }
 0x518   :  { %v2669_v6 = vmul.f32 %v7113_v1, %v2668_v27  ;;  %3299 = vmatpush.bf16.msrb.mxu1 %v5821_v41  ;;  %v7174_v24 = vor.u32 %v6449_v49, %v6064_v23  ;;  %v6034_v41 = vld [vmem:[#allocation10 + $0x1b8] sm:$0xf0] }
 0x519   :  { %v2688_v63 = vmul.f32 %v7115_v26, %v2687_v36  ;;  %v6002_v49 = vld [vmem:[#allocation10 + $0x178] sm:$0xf0] }
 0x51a   :  { %v6568_v8 = vpop.eup %6567  ;;  %v2670_v15 = vadd.f32 %v7113_v1, %v2669_v6  ;;  %3328 = vmatpush.bf16.msrb.mxu2 %v5825_v37  ;;  %v448_v37 = vadd.f32 %v7015_v40, %v6957_v21  ;;  %v6018_v40 = vld [vmem:[#allocation10 + $0x198] sm:$0xf0] }
 0x51b   :  { %v6570_v10 = vpop.eup %6569  ;;  %v2689_v2 = vadd.f32 %v7115_v26, %v2688_v63  ;;  %v2706_v58 = vmul.f32 %v6568_v8, %v7111_v45  ;;  %3357 = vmatpush.bf16.msrb.mxu3 %v5829_v18  ;;  %vm2711_vm0 = vweird.f32 %v6568_v8  ;;  %v7171_v63 = vor.u32 %v6447_v53, %v6066_v5  ;;  %v6008_v18 = vld [vmem:[#allocation10 + $0x180] sm:$0xf]  ;;  %v5994_v53 = vld [vmem:[#allocation10 + $0x170] sm:$0xf0]  ;;  %v6431_v5 = vld [vmem:[#allocation10 + $0x16c] sm:$0xf] }
 0x51c   :  { %v2674_v50 = vsel %vm2673_vm13, %v7113_v1, %v2670_v15  ;;  %vm2712_vm2 = vmor %vm2710_vm1, %vm2711_vm0  ;;  %v6444_v15 = vld [vmem:[#allocation10 + $0x1cc] sm:$0xf0] }
 0x51d   :  { %v2679_v17 = vsel %vm7124_vm8, %v2678_v29, %v2674_v50  ;;  %v2693_v11 = vsel %vm2692_vm14, %v7115_v26, %v2689_v2  ;;  %v2707_v19 = vsub.f32 1.0, %v2706_v58  ;;  %v2716_v26 = vand.u32 2147483648, %v7111_v45  ;;  %v6056_v45 = vld [vmem:[#allocation10 + $0x1e0] sm:$0xf]  ;;  %v6440_v2 = vld [vmem:[#allocation10 + $0x1ac] sm:$0xf0] }
 0x51e   :  { %v2698_v25 = vsel %vm2695_vm15, %v2697_v28, %v2693_v11  ;;  %v2721_v47 = vmul.f32 %v6570_v10, %v2679_v17  ;;  %v7161_v6 = vor.u32 %v6448_v43, %v6056_v45  ;;  %v6050_v10 = vld [vmem:[#allocation10 + $0x1d8] sm:$0xf0]  ;;  %v6438_v58 = vld [vmem:[#allocation10 + $0x1a4] sm:$0xf]  ;;  %v7190_v39 = vor.u32 %v6440_v2, %v6024_v51  ;;  %v6439_v50 = vld [vmem:[#allocation10 + $0x1ac] sm:$0xf] }
 0x51f   :  { %v2720_v31 = vmul.f32 %v2698_v25, %v7093_v48  ;;  %v2708_v27 = vmul.f32 %v6568_v8, %v2707_v19  ;;  %v2717_v46 = vor.u32 1.1754944e-38, %v2716_v26  ;;  %v7185_v44 = vor.u32 %v6443_v9, %v6050_v10  ;;  %v6445_v19 = vld [vmem:[#allocation10 + $0x1d4] sm:$0xf0]  ;;  %v6436_v25 = vld [vmem:[#allocation10 + $0x18c] sm:$0xf0] }
 0x520   :  { %v7194_v17 = vor.u32 %v6438_v58, %v6026_v3  ;;  %v7196_v11 = vor.u32 %v6439_v50, %v6034_v41  ;;  %v6010_v26 = vld [vmem:[#allocation10 + $0x190] sm:$0xf0]  ;;  %v7203_v21 = vor.u32 %v6436_v25, %v6008_v18  ;;  %v7209_v45 = vor.u32 %v6435_v34, %v6018_v40  ;;  %v5992_v43 = vld [vmem:[#allocation10 + $0x160] sm:$0xf]  ;;  %v6426_v10 = vld [vmem:[#allocation10 + $0x144] sm:$0xf] }
 0x521   :  { %v7149_v1 = vadd.f32 %v2721_v47, %v2720_v31  ;;  %v2709_v30 = vadd.f32 %v6568_v8, %v2708_v27  ;;  %v7200_v27 = vor.u32 %v6445_v19, %v6048_v14  ;;  %v5986_v2 = vld [vmem:[#allocation10 + $0x158] sm:$0xf0]  ;;  %v7233_v58 = vor.u32 %v6428_v7, %v5976_v60  ;;  %v6000_v3 = vld [vmem:[#allocation10 + $0x168] sm:$0xf]  ;;  %v6433_v50 = vld [vmem:[#allocation10 + $0x174] sm:$0xf0] }
 0x522   :  { %v5960_v19 = vld [vmem:[#allocation10 + $0x120] sm:$0xf]  ;;  %v6424_v18 = vld [vmem:[#allocation10 + $0x12c] sm:$0xf0]  ;;  %v5962_v34 = vld [vmem:[#allocation10 + $0x130] sm:$0xf0] }
 0x523   :  { %6571 = vtanh.f32 %v7149_v1  ;;  %v2713_v38 = vsel %vm2712_vm2, %v6568_v8, %v2709_v30  ;;  %v6040_v8 = vld [vmem:[#allocation10 + $0x1c0] sm:$0xf]  ;;  %v6434_v30 = vld [vmem:[#allocation10 + $0x184] sm:$0xf] }
 0x524   :  { %v2718_v16 = vsel %vm2715_vm3, %v2717_v46, %v2713_v38  ;;  %v7181_v35 = vor.u32 %v6444_v15, %v6040_v8  ;;  %v7223_v8 = vor.u32 %v6430_v33, %v5994_v53  ;;  %v7225_v15 = vor.u32 %v6431_v5, %v6002_v49  ;;  %v5944_v7 = vld [vmem:[#allocation10 + $0x100] sm:$0xf] }
 0x529   :  { %v6572_v48 = vpop.eup %6571 }
 0x52a   :  { %v7155_v36 = vmul.f32 %v6572_v48, %v2718_v16  ;;  %v6032_v16 = vld [vmem:[#allocation10 + $0x1a8] sm:$0xf] }
 0x52c   :  { %v2734_v55 = vpack.c.bf16 %v7155_v36, %v7155_v36 }
 0x52e   :  { %2935 = vmatmul.bf16.vlgmr.msra.gmra.mxu0 %v2734_v55  ;;  %2948 = vmatmul.bf16.vlgmr.msra.gmra.mxu1 %v2734_v55 }
 0x52f   :  { %2961 = vmatmul.bf16.vlgmr.msra.gmra.mxu2 %v2734_v55  ;;  %2974 = vmatmul.bf16.vlgmr.msra.gmra.mxu3 %v2734_v55  ;;  %v6441_v55 = vld [vmem:[#allocation10 + $0x1b4] sm:$0xf0] }
 0x530   :  { %3608 = vmatpush.bf16.msra.mxu0 %v7161_v6  ;;  %3621 = vmatpush.bf16.msra.mxu1 %v7163_v61 }
 0x531   :  { %3647 = vmatpush.bf16.msra.mxu3 %v7171_v63  ;;  %3634 = vmatpush.bf16.msra.mxu2 %v7174_v24 }
 0x534   :  { %3609 = vmatpush.bf16.msra.mxu0 %v7181_v35  ;;  %3622 = vmatpush.bf16.msra.mxu1 %v7183_v12 }
 0x535   :  { %3648 = vmatpush.bf16.msra.mxu3 %v7185_v44  ;;  %3635 = vmatpush.bf16.msra.mxu2 %v7200_v27 }
 0x538   :  { %3610 = vmatpush.bf16.msra.mxu0 %v7190_v39  ;;  %3623 = vmatpush.bf16.msra.mxu1 %v7194_v17 }
 0x539   :  { %3649 = vmatpush.bf16.msra.mxu3 %v7196_v11 }
 0x53c   :  { %3611 = vmatpush.bf16.msra.mxu0 %v7203_v21 }
 0x53d   :  { %3650 = vmatpush.bf16.msra.mxu3 %v7209_v45 }
 0x53e   :  { %3271 = vmatmul.bf16.vlgmr.msrb.gmra.mxu0 %v3056_v13  ;;  %3300 = vmatmul.bf16.vlgmr.msrb.gmra.mxu1 %v3056_v13 }
 0x53f   :  { %3329 = vmatmul.bf16.vlgmr.msrb.gmra.mxu2 %v3056_v13  ;;  %3358 = vmatmul.bf16.vlgmr.msrb.gmra.mxu3 %v3056_v13  ;;  %v7207_v13 = vor.u32 %v6434_v30, %v6010_v26  ;;  %v7244_v30 = vor.u32 %v6433_v50, %v6000_v3  ;;  %v6422_v26 = vld [vmem:[#allocation10 + $0x124] sm:$0xf] }
 0x540   :  { %v7261_v33 = vor.u32 %v6422_v26, %v5962_v34  ;;  %v5952_v26 = vld [vmem:[#allocation10 + $0x108] sm:$0xf]  ;;  %v6421_v34 = vld [vmem:[#allocation10 + $0x114] sm:$0xf0] }
 0x541   :  { %3624 = vmatpush.bf16.msra.mxu1 %v7207_v13  ;;  %3651 = vmatpush.bf16.msra.mxu3 %v7225_v15 }
 0x545   :  { %3625 = vmatpush.bf16.msra.mxu1 %v7223_v8 }
 0x54e   :  { %3276 = vmatmul.bf16.gmra.mxu0 %v3057_v62  ;;  %3305 = vmatmul.bf16.gmra.mxu1 %v3057_v62 }
 0x54f   :  { %3334 = vmatmul.bf16.gmra.mxu2 %v3057_v62  ;;  %3363 = vmatmul.bf16.gmra.mxu3 %v3057_v62 }
 0x55e   :  { %3281 = vmatmul.bf16.gmra.mxu0 %v3058_v59  ;;  %3310 = vmatmul.bf16.gmra.mxu1 %v3058_v59 }
 0x55f   :  { %3339 = vmatmul.bf16.gmra.mxu2 %v3058_v59  ;;  %3368 = vmatmul.bf16.gmra.mxu3 %v3058_v59  ;;  %v7212_v59 = vor.u32 %v6441_v55, %v6032_v16  ;;  %v7252_v55 = vor.u32 %v6424_v18, %v5960_v19  ;;  %v6419_v18 = vld [vmem:[#allocation10 + $0x10c] sm:$0xf] }
 0x561   :  { %3636 = vmatpush.bf16.msra.mxu2 %v7212_v59 }
 0x5ab   :  { %v2936_v0 = vpop.f32.mrf.mxu0  ;;  %v2949_v32 = vpop.f32.mrf.mxu1 }
 0x5ac   :  { %v2979_v54 = vadd.f32 %v2936_v0, %v361_v52  ;;  %v2980_v57 = vadd.f32 %v2949_v32, %v390_v42  ;;  %v6016_v52 = vld [vmem:[#allocation10 + $0x188] sm:$0xf]  ;;  %v6437_v42 = vld [vmem:[#allocation10 + $0x194] sm:$0xf0] }
 0x5ad   :  { %v7229_v9 = vor.u32 %v6437_v42, %v6016_v52  ;;  %v5968_v52 = vld [vmem:[#allocation10 + $0x128] sm:$0xf]  ;;  %v6425_v42 = vld [vmem:[#allocation10 + $0x134] sm:$0xf0] }
 0x5ae   :  { %v5811_v28 = vmul.f32 -1.442695, %v2979_v54  ;;  %v5812_v29 = vmul.f32 -1.442695, %v2980_v57  ;;  %v7217_v54 = vor.u32 %v6432_v56, %v5992_v43  ;;  %v6423_v43 = vld [vmem:[#allocation10 + $0x12c] sm:$0xf]  ;;  %v7286_v19 = vor.u32 %v6425_v42, %v5968_v52 }
 0x5af   :  { %3637 = vmatpush.bf16.msra.mxu2 %v7229_v9  ;;  %v7305_v52 = vor.u32 %v6421_v34, %v5952_v26 }
 0x5b0   :  { %6573 = vpow2.f32 %v5811_v28  ;;  %v5978_v28 = vld [vmem:[#allocation10 + $0x150] sm:$0xf0]  ;;  %3612 = vmatpush.bf16.msra.mxu0 %v7217_v54 }
 0x5b1   :  { %6575 = vpow2.f32 %v5812_v29  ;;  %v6427_v29 = vld [vmem:[#allocation10 + $0x14c] sm:$0xf]  ;;  %v7237_v41 = vor.u32 %v6426_v10, %v5978_v28  ;;  %v6420_v10 = vld [vmem:[#allocation10 + $0x10c] sm:$0xf0] }
 0x5b2   :  { %v7198_v47 = vpop.f32.mrf.mxu2  ;;  %v2975_v31 = vpop.f32.mrf.mxu3  ;;  %v7282_v3 = vor.u32 %v6420_v10, %v5944_v7 }
 0x5b3   :  { %v2982_v38 = vadd.f32 %v2975_v31, %v448_v37  ;;  %v2938_v46 = vpop.f32.mrf.mxu0  ;;  %v2951_v48 = vpop.f32.mrf.mxu1  ;;  %v7239_v37 = vor.u32 %v6427_v29, %v5986_v2  ;;  %v419_v31 = vadd.f32 %v7011_v22, %v6955_v20  ;;  %v5970_v20 = vld [vmem:[#allocation10 + $0x138] sm:$0xf0]  ;;  %3626 = vmatpush.bf16.msra.mxu1 %v7237_v41  ;;  %3638 = vmatpush.bf16.msra.mxu2 %v7244_v30 }
 0x5b4   :  { %v5984_v46 = vld [vmem:[#allocation10 + $0x148] sm:$0xf]  ;;  %v6429_v48 = vld [vmem:[#allocation10 + $0x154] sm:$0xf0]  ;;  %3613 = vmatpush.bf16.msra.mxu0 %v7233_v58  ;;  %v7270_v49 = vor.u32 %v6423_v43, %v5970_v20 }
 0x5b5   :  { %v5813_v62 = vmul.f32 -1.442695, %v2982_v38  ;;  %v2981_v16 = vadd.f32 %v7198_v47, %v419_v31  ;;  %3652 = vmatpush.bf16.msra.mxu3 %v7239_v37  ;;  %v7267_v53 = vor.u32 %v6429_v48, %v5984_v46  ;;  %v5954_v46 = vld [vmem:[#allocation10 + $0x118] sm:$0xf0] }
 0x5b6   :  { %v6574_v23 = vpop.eup %6573  ;;  %v7296_v20 = vor.u32 %v6419_v18, %v5954_v46 }
 0x5b7   :  { %v6576_v0 = vpop.eup %6575  ;;  %v7214_v32 = vadd.f32 1.0, %v6574_v23  ;;  %6577 = vpow2.f32 %v5813_v62  ;;  %3627 = vmatpush.bf16.msra.mxu1 %v7261_v33  ;;  %3639 = vmatpush.bf16.msra.mxu2 %v7267_v53 }
 0x5b8   :  { %v7219_v57 = vadd.f32 1.0, %v6576_v0  ;;  %3614 = vmatpush.bf16.msra.mxu0 %v7252_v55 }
 0x5b9   :  { %6579 = vrcp.f32 %v7214_v32  ;;  %v2996_v62 = vand.u32 2147483647, %v7214_v32  ;;  %v2998_v23 = vand.u32 2147483648, %v7214_v32  ;;  %3653 = vmatpush.bf16.msra.mxu3 %v7270_v49  ;;  %vm2992_vm7 = vweird.f32 %v7214_v32 }
 0x5ba   :  { %6581 = vrcp.f32 %v7219_v57  ;;  %v2964_v14 = vpop.f32.mrf.mxu2  ;;  %v2977_v51 = vpop.f32.mrf.mxu3  ;;  %v3017_v60 = vand.u32 2147483648, %v7219_v57  ;;  %v3015_v29 = vand.u32 2147483647, %v7219_v57  ;;  %vm3011_vm6 = vweird.f32 %v7219_v57 }
 0x5bb   :  { %v6418_v14 = vld [vmem:[#allocation10 + $0x104] sm:$0xf]  ;;  %v5946_v51 = vld [vmem:[#allocation10 + $0x110] sm:$0xf0]  ;;  %v2999_v48 = vor.u32 1.1754944e-38, %v2998_v23  ;;  %vm2997_vm10 = vcmp.eq.f32.partialorder %v2996_v62, 8.507059e+37  ;;  %3640 = vmatpush.bf16.msra.mxu2 %v7286_v19 }
 0x5bc   :  { %v7284_v50 = vor.u32 %v6418_v14, %v5946_v51  ;;  %3615 = vmatpush.bf16.msra.mxu0 %v7282_v3  ;;  %vm3016_vm11 = vcmp.eq.f32.partialorder %v3015_v29, 8.507059e+37 }
 0x5bd   :  { %v6578_v25 = vpop.eup %6577  ;;  %3654 = vmatpush.bf16.msra.mxu3 %v7296_v20 }
 0x5be   :  { %v7246_v38 = vadd.f32 1.0, %v6578_v25  ;;  %3628 = vmatpush.bf16.msra.mxu1 %v7284_v50 }
 0x5bf   :  { %v7248_v40 = vpop.eup %6579  ;;  %3641 = vmatpush.bf16.msra.mxu2 %v7305_v52 }
 0x5c0   :  { %v7254_v22 = vpop.eup %6581  ;;  %v2988_v56 = vmul.f32 %v7248_v40, %v7214_v32  ;;  %6583 = vrcp.f32 %v7246_v38  ;;  %vm2993_vm5 = vweird.f32 %v7248_v40  ;;  %3732 = vmatpush.bf16.msrb.mxu0 %v7161_v6  ;;  %v3037_v7 = vand.u32 2147483648, %v7246_v38 }
 0x5c1   :  { %v3007_v47 = vmul.f32 %v7254_v22, %v7219_v57  ;;  %6585 = vtanh.f32 %v2981_v16  ;;  %vm3012_vm4 = vweird.f32 %v7254_v22  ;;  %vm2994_vm8 = vmor %vm2992_vm7, %vm2993_vm5  ;;  %v3018_v57 = vor.u32 1.1754944e-38, %v3017_v60  ;;  %3771 = vmatpush.bf16.msrb.mxu3 %v7171_v63 }
 0x5c2   :  { %v2989_v5 = vsub.f32 1.0, %v2988_v56  ;;  %vm3013_vm9 = vmor %vm3011_vm6, %vm3012_vm4  ;;  %3745 = vmatpush.bf16.msrb.mxu1 %v7163_v61  ;;  %vm3031_vm13 = vweird.f32 %v7246_v38  ;;  %v3359_v18 = vpop.f32.mrf.mxu3 }
 0x5c3   :  { %v3008_v0 = vsub.f32 1.0, %v3007_v47  ;;  %3758 = vmatpush.bf16.msrb.mxu2 %v7174_v24 }
 0x5c4   :  { %v2990_v28 = vmul.f32 %v7248_v40, %v2989_v5  ;;  %3733 = vmatpush.bf16.msrb.mxu0 %v7181_v35 }
 0x5c5   :  { %v3009_v2 = vmul.f32 %v7254_v22, %v3008_v0  ;;  %3772 = vmatpush.bf16.msrb.mxu3 %v7185_v44 }
 0x5c6   :  { %v6584_v25 = vpop.eup %6583  ;;  %v2991_v31 = vadd.f32 %v7248_v40, %v2990_v28  ;;  %3746 = vmatpush.bf16.msrb.mxu1 %v7183_v12  ;;  %v3038_v28 = vor.u32 1.1754944e-38, %v3037_v7 }
 0x5c7   :  { %v3010_v16 = vadd.f32 %v7254_v22, %v3009_v2  ;;  %v3027_v43 = vmul.f32 %v6584_v25, %v7246_v38  ;;  %v6586_v56 = vpop.eup %6585  ;;  %vm3032_vm12 = vweird.f32 %v6584_v25  ;;  %3759 = vmatpush.bf16.msrb.mxu2 %v7200_v27  ;;  %v3330_v2 = vpop.f32.mrf.mxu2 }
 0x5c8   :  { %v2995_v32 = vsel %vm2994_vm8, %v7248_v40, %v2991_v31  ;;  %3734 = vmatpush.bf16.msrb.mxu0 %v7190_v39  ;;  %vm3033_vm14 = vmor %vm3031_vm13, %vm3032_vm12 }
 0x5c9   :  { %v3000_v47 = vsel %vm2997_vm10, %v2999_v48, %v2995_v32  ;;  %v3014_v5 = vsel %vm3013_vm9, %v7254_v22, %v3010_v16  ;;  %v3028_v23 = vsub.f32 1.0, %v3027_v43  ;;  %3773 = vmatpush.bf16.msrb.mxu3 %v7196_v11 }
 0x5ca   :  { %v3019_v42 = vsel %vm3016_vm11, %v3018_v57, %v3014_v5  ;;  %v3042_v0 = vmul.f32 %v6586_v56, %v3000_v47  ;;  %3747 = vmatpush.bf16.msrb.mxu1 %v7194_v17  ;;  %v7387_v34 = vpop.f32.mrf.mxu3 }
 0x5cb   :  { %v3041_v40 = vmul.f32 %v3019_v42, %v7149_v1  ;;  %v3029_v62 = vmul.f32 %v6584_v25, %v3028_v23  ;;  %v3035_v1 = vand.u32 2147483647, %v7246_v38  ;;  %3760 = vmatpush.bf16.msrb.mxu2 %v7212_v59 }
 0x5cc   :  { %3735 = vmatpush.bf16.msrb.mxu0 %v7203_v21 }
 0x5cd   :  { %v3043_v60 = vadd.f32 %v3042_v0, %v3041_v40  ;;  %v3030_v22 = vadd.f32 %v6584_v25, %v3029_v62  ;;  %vm3036_vm15 = vcmp.eq.f32.partialorder %v3035_v1, 8.507059e+37  ;;  %3774 = vmatpush.bf16.msrb.mxu3 %v7209_v45 }
 0x5ce   :  { %3748 = vmatpush.bf16.msrb.mxu1 %v7207_v13 }
 0x5cf   :  { %6587 = vtanh.f32 %v3043_v60  ;;  %v3034_v10 = vsel %vm3033_vm14, %v6584_v25, %v3030_v22  ;;  %3761 = vmatpush.bf16.msrb.mxu2 %v7229_v9  ;;  %v7385_v26 = vpop.f32.mrf.mxu2 }
 0x5d0   :  { %v3039_v14 = vsel %vm3036_vm15, %v3038_v28, %v3034_v10  ;;  %3736 = vmatpush.bf16.msrb.mxu0 %v7217_v54  ;;  %7706 = vst [vmem:[#allocation18_spill] sm:$0xff] %v7385_v26 }
 0x5d1   :  { %3775 = vmatpush.bf16.msrb.mxu3 %v7225_v15 }
 0x5d2   :  { %3749 = vmatpush.bf16.msrb.mxu1 %v7223_v8  ;;  %v7395_v43 = vpop.f32.mrf.mxu3 }
 0x5d3   :  { %3762 = vmatpush.bf16.msrb.mxu2 %v7244_v30  ;;  %7710 = vst [vmem:[#allocation22_spill] sm:$0xff] %v7395_v43 }
 0x5d4   :  { %3737 = vmatpush.bf16.msrb.mxu0 %v7233_v58 }
 0x5d5   :  { %v6588_v29 = vpop.eup %6587  ;;  %3776 = vmatpush.bf16.msrb.mxu3 %v7239_v37 }
 0x5d6   :  { %v3045_v51 = vmul.f32 %v6588_v29, %v3039_v14  ;;  %3750 = vmatpush.bf16.msrb.mxu1 %v7237_v41  ;;  %v3093_v29 = vld [vmem:[#allocation12 + $0x4] sm:$0xf] }
 0x5d7   :  { %3763 = vmatpush.bf16.msrb.mxu2 %v7267_v53  ;;  %v7393_v16 = vpop.f32.mrf.mxu2 }
 0x5d8   :  { %v3059_v38 = vpack.c.bf16 %v3045_v51, %v7155_v36  ;;  %3738 = vmatpush.bf16.msrb.mxu0 %v7252_v55  ;;  %v3301_v36 = vpop.f32.mrf.mxu1  ;;  %7709 = vst [vmem:[#allocation21_spill] sm:$0xff] %v7393_v16 }
 0x5d9   :  { %3777 = vmatpush.bf16.msrb.mxu3 %v7270_v49 }
 0x5da   :  { %3286 = vmatmul.bf16.gmra.mxu0 %v3059_v38  ;;  %3315 = vmatmul.bf16.gmra.mxu1 %v3059_v38  ;;  %v7403_v47 = vpop.f32.mrf.mxu3 }
 0x5db   :  { %3344 = vmatmul.bf16.gmra.mxu2 %v3059_v38  ;;  %3373 = vmatmul.bf16.gmra.mxu3 %v3059_v38  ;;  %7714 = vst [vmem:[#allocation26_spill] sm:$0xff] %v7403_v47  ;;  %v7433_v38 = vperm.slane %v3093_v29, 0 }
 0x5dc   :  { %3751 = vmatpush.bf16.msrb.mxu1 %v7261_v33  ;;  %3739 = vmatpush.bf16.msrb.mxu0 %v7282_v3 }
 0x5dd   :  { %3764 = vmatpush.bf16.msrb.mxu2 %v7286_v19  ;;  %3778 = vmatpush.bf16.msrb.mxu3 %v7296_v20 }
 0x5df   :  { %v7401_v56 = vpop.f32.mrf.mxu2 }
 0x5e0   :  { %3752 = vmatpush.bf16.msrb.mxu1 %v7284_v50  ;;  %v7383_v31 = vpop.f32.mrf.mxu1  ;;  %7713 = vst [vmem:[#allocation25_spill] sm:$0xff] %v7401_v56 }
 0x5e1   :  { %3765 = vmatpush.bf16.msrb.mxu2 %v7305_v52 }
 0x5e2   :  { %v7411_v0 = vpop.f32.mrf.mxu3 }
 0x5e3   :  { %7718 = vst [vmem:[#allocation30_spill] sm:$0xff] %v7411_v0  ;;  %v7443_v0 = vperm.slane %v3093_v29, 3 }
 0x5e7   :  { %v7409_v42 = vpop.f32.mrf.mxu2 }
 0x5e8   :  { %v7391_v48 = vpop.f32.mrf.mxu1  ;;  %7717 = vst [vmem:[#allocation29_spill] sm:$0xff] %v7409_v42 }
 0x5e9   :  { %7708 = vst [vmem:[#allocation20_spill] sm:$0xff] %v7391_v48 }
 0x5ea   :  { %3616 = vmatmul.bf16.vlgmr.msra.gmra.mxu0 %v6878_v4  ;;  %3629 = vmatmul.bf16.vlgmr.msra.gmra.mxu1 %v6878_v4  ;;  %v7419_v22 = vpop.f32.mrf.mxu3 }
 0x5eb   :  { %3642 = vmatmul.bf16.vlgmr.msra.gmra.mxu2 %v6878_v4  ;;  %3655 = vmatmul.bf16.vlgmr.msra.gmra.mxu3 %v6878_v4  ;;  %v3272_v4 = vpop.f32.mrf.mxu0  ;;  %7722 = vst [vmem:[#allocation34_spill] sm:$0xff] %v7419_v22 }
 0x5ec   :  { %3856 = vmatpush.bf16.msra.mxu0 %v7161_v6  ;;  %3869 = vmatpush.bf16.msra.mxu1 %v7163_v61 }
 0x5ed   :  { %3882 = vmatpush.bf16.msra.mxu2 %v7174_v24  ;;  %3895 = vmatpush.bf16.msra.mxu3 %v7171_v63 }
 0x5ef   :  { %v7417_v60 = vpop.f32.mrf.mxu2 }
 0x5f0   :  { %3857 = vmatpush.bf16.msra.mxu0 %v7181_v35  ;;  %3870 = vmatpush.bf16.msra.mxu1 %v7183_v12  ;;  %v7399_v32 = vpop.f32.mrf.mxu1  ;;  %7721 = vst [vmem:[#allocation33_spill] sm:$0xff] %v7417_v60  ;;  %v3273_v60 = vadd.f32 %v3272_v4, %v7433_v38 }
 0x5f1   :  { %3883 = vmatpush.bf16.msra.mxu2 %v7200_v27  ;;  %3896 = vmatpush.bf16.msra.mxu3 %v7185_v44  ;;  %7712 = vst [vmem:[#allocation24_spill] sm:$0xff] %v7399_v32 }
 0x5f3   :  { %v7381_v25 = vpop.f32.mrf.mxu0 }
 0x5f4   :  { %3858 = vmatpush.bf16.msra.mxu0 %v7190_v39  ;;  %3871 = vmatpush.bf16.msra.mxu1 %v7194_v17 }
 0x5f5   :  { %3884 = vmatpush.bf16.msra.mxu2 %v7212_v59  ;;  %3897 = vmatpush.bf16.msra.mxu3 %v7196_v11 }
 0x5f8   :  { %3859 = vmatpush.bf16.msra.mxu0 %v7203_v21  ;;  %3872 = vmatpush.bf16.msra.mxu1 %v7207_v13  ;;  %v7407_v23 = vpop.f32.mrf.mxu1 }
 0x5f9   :  { %3885 = vmatpush.bf16.msra.mxu2 %v7229_v9  ;;  %3898 = vmatpush.bf16.msra.mxu3 %v7209_v45  ;;  %7716 = vst [vmem:[#allocation28_spill] sm:$0xff] %v7407_v23  ;;  %v3360_v23 = vadd.f32 %v3359_v18, %v7443_v0 }
 0x5fb   :  { %v7389_v46 = vpop.f32.mrf.mxu0 }
 0x5fc   :  { %3860 = vmatpush.bf16.msra.mxu0 %v7217_v54  ;;  %3873 = vmatpush.bf16.msra.mxu1 %v7223_v8  ;;  %7707 = vst [vmem:[#allocation19_spill] sm:$0xff] %v7389_v46 }
 0x5fd   :  { %3886 = vmatpush.bf16.msra.mxu2 %v7244_v30  ;;  %3899 = vmatpush.bf16.msra.mxu3 %v7225_v15 }
 0x600   :  { %3861 = vmatpush.bf16.msra.mxu0 %v7233_v58  ;;  %3874 = vmatpush.bf16.msra.mxu1 %v7237_v41  ;;  %v7415_v62 = vpop.f32.mrf.mxu1 }
 0x601   :  { %3887 = vmatpush.bf16.msra.mxu2 %v7267_v53  ;;  %3900 = vmatpush.bf16.msra.mxu3 %v7239_v37  ;;  %7720 = vst [vmem:[#allocation32_spill] sm:$0xff] %v7415_v62  ;;  %v7435_v62 = vperm.slane %v3093_v29, 1 }
 0x603   :  { %v7397_v57 = vpop.f32.mrf.mxu0  ;;  %v3302_v22 = vadd.f32 %v3301_v36, %v7435_v62 }
 0x604   :  { %3862 = vmatpush.bf16.msra.mxu0 %v7252_v55  ;;  %3875 = vmatpush.bf16.msra.mxu1 %v7261_v33  ;;  %7711 = vst [vmem:[#allocation23_spill] sm:$0xff] %v7397_v57 }
 0x605   :  { %3888 = vmatpush.bf16.msra.mxu2 %v7286_v19  ;;  %3901 = vmatpush.bf16.msra.mxu3 %v7270_v49 }
 0x608   :  { %3863 = vmatpush.bf16.msra.mxu0 %v7282_v3  ;;  %3876 = vmatpush.bf16.msra.mxu1 %v7284_v50 }
 0x609   :  { %3889 = vmatpush.bf16.msra.mxu2 %v7305_v52  ;;  %3902 = vmatpush.bf16.msra.mxu3 %v7296_v20 }
 0x60b   :  { %v7405_v5 = vpop.f32.mrf.mxu0 }
 0x60c   :  { %7715 = vst [vmem:[#allocation27_spill] sm:$0xff] %v7405_v5 }
 0x613   :  { %v7413_v40 = vpop.f32.mrf.mxu0 }
 0x614   :  { %7719 = vst [vmem:[#allocation31_spill] sm:$0xff] %v7413_v40 }
 0x657   :  { %v7421_v7 = vpop.f32.mrf.mxu0  ;;  %v7423_v1 = vpop.f32.mrf.mxu1 }
 0x658   :  { %7723 = vst [vmem:[#allocation35_spill] sm:$0xff] %v7421_v7 }
 0x659   :  { %7724 = vst [vmem:[#allocation36_spill] sm:$0xff] %v7423_v1 }
 0x65e   :  { %v7425_v10 = vpop.f32.mrf.mxu2  ;;  %v7427_v28 = vpop.f32.mrf.mxu3 }
 0x65f   :  { %7725 = vst [vmem:[#allocation37_spill] sm:$0xff] %v7425_v10  ;;  %v7429_v14 = vpop.f32.mrf.mxu0  ;;  %v7431_v51 = vpop.f32.mrf.mxu1 }
 0x660   :  { %7726 = vst [vmem:[#allocation38_spill] sm:$0xff] %v7427_v28 }
 0x661   :  { %7727 = vst [vmem:[#allocation39_spill] sm:$0xff] %v7429_v14 }
 0x662   :  { %7728 = vst [vmem:[#allocation40_spill] sm:$0xff] %v7431_v51 }
 0x666   :  { %v7439_v7 = vpop.f32.mrf.mxu2  ;;  %v7441_v1 = vpop.f32.mrf.mxu3 }
 0x667   :  { %7729 = vst [vmem:[#allocation41_spill] sm:$0xff] %v7439_v7  ;;  %v3617_v10 = vpop.f32.mrf.mxu0  ;;  %v3630_v40 = vpop.f32.mrf.mxu1 }
 0x668   :  { %7730 = vst [vmem:[#allocation42_spill] sm:$0xff] %v7441_v1  ;;  %v3660_v28 = vadd.f32 %v3617_v10, %v3273_v60  ;;  %v3661_v42 = vadd.f32 %v3630_v40, %v3302_v22  ;;  %v7446_v40 = vperm.slane %v3093_v29, 2 }
 0x66a   :  { %v6070_v14 = vmul.f32 -1.442695, %v3660_v28  ;;  %v6071_v51 = vmul.f32 -1.442695, %v3661_v42  ;;  %7731 = vst [vmem:[#allocation43_spill] sm:$0xff] %v7446_v40  ;;  %v3331_v18 = vadd.f32 %v3330_v2, %v7446_v40 }
 0x66c   :  { %6589 = vpow2.f32 %v6070_v14 }
 0x66d   :  { %6591 = vpow2.f32 %v6071_v51 }
 0x66e   :  { %v3643_v5 = vpop.f32.mrf.mxu2  ;;  %v3656_v4 = vpop.f32.mrf.mxu3 }
 0x66f   :  { %v3663_v56 = vadd.f32 %v3656_v4, %v3360_v23  ;;  %v3619_v36 = vpop.f32.mrf.mxu0  ;;  %v3632_v47 = vpop.f32.mrf.mxu1  ;;  %v3662_v23 = vadd.f32 %v3643_v5, %v3331_v18 }
 0x671   :  { %v6072_v7 = vmul.f32 -1.442695, %v3663_v56 }
 0x672   :  { %v6590_v32 = vpop.eup %6589 }
 0x673   :  { %v6592_v1 = vpop.eup %6591  ;;  %v3667_v57 = vadd.f32 1.0, %v6590_v32  ;;  %6593 = vpow2.f32 %v6072_v7 }
 0x674   :  { %v3686_v60 = vadd.f32 1.0, %v6592_v1 }
 0x675   :  { %6595 = vrcp.f32 %v3667_v57  ;;  %v3679_v7 = vand.u32 2147483648, %v3667_v57  ;;  %v3677_v36 = vand.u32 2147483647, %v3667_v57  ;;  %vm3673_vm2 = vweird.f32 %v3667_v57 }
 0x676   :  { %6597 = vrcp.f32 %v3686_v60  ;;  %v3658_v42 = vpop.f32.mrf.mxu3  ;;  %v3645_v22 = vpop.f32.mrf.mxu2  ;;  %v3698_v1 = vand.u32 2147483648, %v3686_v60  ;;  %vm3692_vm3 = vweird.f32 %v3686_v60 }
 0x677   :  { %v3696_v22 = vand.u32 2147483647, %v3686_v60  ;;  %v3680_v5 = vor.u32 1.1754944e-38, %v3679_v7  ;;  %vm3678_vm5 = vcmp.eq.f32.partialorder %v3677_v36, 8.507059e+37 }
 0x678   :  { %v3699_v43 = vor.u32 1.1754944e-38, %v3698_v1 }
 0x679   :  { %v6594_v10 = vpop.eup %6593  ;;  %vm3697_vm7 = vcmp.eq.f32.partialorder %v3696_v22, 8.507059e+37 }
 0x67a   :  { %v3706_v28 = vadd.f32 1.0, %v6594_v10 }
 0x67b   :  { %v6596_v14 = vpop.eup %6595 }
 0x67c   :  { %v6598_v51 = vpop.eup %6597  ;;  %v3669_v47 = vmul.f32 %v6596_v14, %v3667_v57  ;;  %6599 = vrcp.f32 %v3706_v28  ;;  %vm3674_vm0 = vweird.f32 %v6596_v14  ;;  %vm3712_vm9 = vweird.f32 %v3706_v28 }
 0x67d   :  { %v3688_v56 = vmul.f32 %v6598_v51, %v3686_v60  ;;  %6601 = vtanh.f32 %v3662_v23  ;;  %vm3693_vm1 = vweird.f32 %v6598_v51  ;;  %vm3675_vm4 = vmor %vm3673_vm2, %vm3674_vm0  ;;  %v3718_v60 = vand.u32 2147483648, %v3706_v28 }
 0x67e   :  { %v3670_v4 = vsub.f32 1.0, %v3669_v47  ;;  %vm3694_vm6 = vmor %vm3692_vm3, %vm3693_vm1 }
 0x67f   :  { %v3689_v32 = vsub.f32 1.0, %v3688_v56  ;;  %v3719_v1 = vor.u32 1.1754944e-38, %v3718_v60 }
 0x680   :  { %v3671_v29 = vmul.f32 %v6596_v14, %v3670_v4 }
 0x681   :  { %v3690_v42 = vmul.f32 %v6598_v51, %v3689_v32 }
 0x682   :  { %v6600_v16 = vpop.eup %6599  ;;  %v3672_v2 = vadd.f32 %v6596_v14, %v3671_v29 }
 0x683   :  { %v3691_v10 = vadd.f32 %v6598_v51, %v3690_v42  ;;  %v3708_v18 = vmul.f32 %v6600_v16, %v3706_v28  ;;  %v6602_v23 = vpop.eup %6601  ;;  %vm3713_vm8 = vweird.f32 %v6600_v16 }
 0x684   :  { %v3676_v47 = vsel %vm3675_vm4, %v6596_v14, %v3672_v2  ;;  %v3716_v14 = vand.u32 2147483647, %v3706_v28  ;;  %vm3714_vm10 = vmor %vm3712_vm9, %vm3713_vm8 }
 0x685   :  { %v3681_v56 = vsel %vm3678_vm5, %v3680_v5, %v3676_v47  ;;  %v3695_v4 = vsel %vm3694_vm6, %v6598_v51, %v3691_v10  ;;  %v3709_v48 = vsub.f32 1.0, %v3708_v18  ;;  %v3362_v5 = vadd.f32 %v7387_v34, %v7443_v0 }
 0x686   :  { %v3700_v32 = vsel %vm3697_vm7, %v3699_v43, %v3695_v4  ;;  %v3723_v46 = vmul.f32 %v6602_v23, %v3681_v56  ;;  %vm3717_vm11 = vcmp.eq.f32.partialorder %v3716_v14, 8.507059e+37 }
 0x687   :  { %v3722_v26 = vmul.f32 0.0, %v3700_v32  ;;  %v3710_v40 = vmul.f32 %v6600_v16, %v3709_v48 }
 0x689   :  { %v7449_v29 = vadd.f32 %v3723_v46, %v3722_v26  ;;  %v3711_v57 = vadd.f32 %v6600_v16, %v3710_v40  ;;  %v3275_v26 = vadd.f32 %v7381_v25, %v7433_v38  ;;  %v3304_v46 = vadd.f32 %v7383_v31, %v7435_v62 }
 0x68b   :  { %6603 = vtanh.f32 %v7449_v29  ;;  %v3715_v7 = vsel %vm3714_vm10, %v6600_v16, %v3711_v57 }
 0x68c   :  { %v3720_v36 = vsel %vm3717_vm11, %v3719_v1, %v3715_v7  ;;  %v7732_v1 = vld [vmem:[#allocation43_spill] sm:$0xff] }
 0x691   :  { %v6604_v51 = vpop.eup %6603 }
 0x692   :  { %v3726_v42 = vmul.f32 %v6604_v51, %v3720_v36  ;;  %v7733_v51 = vld [vmem:[#allocation18_spill] sm:$0xff] }
 0x693   :  { %v3333_v34 = vadd.f32 %v7733_v51, %v7732_v1 }
 0x694   :  { %v3731_v43 = vpack.c.bf16 %v3726_v42, %v3726_v42 }
 0x696   :  { %3740 = vmatmul.bf16.vlgmr.msrb.gmra.mxu0 %v3731_v43  ;;  %3753 = vmatmul.bf16.vlgmr.msrb.gmra.mxu1 %v3731_v43 }
 0x697   :  { %3766 = vmatmul.bf16.vlgmr.msrb.gmra.mxu2 %v3731_v43  ;;  %3779 = vmatmul.bf16.vlgmr.msrb.gmra.mxu3 %v3731_v43 }
 0x698   :  { %3980 = vmatpush.bf16.msrb.mxu0 %v7161_v6  ;;  %3993 = vmatpush.bf16.msrb.mxu1 %v7163_v61 }
 0x699   :  { %4006 = vmatpush.bf16.msrb.mxu2 %v7174_v24  ;;  %4019 = vmatpush.bf16.msrb.mxu3 %v7171_v63 }
 0x69c   :  { %3981 = vmatpush.bf16.msrb.mxu0 %v7181_v35  ;;  %3994 = vmatpush.bf16.msrb.mxu1 %v7183_v12 }
 0x69d   :  { %4007 = vmatpush.bf16.msrb.mxu2 %v7200_v27  ;;  %4020 = vmatpush.bf16.msrb.mxu3 %v7185_v44 }
 0x6a0   :  { %3982 = vmatpush.bf16.msrb.mxu0 %v7190_v39  ;;  %3995 = vmatpush.bf16.msrb.mxu1 %v7194_v17 }
 0x6a1   :  { %4008 = vmatpush.bf16.msrb.mxu2 %v7212_v59  ;;  %4021 = vmatpush.bf16.msrb.mxu3 %v7196_v11 }
 0x6a4   :  { %3983 = vmatpush.bf16.msrb.mxu0 %v7203_v21  ;;  %3996 = vmatpush.bf16.msrb.mxu1 %v7207_v13 }
 0x6a5   :  { %4009 = vmatpush.bf16.msrb.mxu2 %v7229_v9  ;;  %4022 = vmatpush.bf16.msrb.mxu3 %v7209_v45 }
 0x6a8   :  { %3984 = vmatpush.bf16.msrb.mxu0 %v7217_v54  ;;  %3997 = vmatpush.bf16.msrb.mxu1 %v7223_v8 }
 0x6a9   :  { %4010 = vmatpush.bf16.msrb.mxu2 %v7244_v30  ;;  %4023 = vmatpush.bf16.msrb.mxu3 %v7225_v15 }
 0x6ac   :  { %3985 = vmatpush.bf16.msrb.mxu0 %v7233_v58  ;;  %3998 = vmatpush.bf16.msrb.mxu1 %v7237_v41 }
 0x6ad   :  { %4011 = vmatpush.bf16.msrb.mxu2 %v7267_v53  ;;  %4024 = vmatpush.bf16.msrb.mxu3 %v7239_v37 }
 0x6b0   :  { %3986 = vmatpush.bf16.msrb.mxu0 %v7252_v55  ;;  %3999 = vmatpush.bf16.msrb.mxu1 %v7261_v33 }
 0x6b1   :  { %4012 = vmatpush.bf16.msrb.mxu2 %v7286_v19  ;;  %4025 = vmatpush.bf16.msrb.mxu3 %v7270_v49 }
 0x6b4   :  { %3987 = vmatpush.bf16.msrb.mxu0 %v7282_v3  ;;  %4000 = vmatpush.bf16.msrb.mxu1 %v7284_v50 }
 0x6b5   :  { %4013 = vmatpush.bf16.msrb.mxu2 %v7305_v52  ;;  %4026 = vmatpush.bf16.msrb.mxu3 %v7296_v20 }
 0x713   :  { %v3741_v48 = vpop.f32.mrf.mxu0  ;;  %v3754_v16 = vpop.f32.mrf.mxu1 }
 0x714   :  { %v3784_v40 = vadd.f32 %v3741_v48, %v3275_v26  ;;  %v3785_v28 = vadd.f32 %v3754_v16, %v3304_v46 }
 0x716   :  { %v6073_v22 = vmul.f32 -1.442695, %v3784_v40  ;;  %v6074_v2 = vmul.f32 -1.442695, %v3785_v28 }
 0x718   :  { %6605 = vpow2.f32 %v6073_v22 }
 0x719   :  { %6607 = vpow2.f32 %v6074_v2 }
 0x71a   :  { %v3767_v10 = vpop.f32.mrf.mxu2  ;;  %v3780_v18 = vpop.f32.mrf.mxu3 }
 0x71b   :  { %v3787_v47 = vadd.f32 %v3780_v18, %v3362_v5  ;;  %v3743_v23 = vpop.f32.mrf.mxu0  ;;  %v3756_v56 = vpop.f32.mrf.mxu1  ;;  %v3786_v43 = vadd.f32 %v3767_v10, %v3333_v34 }
 0x71d   :  { %v6075_v25 = vmul.f32 -1.442695, %v3787_v47 }
 0x71e   :  { %v6606_v4 = vpop.eup %6605 }
 0x71f   :  { %v6608_v32 = vpop.eup %6607  ;;  %v3791_v31 = vadd.f32 1.0, %v6606_v4  ;;  %6609 = vpow2.f32 %v6075_v25 }
 0x720   :  { %v3810_v57 = vadd.f32 1.0, %v6608_v32 }
 0x721   :  { %6611 = vrcp.f32 %v3791_v31  ;;  %v3803_v28 = vand.u32 2147483648, %v3791_v31  ;;  %v3801_v5 = vand.u32 2147483647, %v3791_v31  ;;  %vm3797_vm14 = vweird.f32 %v3791_v31 }
 0x722   :  { %6613 = vrcp.f32 %v3810_v57  ;;  %v3769_v60 = vpop.f32.mrf.mxu2  ;;  %v3782_v14 = vpop.f32.mrf.mxu3  ;;  %v3822_v22 = vand.u32 2147483648, %v3810_v57  ;;  %v3820_v47 = vand.u32 2147483647, %v3810_v57  ;;  %vm3816_vm15 = vweird.f32 %v3810_v57 }
 0x723   :  { %v3804_v10 = vor.u32 1.1754944e-38, %v3803_v28  ;;  %vm3802_vm2 = vcmp.eq.f32.partialorder %v3801_v5, 8.507059e+37 }
 0x724   :  { %v3823_v32 = vor.u32 1.1754944e-38, %v3822_v22  ;;  %vm3821_vm3 = vcmp.eq.f32.partialorder %v3820_v47, 8.507059e+37  ;;  %v7735_v47 = vld [vmem:[#allocation20_spill] sm:$0xff] }
 0x725   :  { %v6610_v7 = vpop.eup %6609 }
 0x726   :  { %v3830_v36 = vadd.f32 1.0, %v6610_v7 }
 0x727   :  { %v6612_v42 = vpop.eup %6611 }
 0x728   :  { %v6614_v26 = vpop.eup %6613  ;;  %v3793_v46 = vmul.f32 %v6612_v42, %v3791_v31  ;;  %6615 = vrcp.f32 %v3830_v36  ;;  %vm3798_vm12 = vweird.f32 %v6612_v42  ;;  %vm3836_vm5 = vweird.f32 %v3830_v36 }
 0x729   :  { %v3812_v48 = vmul.f32 %v6614_v26, %v3810_v57  ;;  %6617 = vtanh.f32 %v3786_v43  ;;  %vm3817_vm13 = vweird.f32 %v6614_v26  ;;  %vm3799_vm0 = vmor %vm3797_vm14, %vm3798_vm12 }
 0x72a   :  { %v3794_v16 = vsub.f32 1.0, %v3793_v46  ;;  %vm3818_vm1 = vmor %vm3816_vm15, %vm3817_vm13 }
 0x72b   :  { %v3813_v40 = vsub.f32 1.0, %v3812_v48 }
 0x72c   :  { %v3795_v2 = vmul.f32 %v6612_v42, %v3794_v16 }
 0x72d   :  { %v3814_v18 = vmul.f32 %v6614_v26, %v3813_v40  ;;  %v3842_v40 = vand.u32 2147483648, %v3830_v36 }
 0x72e   :  { %v6616_v23 = vpop.eup %6615  ;;  %v3796_v56 = vadd.f32 %v6612_v42, %v3795_v2 }
 0x72f   :  { %v3815_v25 = vadd.f32 %v6614_v26, %v3814_v18  ;;  %v3832_v4 = vmul.f32 %v6616_v23, %v3830_v36  ;;  %v6618_v14 = vpop.eup %6617  ;;  %vm3837_vm4 = vweird.f32 %v6616_v23  ;;  %v3843_v22 = vor.u32 1.1754944e-38, %v3842_v40 }
 0x730   :  { %v3800_v60 = vsel %vm3799_vm0, %v6612_v42, %v3796_v56  ;;  %v3840_v42 = vand.u32 2147483647, %v3830_v36  ;;  %vm3838_vm6 = vmor %vm3836_vm5, %vm3837_vm4 }
 0x731   :  { %v3805_v7 = vsel %vm3802_vm2, %v3804_v10, %v3800_v60  ;;  %v3819_v51 = vsel %vm3818_vm1, %v6614_v26, %v3815_v25  ;;  %v3833_v34 = vsub.f32 1.0, %v3832_v4 }
 0x732   :  { %v3824_v43 = vsel %vm3821_vm3, %v3823_v32, %v3819_v51  ;;  %v3847_v46 = vmul.f32 %v6618_v14, %v3805_v7  ;;  %vm3841_vm7 = vcmp.eq.f32.partialorder %v3840_v42, 8.507059e+37  ;;  %v7736_v14 = vld [vmem:[#allocation22_spill] sm:$0xff] }
 0x733   :  { %v3846_v48 = vmul.f32 %v3824_v43, %v7449_v29  ;;  %v3834_v16 = vmul.f32 %v6616_v23, %v3833_v34  ;;  %v7734_v29 = vld [vmem:[#allocation19_spill] sm:$0xff]  ;;  %v3365_v7 = vadd.f32 %v7736_v14, %v7443_v0 }
 0x734   :  { %v3278_v36 = vadd.f32 %v7734_v29, %v7433_v38 }
 0x735   :  { %v7493_v31 = vadd.f32 %v3847_v46, %v3846_v48  ;;  %v3835_v57 = vadd.f32 %v6616_v23, %v3834_v16 }
 0x737   :  { %6619 = vtanh.f32 %v7493_v31  ;;  %v3839_v28 = vsel %vm3838_vm6, %v6616_v23, %v3835_v57  ;;  %v3307_v23 = vadd.f32 %v7735_v47, %v7435_v62 }
 0x738   :  { %v3844_v2 = vsel %vm3841_vm7, %v3843_v22, %v3839_v28 }
 0x73d   :  { %v6620_v26 = vpop.eup %6619 }
 0x73e   :  { %v3850_v5 = vmul.f32 %v6620_v26, %v3844_v2 }
 0x740   :  { %v3855_v18 = vpack.c.bf16 %v3850_v5, %v3850_v5  ;;  %v7737_v5 = vld [vmem:[#allocation21_spill] sm:$0xff] }
 0x742   :  { %3864 = vmatmul.bf16.vlgmr.msra.gmra.mxu0 %v3855_v18  ;;  %3877 = vmatmul.bf16.vlgmr.msra.gmra.mxu1 %v3855_v18 }
 0x743   :  { %3890 = vmatmul.bf16.vlgmr.msra.gmra.mxu2 %v3855_v18  ;;  %3903 = vmatmul.bf16.vlgmr.msra.gmra.mxu3 %v3855_v18  ;;  %v3336_v18 = vadd.f32 %v7737_v5, %v7732_v1 }
 0x744   :  { %4104 = vmatpush.bf16.msra.mxu0 %v7161_v6  ;;  %4117 = vmatpush.bf16.msra.mxu1 %v7163_v61 }
 0x745   :  { %4130 = vmatpush.bf16.msra.mxu2 %v7174_v24  ;;  %4143 = vmatpush.bf16.msra.mxu3 %v7171_v63 }
 0x748   :  { %4105 = vmatpush.bf16.msra.mxu0 %v7181_v35  ;;  %4118 = vmatpush.bf16.msra.mxu1 %v7183_v12 }
 0x749   :  { %4131 = vmatpush.bf16.msra.mxu2 %v7200_v27  ;;  %4144 = vmatpush.bf16.msra.mxu3 %v7185_v44 }
 0x74c   :  { %4106 = vmatpush.bf16.msra.mxu0 %v7190_v39  ;;  %4119 = vmatpush.bf16.msra.mxu1 %v7194_v17 }
 0x74d   :  { %4132 = vmatpush.bf16.msra.mxu2 %v7212_v59  ;;  %4145 = vmatpush.bf16.msra.mxu3 %v7196_v11 }
 0x750   :  { %4107 = vmatpush.bf16.msra.mxu0 %v7203_v21  ;;  %4120 = vmatpush.bf16.msra.mxu1 %v7207_v13 }
 0x751   :  { %4133 = vmatpush.bf16.msra.mxu2 %v7229_v9  ;;  %4146 = vmatpush.bf16.msra.mxu3 %v7209_v45 }
 0x754   :  { %4108 = vmatpush.bf16.msra.mxu0 %v7217_v54  ;;  %4121 = vmatpush.bf16.msra.mxu1 %v7223_v8 }
 0x755   :  { %4134 = vmatpush.bf16.msra.mxu2 %v7244_v30  ;;  %4147 = vmatpush.bf16.msra.mxu3 %v7225_v15 }
 0x758   :  { %4109 = vmatpush.bf16.msra.mxu0 %v7233_v58  ;;  %4122 = vmatpush.bf16.msra.mxu1 %v7237_v41 }
 0x759   :  { %4135 = vmatpush.bf16.msra.mxu2 %v7267_v53  ;;  %4148 = vmatpush.bf16.msra.mxu3 %v7239_v37 }
 0x75c   :  { %4110 = vmatpush.bf16.msra.mxu0 %v7252_v55  ;;  %4123 = vmatpush.bf16.msra.mxu1 %v7261_v33 }
 0x75d   :  { %4136 = vmatpush.bf16.msra.mxu2 %v7286_v19  ;;  %4149 = vmatpush.bf16.msra.mxu3 %v7270_v49 }
 0x760   :  { %4111 = vmatpush.bf16.msra.mxu0 %v7282_v3  ;;  %4124 = vmatpush.bf16.msra.mxu1 %v7284_v50 }
 0x761   :  { %4137 = vmatpush.bf16.msra.mxu2 %v7305_v52  ;;  %4150 = vmatpush.bf16.msra.mxu3 %v7296_v20 }
 0x7bf   :  { %v3865_v56 = vpop.f32.mrf.mxu0  ;;  %v3878_v10 = vpop.f32.mrf.mxu1 }
 0x7c0   :  { %v3908_v25 = vadd.f32 %v3865_v56, %v3278_v36  ;;  %v3909_v4 = vadd.f32 %v3878_v10, %v3307_v23 }
 0x7c2   :  { %v6076_v32 = vmul.f32 -1.442695, %v3908_v25  ;;  %v6077_v60 = vmul.f32 -1.442695, %v3909_v4 }
 0x7c4   :  { %6621 = vpow2.f32 %v6076_v32 }
 0x7c5   :  { %6623 = vpow2.f32 %v6077_v60 }
 0x7c6   :  { %v3891_v51 = vpop.f32.mrf.mxu2  ;;  %v3904_v34 = vpop.f32.mrf.mxu3 }
 0x7c7   :  { %v3911_v43 = vadd.f32 %v3904_v34, %v3365_v7  ;;  %v3867_v46 = vpop.f32.mrf.mxu0  ;;  %v3880_v48 = vpop.f32.mrf.mxu1  ;;  %v3910_v47 = vadd.f32 %v3891_v51, %v3336_v18 }
 0x7c9   :  { %v6078_v16 = vmul.f32 -1.442695, %v3911_v43 }
 0x7ca   :  { %v6622_v57 = vpop.eup %6621 }
 0x7cb   :  { %v6624_v40 = vpop.eup %6623  ;;  %v3915_v42 = vadd.f32 1.0, %v6622_v57  ;;  %6625 = vpow2.f32 %v6078_v16 }
 0x7cc   :  { %v3934_v28 = vadd.f32 1.0, %v6624_v40 }
 0x7cd   :  { %6627 = vrcp.f32 %v3915_v42  ;;  %v3927_v32 = vand.u32 2147483648, %v3915_v42  ;;  %v3925_v7 = vand.u32 2147483647, %v3915_v42  ;;  %vm3921_vm10 = vweird.f32 %v3915_v42 }
 0x7ce   :  { %6629 = vrcp.f32 %v3934_v28  ;;  %v3893_v22 = vpop.f32.mrf.mxu2  ;;  %v3906_v26 = vpop.f32.mrf.mxu3  ;;  %v3946_v60 = vand.u32 2147483648, %v3934_v28  ;;  %v3944_v43 = vand.u32 2147483647, %v3934_v28  ;;  %vm3940_vm11 = vweird.f32 %v3934_v28 }
 0x7cf   :  { %v3928_v51 = vor.u32 1.1754944e-38, %v3927_v32  ;;  %vm3926_vm14 = vcmp.eq.f32.partialorder %v3925_v7, 8.507059e+37 }
 0x7d0   :  { %v3947_v40 = vor.u32 1.1754944e-38, %v3946_v60  ;;  %vm3945_vm15 = vcmp.eq.f32.partialorder %v3944_v43, 8.507059e+37  ;;  %v7739_v43 = vld [vmem:[#allocation24_spill] sm:$0xff] }
 0x7d1   :  { %v6626_v2 = vpop.eup %6625 }
 0x7d2   :  { %v3954_v29 = vadd.f32 1.0, %v6626_v2 }
 0x7d3   :  { %v6628_v36 = vpop.eup %6627 }
 0x7d4   :  { %v6630_v23 = vpop.eup %6629  ;;  %v3917_v56 = vmul.f32 %v6628_v36, %v3915_v42  ;;  %6631 = vrcp.f32 %v3954_v29  ;;  %vm3922_vm8 = vweird.f32 %v6628_v36  ;;  %vm3960_vm1 = vweird.f32 %v3954_v29 }
 0x7d5   :  { %v3936_v10 = vmul.f32 %v6630_v23, %v3934_v28  ;;  %6633 = vtanh.f32 %v3910_v47  ;;  %vm3941_vm9 = vweird.f32 %v6630_v23  ;;  %vm3923_vm12 = vmor %vm3921_vm10, %vm3922_vm8 }
 0x7d6   :  { %v3918_v25 = vsub.f32 1.0, %v3917_v56  ;;  %vm3942_vm13 = vmor %vm3940_vm11, %vm3941_vm9 }
 0x7d7   :  { %v3937_v4 = vsub.f32 1.0, %v3936_v10 }
 0x7d8   :  { %v3919_v14 = vmul.f32 %v6628_v36, %v3918_v25 }
 0x7d9   :  { %v3938_v34 = vmul.f32 %v6630_v23, %v3937_v4  ;;  %v3966_v4 = vand.u32 2147483648, %v3954_v29 }
 0x7da   :  { %v6632_v46 = vpop.eup %6631  ;;  %v3920_v48 = vadd.f32 %v6628_v36, %v3919_v14 }
 0x7db   :  { %v3939_v16 = vadd.f32 %v6630_v23, %v3938_v34  ;;  %v3956_v57 = vmul.f32 %v6632_v46, %v3954_v29  ;;  %v6634_v26 = vpop.eup %6633  ;;  %vm3961_vm0 = vweird.f32 %v6632_v46  ;;  %v3967_v60 = vor.u32 1.1754944e-38, %v3966_v4 }
 0x7dc   :  { %v3924_v22 = vsel %vm3923_vm12, %v6628_v36, %v3920_v48  ;;  %v3964_v36 = vand.u32 2147483647, %v3954_v29  ;;  %vm3962_vm2 = vmor %vm3960_vm1, %vm3961_vm0 }
 0x7dd   :  { %v3929_v2 = vsel %vm3926_vm14, %v3928_v51, %v3924_v22  ;;  %v3943_v5 = vsel %vm3942_vm13, %v6630_v23, %v3939_v16  ;;  %v3957_v18 = vsub.f32 1.0, %v3956_v57 }
 0x7de   :  { %v3948_v47 = vsel %vm3945_vm15, %v3947_v40, %v3943_v5  ;;  %v3971_v56 = vmul.f32 %v6634_v26, %v3929_v2  ;;  %vm3965_vm3 = vcmp.eq.f32.partialorder %v3964_v36, 8.507059e+37  ;;  %v7740_v26 = vld [vmem:[#allocation26_spill] sm:$0xff] }
 0x7df   :  { %v3970_v10 = vmul.f32 %v3948_v47, %v7493_v31  ;;  %v3958_v25 = vmul.f32 %v6632_v46, %v3957_v18  ;;  %v7738_v31 = vld [vmem:[#allocation23_spill] sm:$0xff]  ;;  %v3367_v2 = vadd.f32 %v7740_v26, %v7443_v0 }
 0x7e0   :  { %v3280_v29 = vadd.f32 %v7738_v31, %v7433_v38 }
 0x7e1   :  { %v7537_v42 = vadd.f32 %v3971_v56, %v3970_v10  ;;  %v3959_v28 = vadd.f32 %v6632_v46, %v3958_v25 }
 0x7e3   :  { %6635 = vtanh.f32 %v7537_v42  ;;  %v3963_v32 = vsel %vm3962_vm2, %v6632_v46, %v3959_v28  ;;  %v3309_v46 = vadd.f32 %v7739_v43, %v7435_v62 }
 0x7e4   :  { %v3968_v14 = vsel %vm3965_vm3, %v3967_v60, %v3963_v32 }
 0x7e9   :  { %v6636_v23 = vpop.eup %6635 }
 0x7ea   :  { %v3974_v7 = vmul.f32 %v6636_v23, %v3968_v14 }
 0x7ec   :  { %v3979_v34 = vpack.c.bf16 %v3974_v7, %v3974_v7  ;;  %v7741_v7 = vld [vmem:[#allocation25_spill] sm:$0xff] }
 0x7ee   :  { %3988 = vmatmul.bf16.vlgmr.msrb.gmra.mxu0 %v3979_v34  ;;  %4001 = vmatmul.bf16.vlgmr.msrb.gmra.mxu1 %v3979_v34 }
 0x7ef   :  { %4014 = vmatmul.bf16.vlgmr.msrb.gmra.mxu2 %v3979_v34  ;;  %4027 = vmatmul.bf16.vlgmr.msrb.gmra.mxu3 %v3979_v34  ;;  %v3338_v34 = vadd.f32 %v7741_v7, %v7732_v1 }
 0x7f0   :  { %4228 = vmatpush.bf16.msrb.mxu0 %v7161_v6  ;;  %4241 = vmatpush.bf16.msrb.mxu1 %v7163_v61 }
 0x7f1   :  { %4254 = vmatpush.bf16.msrb.mxu2 %v7174_v24  ;;  %4267 = vmatpush.bf16.msrb.mxu3 %v7171_v63 }
 0x7f4   :  { %4229 = vmatpush.bf16.msrb.mxu0 %v7181_v35  ;;  %4242 = vmatpush.bf16.msrb.mxu1 %v7183_v12 }
 0x7f5   :  { %4255 = vmatpush.bf16.msrb.mxu2 %v7200_v27  ;;  %4268 = vmatpush.bf16.msrb.mxu3 %v7185_v44 }
 0x7f8   :  { %4230 = vmatpush.bf16.msrb.mxu0 %v7190_v39  ;;  %4243 = vmatpush.bf16.msrb.mxu1 %v7194_v17 }
 0x7f9   :  { %4256 = vmatpush.bf16.msrb.mxu2 %v7212_v59  ;;  %4269 = vmatpush.bf16.msrb.mxu3 %v7196_v11 }
 0x7fc   :  { %4231 = vmatpush.bf16.msrb.mxu0 %v7203_v21  ;;  %4244 = vmatpush.bf16.msrb.mxu1 %v7207_v13 }
 0x7fd   :  { %4257 = vmatpush.bf16.msrb.mxu2 %v7229_v9  ;;  %4270 = vmatpush.bf16.msrb.mxu3 %v7209_v45 }
 0x800   :  { %4232 = vmatpush.bf16.msrb.mxu0 %v7217_v54  ;;  %4245 = vmatpush.bf16.msrb.mxu1 %v7223_v8 }
 0x801   :  { %4258 = vmatpush.bf16.msrb.mxu2 %v7244_v30  ;;  %4271 = vmatpush.bf16.msrb.mxu3 %v7225_v15 }
 0x804   :  { %4233 = vmatpush.bf16.msrb.mxu0 %v7233_v58  ;;  %4246 = vmatpush.bf16.msrb.mxu1 %v7237_v41 }
 0x805   :  { %4259 = vmatpush.bf16.msrb.mxu2 %v7267_v53  ;;  %4272 = vmatpush.bf16.msrb.mxu3 %v7239_v37 }
 0x808   :  { %4234 = vmatpush.bf16.msrb.mxu0 %v7252_v55  ;;  %4247 = vmatpush.bf16.msrb.mxu1 %v7261_v33 }
 0x809   :  { %4260 = vmatpush.bf16.msrb.mxu2 %v7286_v19  ;;  %4273 = vmatpush.bf16.msrb.mxu3 %v7270_v49 }
 0x80c   :  { %4235 = vmatpush.bf16.msrb.mxu0 %v7282_v3  ;;  %4248 = vmatpush.bf16.msrb.mxu1 %v7284_v50 }
 0x80d   :  { %4261 = vmatpush.bf16.msrb.mxu2 %v7305_v52  ;;  %4274 = vmatpush.bf16.msrb.mxu3 %v7296_v20 }
 0x86b   :  { %v3989_v48 = vpop.f32.mrf.mxu0  ;;  %v4002_v51 = vpop.f32.mrf.mxu1 }
 0x86c   :  { %v4032_v16 = vadd.f32 %v3989_v48, %v3280_v29  ;;  %v4033_v57 = vadd.f32 %v4002_v51, %v3309_v46 }
 0x86e   :  { %v6079_v40 = vmul.f32 -1.442695, %v4032_v16  ;;  %v6080_v22 = vmul.f32 -1.442695, %v4033_v57 }
 0x870   :  { %6637 = vpow2.f32 %v6079_v40 }
 0x871   :  { %6639 = vpow2.f32 %v6080_v22 }
 0x872   :  { %v4015_v5 = vpop.f32.mrf.mxu2  ;;  %v4028_v18 = vpop.f32.mrf.mxu3 }
 0x873   :  { %v4035_v47 = vadd.f32 %v4028_v18, %v3367_v2  ;;  %v3991_v56 = vpop.f32.mrf.mxu0  ;;  %v4004_v10 = vpop.f32.mrf.mxu1  ;;  %v4034_v43 = vadd.f32 %v4015_v5, %v3338_v34 }
 0x875   :  { %v6081_v25 = vmul.f32 -1.442695, %v4035_v47 }
 0x876   :  { %v6638_v28 = vpop.eup %6637 }
 0x877   :  { %v6640_v4 = vpop.eup %6639  ;;  %v4039_v36 = vadd.f32 1.0, %v6638_v28  ;;  %6641 = vpow2.f32 %v6081_v25 }
 0x878   :  { %v4058_v32 = vadd.f32 1.0, %v6640_v4 }
 0x879   :  { %6643 = vrcp.f32 %v4039_v36  ;;  %v4051_v40 = vand.u32 2147483648, %v4039_v36  ;;  %v4049_v2 = vand.u32 2147483647, %v4039_v36  ;;  %vm4045_vm6 = vweird.f32 %v4039_v36 }
 0x87a   :  { %6645 = vrcp.f32 %v4058_v32  ;;  %v4017_v60 = vpop.f32.mrf.mxu2  ;;  %v4030_v23 = vpop.f32.mrf.mxu3  ;;  %v4070_v22 = vand.u32 2147483648, %v4058_v32  ;;  %v4068_v47 = vand.u32 2147483647, %v4058_v32  ;;  %vm4064_vm7 = vweird.f32 %v4058_v32 }
 0x87b   :  { %v4052_v5 = vor.u32 1.1754944e-38, %v4051_v40  ;;  %vm4050_vm10 = vcmp.eq.f32.partialorder %v4049_v2, 8.507059e+37 }
 0x87c   :  { %v4071_v4 = vor.u32 1.1754944e-38, %v4070_v22  ;;  %vm4069_vm11 = vcmp.eq.f32.partialorder %v4068_v47, 8.507059e+37  ;;  %v7743_v47 = vld [vmem:[#allocation28_spill] sm:$0xff] }
 0x87d   :  { %v6642_v14 = vpop.eup %6641 }
 0x87e   :  { %v4078_v31 = vadd.f32 1.0, %v6642_v14 }
 0x87f   :  { %v6644_v29 = vpop.eup %6643 }
 0x880   :  { %v6646_v46 = vpop.eup %6645  ;;  %v4041_v48 = vmul.f32 %v6644_v29, %v4039_v36  ;;  %6647 = vrcp.f32 %v4078_v31  ;;  %vm4046_vm4 = vweird.f32 %v6644_v29  ;;  %vm4084_vm13 = vweird.f32 %v4078_v31 }
 0x881   :  { %v4060_v51 = vmul.f32 %v6646_v46, %v4058_v32  ;;  %6649 = vtanh.f32 %v4034_v43  ;;  %vm4065_vm5 = vweird.f32 %v6646_v46  ;;  %vm4047_vm8 = vmor %vm4045_vm6, %vm4046_vm4 }
 0x882   :  { %v4042_v16 = vsub.f32 1.0, %v4041_v48  ;;  %vm4066_vm9 = vmor %vm4064_vm7, %vm4065_vm5 }
 0x883   :  { %v4061_v57 = vsub.f32 1.0, %v4060_v51 }
 0x884   :  { %v4043_v26 = vmul.f32 %v6644_v29, %v4042_v16 }
 0x885   :  { %v4062_v18 = vmul.f32 %v6646_v46, %v4061_v57  ;;  %v4090_v57 = vand.u32 2147483648, %v4078_v31 }
 0x886   :  { %v6648_v56 = vpop.eup %6647  ;;  %v4044_v10 = vadd.f32 %v6644_v29, %v4043_v26 }
 0x887   :  { %v4063_v25 = vadd.f32 %v6646_v46, %v4062_v18  ;;  %v4080_v28 = vmul.f32 %v6648_v56, %v4078_v31  ;;  %v6650_v23 = vpop.eup %6649  ;;  %vm4085_vm12 = vweird.f32 %v6648_v56  ;;  %v4091_v22 = vor.u32 1.1754944e-38, %v4090_v57 }
 0x888   :  { %v4048_v60 = vsel %vm4047_vm8, %v6644_v29, %v4044_v10  ;;  %v4088_v29 = vand.u32 2147483647, %v4078_v31  ;;  %vm4086_vm14 = vmor %vm4084_vm13, %vm4085_vm12 }
 0x889   :  { %v4053_v14 = vsel %vm4050_vm10, %v4052_v5, %v4048_v60  ;;  %v4067_v7 = vsel %vm4066_vm9, %v6646_v46, %v4063_v25  ;;  %v4081_v34 = vsub.f32 1.0, %v4080_v28 }
 0x88a   :  { %v4072_v43 = vsel %vm4069_vm11, %v4071_v4, %v4067_v7  ;;  %v4095_v48 = vmul.f32 %v6650_v23, %v4053_v14  ;;  %vm4089_vm15 = vcmp.eq.f32.partialorder %v4088_v29, 8.507059e+37  ;;  %v7744_v23 = vld [vmem:[#allocation30_spill] sm:$0xff] }
 0x88b   :  { %v4094_v51 = vmul.f32 %v4072_v43, %v7537_v42  ;;  %v4082_v16 = vmul.f32 %v6648_v56, %v4081_v34  ;;  %v7742_v42 = vld [vmem:[#allocation27_spill] sm:$0xff]  ;;  %v3370_v14 = vadd.f32 %v7744_v23, %v7443_v0 }
 0x88c   :  { %v3283_v31 = vadd.f32 %v7742_v42, %v7433_v38 }
 0x88d   :  { %v7581_v36 = vadd.f32 %v4095_v48, %v4094_v51  ;;  %v4083_v32 = vadd.f32 %v6648_v56, %v4082_v16 }
 0x88f   :  { %6651 = vtanh.f32 %v7581_v36  ;;  %v4087_v40 = vsel %vm4086_vm14, %v6648_v56, %v4083_v32  ;;  %v3312_v56 = vadd.f32 %v7743_v47, %v7435_v62 }
 0x890   :  { %v4092_v26 = vsel %vm4089_vm15, %v4091_v22, %v4087_v40 }
 0x895   :  { %v6652_v46 = vpop.eup %6651 }
 0x896   :  { %v4098_v2 = vmul.f32 %v6652_v46, %v4092_v26 }
 0x898   :  { %v4103_v18 = vpack.c.bf16 %v4098_v2, %v4098_v2  ;;  %v7745_v2 = vld [vmem:[#allocation29_spill] sm:$0xff] }
 0x89a   :  { %4112 = vmatmul.bf16.vlgmr.msra.gmra.mxu0 %v4103_v18  ;;  %4125 = vmatmul.bf16.vlgmr.msra.gmra.mxu1 %v4103_v18 }
 0x89b   :  { %4138 = vmatmul.bf16.vlgmr.msra.gmra.mxu2 %v4103_v18  ;;  %4151 = vmatmul.bf16.vlgmr.msra.gmra.mxu3 %v4103_v18  ;;  %v3341_v18 = vadd.f32 %v7745_v2, %v7732_v1 }
 0x89c   :  { %4352 = vmatpush.bf16.msra.mxu0 %v7161_v6  ;;  %4365 = vmatpush.bf16.msra.mxu1 %v7163_v61 }
 0x89d   :  { %4378 = vmatpush.bf16.msra.mxu2 %v7174_v24  ;;  %4391 = vmatpush.bf16.msra.mxu3 %v7171_v63 }
 0x8a0   :  { %4353 = vmatpush.bf16.msra.mxu0 %v7181_v35  ;;  %4366 = vmatpush.bf16.msra.mxu1 %v7183_v12 }
 0x8a1   :  { %4379 = vmatpush.bf16.msra.mxu2 %v7200_v27  ;;  %4392 = vmatpush.bf16.msra.mxu3 %v7185_v44 }
 0x8a4   :  { %4354 = vmatpush.bf16.msra.mxu0 %v7190_v39  ;;  %4367 = vmatpush.bf16.msra.mxu1 %v7194_v17 }
 0x8a5   :  { %4380 = vmatpush.bf16.msra.mxu2 %v7212_v59  ;;  %4393 = vmatpush.bf16.msra.mxu3 %v7196_v11 }
 0x8a8   :  { %4355 = vmatpush.bf16.msra.mxu0 %v7203_v21  ;;  %4368 = vmatpush.bf16.msra.mxu1 %v7207_v13 }
 0x8a9   :  { %4381 = vmatpush.bf16.msra.mxu2 %v7229_v9  ;;  %4394 = vmatpush.bf16.msra.mxu3 %v7209_v45 }
 0x8ac   :  { %4356 = vmatpush.bf16.msra.mxu0 %v7217_v54  ;;  %4369 = vmatpush.bf16.msra.mxu1 %v7223_v8 }
 0x8ad   :  { %4382 = vmatpush.bf16.msra.mxu2 %v7244_v30  ;;  %4395 = vmatpush.bf16.msra.mxu3 %v7225_v15 }
 0x8b0   :  { %4357 = vmatpush.bf16.msra.mxu0 %v7233_v58  ;;  %4370 = vmatpush.bf16.msra.mxu1 %v7237_v41 }
 0x8b1   :  { %4383 = vmatpush.bf16.msra.mxu2 %v7267_v53  ;;  %4396 = vmatpush.bf16.msra.mxu3 %v7239_v37 }
 0x8b4   :  { %4358 = vmatpush.bf16.msra.mxu0 %v7252_v55  ;;  %4371 = vmatpush.bf16.msra.mxu1 %v7261_v33 }
 0x8b5   :  { %4384 = vmatpush.bf16.msra.mxu2 %v7286_v19  ;;  %4397 = vmatpush.bf16.msra.mxu3 %v7270_v49 }
 0x8b8   :  { %4359 = vmatpush.bf16.msra.mxu0 %v7282_v3  ;;  %4372 = vmatpush.bf16.msra.mxu1 %v7284_v50 }
 0x8b9   :  { %4385 = vmatpush.bf16.msra.mxu2 %v7305_v52  ;;  %4398 = vmatpush.bf16.msra.mxu3 %v7296_v20 }
 0x917   :  { %v4113_v10 = vpop.f32.mrf.mxu0  ;;  %v4126_v5 = vpop.f32.mrf.mxu1 }
 0x918   :  { %v4156_v25 = vadd.f32 %v4113_v10, %v3283_v31  ;;  %v4157_v28 = vadd.f32 %v4126_v5, %v3312_v56 }
 0x91a   :  { %v6082_v4 = vmul.f32 -1.442695, %v4156_v25  ;;  %v6083_v60 = vmul.f32 -1.442695, %v4157_v28 }
 0x91c   :  { %6653 = vpow2.f32 %v6082_v4 }
 0x91d   :  { %6655 = vpow2.f32 %v6083_v60 }
 0x91e   :  { %v4139_v7 = vpop.f32.mrf.mxu2  ;;  %v4152_v34 = vpop.f32.mrf.mxu3 }
 0x91f   :  { %v4159_v43 = vadd.f32 %v4152_v34, %v3370_v14  ;;  %v4115_v48 = vpop.f32.mrf.mxu0  ;;  %v4128_v51 = vpop.f32.mrf.mxu1  ;;  %v4158_v47 = vadd.f32 %v4139_v7, %v3341_v18 }
 0x921   :  { %v6084_v16 = vmul.f32 -1.442695, %v4159_v43 }
 0x922   :  { %v6654_v32 = vpop.eup %6653 }
 0x923   :  { %v6656_v57 = vpop.eup %6655  ;;  %v4163_v29 = vadd.f32 1.0, %v6654_v32  ;;  %6657 = vpow2.f32 %v6084_v16 }
 0x924   :  { %v4182_v40 = vadd.f32 1.0, %v6656_v57 }
 0x925   :  { %6659 = vrcp.f32 %v4163_v29  ;;  %v4175_v4 = vand.u32 2147483648, %v4163_v29  ;;  %v4173_v14 = vand.u32 2147483647, %v4163_v29  ;;  %vm4169_vm2 = vweird.f32 %v4163_v29 }
 0x926   :  { %6661 = vrcp.f32 %v4182_v40  ;;  %v4141_v22 = vpop.f32.mrf.mxu2  ;;  %v4154_v46 = vpop.f32.mrf.mxu3  ;;  %v4194_v60 = vand.u32 2147483648, %v4182_v40  ;;  %v4192_v43 = vand.u32 2147483647, %v4182_v40  ;;  %vm4188_vm3 = vweird.f32 %v4182_v40 }
 0x927   :  { %v4176_v7 = vor.u32 1.1754944e-38, %v4175_v4  ;;  %vm4174_vm6 = vcmp.eq.f32.partialorder %v4173_v14, 8.507059e+37 }
 0x928   :  { %v4195_v57 = vor.u32 1.1754944e-38, %v4194_v60  ;;  %vm4193_vm7 = vcmp.eq.f32.partialorder %v4192_v43, 8.507059e+37 }
 0x929   :  { %v6658_v26 = vpop.eup %6657 }
 0x92a   :  { %v4202_v42 = vadd.f32 1.0, %v6658_v26 }
 0x92b   :  { %v6660_v31 = vpop.eup %6659 }
 0x92c   :  { %v6662_v56 = vpop.eup %6661  ;;  %v4165_v10 = vmul.f32 %v6660_v31, %v4163_v29  ;;  %6663 = vrcp.f32 %v4202_v42  ;;  %vm4170_vm0 = vweird.f32 %v6660_v31  ;;  %vm4208_vm9 = vweird.f32 %v4202_v42 }
 0x92d   :  { %v4184_v5 = vmul.f32 %v6662_v56, %v4182_v40  ;;  %6665 = vtanh.f32 %v4158_v47  ;;  %vm4189_vm1 = vweird.f32 %v6662_v56  ;;  %vm4171_vm4 = vmor %vm4169_vm2, %vm4170_vm0 }
 0x92e   :  { %v4166_v25 = vsub.f32 1.0, %v4165_v10  ;;  %vm4190_vm5 = vmor %vm4188_vm3, %vm4189_vm1 }
 0x92f   :  { %v4185_v28 = vsub.f32 1.0, %v4184_v5 }
 0x930   :  { %v4167_v23 = vmul.f32 %v6660_v31, %v4166_v25 }
 0x931   :  { %v4186_v34 = vmul.f32 %v6662_v56, %v4185_v28  ;;  %v4214_v28 = vand.u32 2147483648, %v4202_v42 }
 0x932   :  { %v6664_v48 = vpop.eup %6663  ;;  %v4168_v51 = vadd.f32 %v6660_v31, %v4167_v23 }
 0x933   :  { %v4187_v16 = vadd.f32 %v6662_v56, %v4186_v34  ;;  %v4204_v32 = vmul.f32 %v6664_v48, %v4202_v42  ;;  %v6666_v46 = vpop.eup %6665  ;;  %vm4209_vm8 = vweird.f32 %v6664_v48  ;;  %v4215_v60 = vor.u32 1.1754944e-38, %v4214_v28 }
 0x934   :  { %v4172_v22 = vsel %vm4171_vm4, %v6660_v31, %v4168_v51  ;;  %v4212_v31 = vand.u32 2147483647, %v4202_v42  ;;  %vm4210_vm10 = vmor %vm4208_vm9, %vm4209_vm8 }
 0x935   :  { %v4177_v26 = vsel %vm4174_vm6, %v4176_v7, %v4172_v22  ;;  %v4191_v2 = vsel %vm4190_vm5, %v6662_v56, %v4187_v16  ;;  %v4205_v18 = vsub.f32 1.0, %v4204_v32 }
 0x936   :  { %v4196_v47 = vsel %vm4193_vm7, %v4195_v57, %v4191_v2  ;;  %v4219_v10 = vmul.f32 %v6666_v46, %v4177_v26  ;;  %vm4213_vm11 = vcmp.eq.f32.partialorder %v4212_v31, 8.507059e+37 }
 0x937   :  { %v4218_v5 = vmul.f32 %v4196_v47, %v7581_v36  ;;  %v4206_v25 = vmul.f32 %v6664_v48, %v4205_v18 }
 0x939   :  { %v7625_v29 = vadd.f32 %v4219_v10, %v4218_v5  ;;  %v4207_v40 = vadd.f32 %v6664_v48, %v4206_v25 }
 0x93b   :  { %6667 = vtanh.f32 %v7625_v29  ;;  %v4211_v4 = vsel %vm4210_vm10, %v6664_v48, %v4207_v40 }
 0x93c   :  { %v4216_v23 = vsel %vm4213_vm11, %v4215_v60, %v4211_v4 }
 0x941   :  { %v6668_v56 = vpop.eup %6667 }
 0x942   :  { %v4222_v14 = vmul.f32 %v6668_v56, %v4216_v23 }
 0x944   :  { %v4227_v34 = vpack.c.bf16 %v4222_v14, %v4222_v14 }
 0x946   :  { %4236 = vmatmul.bf16.vlgmr.msrb.gmra.mxu0 %v4227_v34  ;;  %4249 = vmatmul.bf16.vlgmr.msrb.gmra.mxu1 %v4227_v34 }
 0x947   :  { %4262 = vmatmul.bf16.vlgmr.msrb.gmra.mxu2 %v4227_v34  ;;  %4275 = vmatmul.bf16.vlgmr.msrb.gmra.mxu3 %v4227_v34 }
 0x948   :  { %4476 = vmatpush.bf16.msrb.mxu0 %v7161_v6  ;;  %4489 = vmatpush.bf16.msrb.mxu1 %v7163_v61  ;;  %v7746_v6 = vld [vmem:[#allocation31_spill] sm:$0xff] }
 0x949   :  { %4502 = vmatpush.bf16.msrb.mxu2 %v7174_v24  ;;  %4515 = vmatpush.bf16.msrb.mxu3 %v7171_v63  ;;  %v3285_v61 = vadd.f32 %v7746_v6, %v7433_v38  ;;  %v7747_v63 = vld [vmem:[#allocation32_spill] sm:$0xff] }
 0x94a   :  { %v3314_v24 = vadd.f32 %v7747_v63, %v7435_v62 }
 0x94c   :  { %4477 = vmatpush.bf16.msrb.mxu0 %v7181_v35  ;;  %4490 = vmatpush.bf16.msrb.mxu1 %v7183_v12 }
 0x94d   :  { %4503 = vmatpush.bf16.msrb.mxu2 %v7200_v27  ;;  %4516 = vmatpush.bf16.msrb.mxu3 %v7185_v44  ;;  %v7748_v27 = vld [vmem:[#allocation34_spill] sm:$0xff] }
 0x950   :  { %4478 = vmatpush.bf16.msrb.mxu0 %v7190_v39  ;;  %4491 = vmatpush.bf16.msrb.mxu1 %v7194_v17 }
 0x951   :  { %4504 = vmatpush.bf16.msrb.mxu2 %v7212_v59  ;;  %4517 = vmatpush.bf16.msrb.mxu3 %v7196_v11 }
 0x954   :  { %4479 = vmatpush.bf16.msrb.mxu0 %v7203_v21  ;;  %4492 = vmatpush.bf16.msrb.mxu1 %v7207_v13  ;;  %v3372_v21 = vadd.f32 %v7748_v27, %v7443_v0 }
 0x955   :  { %4505 = vmatpush.bf16.msrb.mxu2 %v7229_v9  ;;  %4518 = vmatpush.bf16.msrb.mxu3 %v7209_v45 }
 0x958   :  { %4480 = vmatpush.bf16.msrb.mxu0 %v7217_v54  ;;  %4493 = vmatpush.bf16.msrb.mxu1 %v7223_v8 }
 0x959   :  { %4506 = vmatpush.bf16.msrb.mxu2 %v7244_v30  ;;  %4519 = vmatpush.bf16.msrb.mxu3 %v7225_v15 }
 0x95c   :  { %4481 = vmatpush.bf16.msrb.mxu0 %v7233_v58  ;;  %4494 = vmatpush.bf16.msrb.mxu1 %v7237_v41 }
 0x95d   :  { %4507 = vmatpush.bf16.msrb.mxu2 %v7267_v53  ;;  %4520 = vmatpush.bf16.msrb.mxu3 %v7239_v37  ;;  %v7749_v53 = vld [vmem:[#allocation33_spill] sm:$0xff] }
 0x960   :  { %4482 = vmatpush.bf16.msrb.mxu0 %v7252_v55  ;;  %4495 = vmatpush.bf16.msrb.mxu1 %v7261_v33 }
 0x961   :  { %4508 = vmatpush.bf16.msrb.mxu2 %v7286_v19  ;;  %4521 = vmatpush.bf16.msrb.mxu3 %v7270_v49  ;;  %v3343_v49 = vadd.f32 %v7749_v53, %v7732_v1 }
 0x964   :  { %4483 = vmatpush.bf16.msrb.mxu0 %v7282_v3  ;;  %4496 = vmatpush.bf16.msrb.mxu1 %v7284_v50 }
 0x965   :  { %4509 = vmatpush.bf16.msrb.mxu2 %v7305_v52  ;;  %4522 = vmatpush.bf16.msrb.mxu3 %v7296_v20 }
 0x9c3   :  { %v4237_v35 = vpop.f32.mrf.mxu0  ;;  %v4250_v12 = vpop.f32.mrf.mxu1 }
 0x9c4   :  { %v4280_v44 = vadd.f32 %v4237_v35, %v3285_v61  ;;  %v4281_v39 = vadd.f32 %v4250_v12, %v3314_v24 }
 0x9c6   :  { %v6085_v17 = vmul.f32 -1.442695, %v4280_v44  ;;  %v6086_v11 = vmul.f32 -1.442695, %v4281_v39 }
 0x9c8   :  { %6669 = vpow2.f32 %v6085_v17  ;;  %v7751_v17 = vld [vmem:[#allocation36_spill] sm:$0xff] }
 0x9c9   :  { %6671 = vpow2.f32 %v6086_v11  ;;  %v3317_v11 = vadd.f32 %v7751_v17, %v7435_v62 }
 0x9ca   :  { %v4263_v13 = vpop.f32.mrf.mxu2  ;;  %v4276_v45 = vpop.f32.mrf.mxu3 }
 0x9cb   :  { %v4283_v59 = vadd.f32 %v4276_v45, %v3372_v21  ;;  %v4239_v54 = vpop.f32.mrf.mxu0  ;;  %v4252_v8 = vpop.f32.mrf.mxu1  ;;  %v4282_v19 = vadd.f32 %v4263_v13, %v3343_v49 }
 0x9cc   :  { %v7752_v8 = vld [vmem:[#allocation38_spill] sm:$0xff] }
 0x9cd   :  { %v6087_v15 = vmul.f32 -1.442695, %v4283_v59 }
 0x9ce   :  { %v6670_v9 = vpop.eup %6669 }
 0x9cf   :  { %v6672_v58 = vpop.eup %6671  ;;  %v4287_v41 = vadd.f32 1.0, %v6670_v9  ;;  %6673 = vpow2.f32 %v6087_v15  ;;  %v3375_v15 = vadd.f32 %v7752_v8, %v7443_v0 }
 0x9d0   :  { %v4306_v37 = vadd.f32 1.0, %v6672_v58 }
 0x9d1   :  { %6675 = vrcp.f32 %v4287_v41  ;;  %v4299_v48 = vand.u32 2147483648, %v4287_v41  ;;  %v4297_v16 = vand.u32 2147483647, %v4287_v41  ;;  %vm4293_vm14 = vweird.f32 %v4287_v41 }
 0x9d2   :  { %6677 = vrcp.f32 %v4306_v37  ;;  %v4265_v30 = vpop.f32.mrf.mxu2  ;;  %v4278_v55 = vpop.f32.mrf.mxu3  ;;  %v4318_v51 = vand.u32 2147483648, %v4306_v37  ;;  %v4316_v57 = vand.u32 2147483647, %v4306_v37  ;;  %vm4312_vm15 = vweird.f32 %v4306_v37 }
 0x9d3   :  { %v4300_v26 = vor.u32 1.1754944e-38, %v4299_v48  ;;  %vm4298_vm2 = vcmp.eq.f32.partialorder %v4297_v16, 8.507059e+37 }
 0x9d4   :  { %v4319_v47 = vor.u32 1.1754944e-38, %v4318_v51  ;;  %vm4317_vm3 = vcmp.eq.f32.partialorder %v4316_v57, 8.507059e+37 }
 0x9d5   :  { %v6674_v33 = vpop.eup %6673 }
 0x9d6   :  { %v4326_v3 = vadd.f32 1.0, %v6674_v33 }
 0x9d7   :  { %v6676_v50 = vpop.eup %6675 }
 0x9d8   :  { %v6678_v20 = vpop.eup %6677  ;;  %v4289_v52 = vmul.f32 %v6676_v50, %v4287_v41  ;;  %6679 = vrcp.f32 %v4326_v3  ;;  %vm4294_vm12 = vweird.f32 %v6676_v50  ;;  %v4338_v34 = vand.u32 2147483648, %v4326_v3 }
 0x9d9   :  { %v4308_v36 = vmul.f32 %v6678_v20, %v4306_v37  ;;  %6681 = vtanh.f32 %v4282_v19  ;;  %vm4313_vm13 = vweird.f32 %v6678_v20  ;;  %vm4295_vm0 = vmor %vm4293_vm14, %vm4294_vm12  ;;  %vm4332_vm5 = vweird.f32 %v4326_v3 }
 0x9da   :  { %v4290_v42 = vsub.f32 1.0, %v4289_v52  ;;  %vm4314_vm1 = vmor %vm4312_vm15, %vm4313_vm13  ;;  %v4336_v6 = vand.u32 2147483647, %v4326_v3  ;;  %v4339_v63 = vor.u32 1.1754944e-38, %v4338_v34  ;;  %v7753_v52 = vld [vmem:[#allocation37_spill] sm:$0xff] }
 0x9db   :  { %v4309_v43 = vsub.f32 1.0, %v4308_v36  ;;  %v3346_v36 = vadd.f32 %v7753_v52, %v7732_v1 }
 0x9dc   :  { %v4291_v7 = vmul.f32 %v6676_v50, %v4290_v42  ;;  %vm4337_vm7 = vcmp.eq.f32.partialorder %v4336_v6, 8.507059e+37 }
 0x9dd   :  { %v4310_v32 = vmul.f32 %v6678_v20, %v4309_v43 }
 0x9de   :  { %v6680_v22 = vpop.eup %6679  ;;  %v4292_v46 = vadd.f32 %v6676_v50, %v4291_v7 }
 0x9df   :  { %v4311_v2 = vadd.f32 %v6678_v20, %v4310_v32  ;;  %v4328_v18 = vmul.f32 %v6680_v22, %v4326_v3  ;;  %v6682_v5 = vpop.eup %6681  ;;  %vm4333_vm4 = vweird.f32 %v6680_v22 }
 0x9e0   :  { %v4296_v10 = vsel %vm4295_vm0, %v6676_v50, %v4292_v46  ;;  %vm4334_vm6 = vmor %vm4332_vm5, %vm4333_vm4 }
 0x9e1   :  { %v4301_v25 = vsel %vm4298_vm2, %v4300_v26, %v4296_v10  ;;  %v4315_v40 = vsel %vm4314_vm1, %v6678_v20, %v4311_v2  ;;  %v4329_v28 = vsub.f32 1.0, %v4328_v18 }
 0x9e2   :  { %v4320_v31 = vsel %vm4317_vm3, %v4319_v47, %v4315_v40  ;;  %v4343_v4 = vmul.f32 %v6682_v5, %v4301_v25 }
 0x9e3   :  { %v4342_v60 = vmul.f32 %v4320_v31, %v7625_v29  ;;  %v4330_v56 = vmul.f32 %v6680_v22, %v4329_v28  ;;  %v7750_v29 = vld [vmem:[#allocation35_spill] sm:$0xff] }
 0x9e4   :  { %v3288_v39 = vadd.f32 %v7750_v29, %v7433_v38 }
 0x9e5   :  { %v7669_v23 = vadd.f32 %v4343_v4, %v4342_v60  ;;  %v4331_v14 = vadd.f32 %v6680_v22, %v4330_v56 }
 0x9e7   :  { %6683 = vtanh.f32 %v7669_v23  ;;  %v4335_v61 = vsel %vm4334_vm6, %v6680_v22, %v4331_v14 }
 0x9e8   :  { %v4340_v35 = vsel %vm4337_vm7, %v4339_v63, %v4335_v61 }
 0x9ed   :  { %v6684_v24 = vpop.eup %6683 }
 0x9ee   :  { %v4346_v12 = vmul.f32 %v6684_v24, %v4340_v35 }
 0x9f0   :  { %v4351_v44 = vpack.c.bf16 %v4346_v12, %v4346_v12 }
 0x9f2   :  { %4360 = vmatmul.bf16.vlgmr.msra.gmra.mxu0 %v4351_v44  ;;  %4373 = vmatmul.bf16.vlgmr.msra.gmra.mxu1 %v4351_v44 }
 0x9f3   :  { %4386 = vmatmul.bf16.vlgmr.msra.gmra.mxu2 %v4351_v44  ;;  %4399 = vmatmul.bf16.vlgmr.msra.gmra.mxu3 %v4351_v44 }
 0xa6f   :  { %v4361_v27 = vpop.f32.mrf.mxu0  ;;  %v4374_v21 = vpop.f32.mrf.mxu1 }
 0xa70   :  { %v4404_v13 = vadd.f32 %v4361_v27, %v3288_v39  ;;  %v4405_v45 = vadd.f32 %v4374_v21, %v3317_v11 }
 0xa72   :  { %v6088_v59 = vmul.f32 -1.442695, %v4404_v13  ;;  %v6089_v54 = vmul.f32 -1.442695, %v4405_v45 }
 0xa74   :  { %6685 = vpow2.f32 %v6088_v59  ;;  %v7755_v59 = vld [vmem:[#allocation40_spill] sm:$0xff] }
 0xa75   :  { %6687 = vpow2.f32 %v6089_v54  ;;  %v3319_v54 = vadd.f32 %v7755_v59, %v7435_v62 }
 0xa76   :  { %v4387_v9 = vpop.f32.mrf.mxu2  ;;  %v4400_v58 = vpop.f32.mrf.mxu3 }
 0xa77   :  { %v4407_v41 = vadd.f32 %v4400_v58, %v3375_v15  ;;  %v4363_v37 = vpop.f32.mrf.mxu0  ;;  %v4376_v30 = vpop.f32.mrf.mxu1  ;;  %v4406_v48 = vadd.f32 %v4387_v9, %v3346_v36 }
 0xa78   :  { %v7756_v30 = vld [vmem:[#allocation42_spill] sm:$0xff] }
 0xa79   :  { %v6090_v55 = vmul.f32 -1.442695, %v4407_v41 }
 0xa7a   :  { %v6686_v33 = vpop.eup %6685 }
 0xa7b   :  { %v6688_v53 = vpop.eup %6687  ;;  %v4411_v49 = vadd.f32 1.0, %v6686_v33  ;;  %6689 = vpow2.f32 %v6090_v55  ;;  %v3377_v55 = vadd.f32 %v7756_v30, %v7443_v0 }
 0xa7c   :  { %v4430_v3 = vadd.f32 1.0, %v6688_v53 }
 0xa7d   :  { %6691 = vrcp.f32 %v4411_v49  ;;  %v4423_v22 = vand.u32 2147483648, %v4411_v49  ;;  %v4421_v2 = vand.u32 2147483647, %v4411_v49  ;;  %vm4417_vm10 = vweird.f32 %v4411_v49 }
 0xa7e   :  { %6693 = vrcp.f32 %v4430_v3  ;;  %v4389_v50 = vpop.f32.mrf.mxu2  ;;  %v4402_v19 = vpop.f32.mrf.mxu3  ;;  %v4442_v46 = vand.u32 2147483648, %v4430_v3  ;;  %v4440_v47 = vand.u32 2147483647, %v4430_v3  ;;  %vm4436_vm11 = vweird.f32 %v4430_v3 }
 0xa7f   :  { %v4424_v25 = vor.u32 1.1754944e-38, %v4423_v22  ;;  %vm4422_vm14 = vcmp.eq.f32.partialorder %v4421_v2, 8.507059e+37 }
 0xa80   :  { %v4443_v31 = vor.u32 1.1754944e-38, %v4442_v46  ;;  %vm4441_vm15 = vcmp.eq.f32.partialorder %v4440_v47, 8.507059e+37 }
 0xa81   :  { %v6690_v20 = vpop.eup %6689 }
 0xa82   :  { %v4450_v42 = vadd.f32 1.0, %v6690_v20 }
 0xa83   :  { %v6692_v43 = vpop.eup %6691 }
 0xa84   :  { %v6694_v51 = vpop.eup %6693  ;;  %v4413_v7 = vmul.f32 %v6692_v43, %v4411_v49  ;;  %6695 = vrcp.f32 %v4450_v42  ;;  %vm4418_vm8 = vweird.f32 %v6692_v43  ;;  %v4462_v44 = vand.u32 2147483648, %v4450_v42 }
 0xa85   :  { %v4432_v16 = vmul.f32 %v6694_v51, %v4430_v3  ;;  %6697 = vtanh.f32 %v4406_v48  ;;  %vm4437_vm9 = vweird.f32 %v6694_v51  ;;  %vm4419_vm12 = vmor %vm4417_vm10, %vm4418_vm8  ;;  %vm4456_vm1 = vweird.f32 %v4450_v42  ;;  %v7757_v48 = vld [vmem:[#allocation41_spill] sm:$0xff] }
 0xa86   :  { %v4414_v32 = vsub.f32 1.0, %v4413_v7  ;;  %vm4438_vm13 = vmor %vm4436_vm11, %vm4437_vm9  ;;  %v4460_v29 = vand.u32 2147483647, %v4450_v42  ;;  %v4463_v17 = vor.u32 1.1754944e-38, %v4462_v44  ;;  %v3348_v0 = vadd.f32 %v7757_v48, %v7732_v1 }
 0xa87   :  { %v4433_v57 = vsub.f32 1.0, %v4432_v16 }
 0xa88   :  { %v4415_v26 = vmul.f32 %v6692_v43, %v4414_v32  ;;  %vm4461_vm3 = vcmp.eq.f32.partialorder %v4460_v29, 8.507059e+37 }
 0xa89   :  { %v4434_v18 = vmul.f32 %v6694_v51, %v4433_v57 }
 0xa8a   :  { %v6696_v10 = vpop.eup %6695  ;;  %v4416_v5 = vadd.f32 %v6692_v43, %v4415_v26 }
 0xa8b   :  { %v4435_v40 = vadd.f32 %v6694_v51, %v4434_v18  ;;  %v4452_v28 = vmul.f32 %v6696_v10, %v4450_v42  ;;  %v6698_v60 = vpop.eup %6697  ;;  %vm4457_vm0 = vweird.f32 %v6696_v10 }
 0xa8c   :  { %v4420_v4 = vsel %vm4419_vm12, %v6692_v43, %v4416_v5  ;;  %vm4458_vm2 = vmor %vm4456_vm1, %vm4457_vm0 }
 0xa8d   :  { %v4425_v56 = vsel %vm4422_vm14, %v4424_v25, %v4420_v4  ;;  %v4439_v14 = vsel %vm4438_vm13, %v6694_v51, %v4435_v40  ;;  %v4453_v34 = vsub.f32 1.0, %v4452_v28 }
 0xa8e   :  { %v4444_v6 = vsel %vm4441_vm15, %v4443_v31, %v4439_v14  ;;  %v4467_v61 = vmul.f32 %v6698_v60, %v4425_v56 }
 0xa8f   :  { %v4466_v63 = vmul.f32 %v4444_v6, %v7669_v23  ;;  %v4454_v24 = vmul.f32 %v6696_v10, %v4453_v34  ;;  %v7754_v23 = vld [vmem:[#allocation39_spill] sm:$0xff] }
 0xa90   :  { %v3290_v45 = vadd.f32 %v7754_v23, %v7433_v38 }
 0xa91   :  { %v7681_v35 = vadd.f32 %v4467_v61, %v4466_v63  ;;  %v4455_v12 = vadd.f32 %v6696_v10, %v4454_v24 }
 0xa93   :  { %6699 = vtanh.f32 %v7681_v35  ;;  %v4459_v39 = vsel %vm4458_vm2, %v6696_v10, %v4455_v12 }
 0xa94   :  { %v4464_v27 = vsel %vm4461_vm3, %v4463_v17, %v4459_v39 }
 0xa99   :  { %v6700_v11 = vpop.eup %6699 }
 0xa9a   :  { %v4470_v21 = vmul.f32 %v6700_v11, %v4464_v27 }
 0xa9c   :  { %v4475_v13 = vpack.c.bf16 %v4470_v21, %v4470_v21 }
 0xa9e   :  { %4484 = vmatmul.bf16.vlgmr.msrb.gmra.mxu0 %v4475_v13  ;;  %4497 = vmatmul.bf16.vlgmr.msrb.gmra.mxu1 %v4475_v13 }
 0xa9f   :  { %4510 = vmatmul.bf16.vlgmr.msrb.gmra.mxu2 %v4475_v13  ;;  %4523 = vmatmul.bf16.vlgmr.msrb.gmra.mxu3 %v4475_v13 }
 0xb1b   :  { %v4485_v8 = vpop.f32.mrf.mxu0  ;;  %v4498_v15 = vpop.f32.mrf.mxu1 }
 0xb1c   :  { %v4528_v9 = vadd.f32 %v4485_v8, %v3290_v45  ;;  %v4529_v58 = vadd.f32 %v4498_v15, %v3319_v54 }
 0xb1e   :  { %v6091_v41 = vmul.f32 -1.442695, %v4528_v9  ;;  %v6092_v37 = vmul.f32 -1.442695, %v4529_v58 }
 0xb20   :  { %6701 = vpow2.f32 %v6091_v41 }
 0xb21   :  { %6703 = vpow2.f32 %v6092_v37 }
 0xb22   :  { %v4511_v33 = vpop.f32.mrf.mxu2  ;;  %v4524_v53 = vpop.f32.mrf.mxu3 }
 0xb23   :  { %v4531_v49 = vadd.f32 %v4524_v53, %v3377_v55  ;;  %v4487_v3 = vpop.f32.mrf.mxu0  ;;  %v4500_v50 = vpop.f32.mrf.mxu1  ;;  %v4530_v16 = vadd.f32 %v4511_v33, %v3348_v0 }
 0xb25   :  { %v6093_v38 = vmul.f32 -1.442695, %v4531_v49 }
 0xb26   :  { %v6702_v19 = vpop.eup %6701 }
 0xb27   :  { %v6704_v20 = vpop.eup %6703  ;;  %v4535_v62 = vadd.f32 1.0, %v6702_v19  ;;  %6705 = vpow2.f32 %v6093_v38 }
 0xb28   :  { %v4554_v52 = vadd.f32 1.0, %v6704_v20 }
 0xb29   :  { %6707 = vrcp.f32 %v4535_v62  ;;  %v4547_v2 = vand.u32 2147483648, %v4535_v62  ;;  %v4545_v10 = vand.u32 2147483647, %v4535_v62  ;;  %vm4541_vm6 = vweird.f32 %v4535_v62 }
 0xb2a   :  { %6709 = vrcp.f32 %v4554_v52  ;;  %v4513_v36 = vpop.f32.mrf.mxu2  ;;  %v4526_v42 = vpop.f32.mrf.mxu3  ;;  %v4566_v18 = vand.u32 2147483648, %v4554_v52  ;;  %v4564_v25 = vand.u32 2147483647, %v4554_v52  ;;  %vm4560_vm7 = vweird.f32 %v4554_v52 }
 0xb2b   :  { %v4548_v28 = vor.u32 1.1754944e-38, %v4547_v2  ;;  %vm4546_vm10 = vcmp.eq.f32.partialorder %v4545_v10, 8.507059e+37 }
 0xb2c   :  { %v4567_v60 = vor.u32 1.1754944e-38, %v4566_v18  ;;  %vm4565_vm11 = vcmp.eq.f32.partialorder %v4564_v25, 8.507059e+37 }
 0xb2d   :  { %v6706_v43 = vpop.eup %6705 }
 0xb2e   :  { %v4574_v51 = vadd.f32 1.0, %v6706_v43 }
 0xb2f   :  { %v6708_v7 = vpop.eup %6707 }
 0xb30   :  { %v6710_v32 = vpop.eup %6709  ;;  %v4537_v57 = vmul.f32 %v6708_v7, %v4535_v62  ;;  %6711 = vrcp.f32 %v4574_v51  ;;  %vm4542_vm4 = vweird.f32 %v6708_v7  ;;  %v4586_v17 = vand.u32 2147483648, %v4574_v51 }
 0xb31   :  { %v4556_v22 = vmul.f32 %v6710_v32, %v4554_v52  ;;  %6713 = vtanh.f32 %v4530_v16  ;;  %vm4561_vm5 = vweird.f32 %v6710_v32  ;;  %vm4543_vm8 = vmor %vm4541_vm6, %vm4542_vm4  ;;  %vm4580_vm13 = vweird.f32 %v4574_v51 }
 0xb32   :  { %v4538_v46 = vsub.f32 1.0, %v4537_v57  ;;  %vm4562_vm9 = vmor %vm4560_vm7, %vm4561_vm5  ;;  %v4584_v11 = vand.u32 2147483647, %v4574_v51  ;;  %v4587_v21 = vor.u32 1.1754944e-38, %v4586_v17 }
 0xb33   :  { %v4557_v26 = vsub.f32 1.0, %v4556_v22 }
 0xb34   :  { %v4539_v47 = vmul.f32 %v6708_v7, %v4538_v46  ;;  %vm4585_vm15 = vcmp.eq.f32.partialorder %v4584_v11, 8.507059e+37 }
 0xb35   :  { %v4558_v5 = vmul.f32 %v6710_v32, %v4557_v26 }
 0xb36   :  { %v6712_v40 = vpop.eup %6711  ;;  %v4540_v1 = vadd.f32 %v6708_v7, %v4539_v47 }
 0xb37   :  { %v4559_v31 = vadd.f32 %v6710_v32, %v4558_v5  ;;  %v4576_v4 = vmul.f32 %v6712_v40, %v4574_v51  ;;  %v6714_v14 = vpop.eup %6713  ;;  %vm4581_vm12 = vweird.f32 %v6712_v40 }
 0xb38   :  { %v4544_v56 = vsel %vm4543_vm8, %v6708_v7, %v4540_v1  ;;  %vm4582_vm14 = vmor %vm4580_vm13, %vm4581_vm12 }
 0xb39   :  { %v4549_v34 = vsel %vm4546_vm10, %v4548_v28, %v4544_v56  ;;  %v4563_v6 = vsel %vm4562_vm9, %v6710_v32, %v4559_v31  ;;  %v4577_v61 = vsub.f32 1.0, %v4576_v4 }
 0xb3a   :  { %v4568_v63 = vsel %vm4565_vm11, %v4567_v60, %v4563_v6  ;;  %v4591_v24 = vmul.f32 %v6714_v14, %v4549_v34 }
 0xb3b   :  { %v4590_v12 = vmul.f32 %v4568_v63, %v7681_v35  ;;  %v4578_v44 = vmul.f32 %v6712_v40, %v4577_v61 }
 0xb3d   :  { %v4592_v29 = vadd.f32 %v4591_v24, %v4590_v12  ;;  %v4579_v39 = vadd.f32 %v6712_v40, %v4578_v44 }
 0xb3f   :  { %6715 = vtanh.f32 %v4592_v29  ;;  %v4583_v27 = vsel %vm4582_vm14, %v6712_v40, %v4579_v39 }
 0xb40   :  { %v4588_v35 = vsel %vm4585_vm15, %v4587_v21, %v4583_v27 }
 0xb45   :  { %v6716_v13 = vpop.eup %6715 }
 0xb46   :  { %v4594_v23 = vmul.f32 %v6716_v13, %v4588_v35 }
 0xb48   :  { %4595 = vst [vmem:[#allocation13] sm:$0xff] %v4594_v23 }
 0xb49   :  { %4606 = dma.vmem_to_hbm [thread:$0]  %s4602_s4, 128, %s4604_s21, [#allocation6]  }
 0xb4a   :  { %6867 = dma.done.wait [#allocation6], 128  }
 0xb4b   :  { %6868 = vsyncadd [#allocation6], 4294967168 }
 0xb4c   :  { %4611 = vsyncpa [#allocation5], 1 }
 0xb4d   :  { %4612 = vsyncpa [#allocation8], 1 }
 0xb4e   :  { %4613 = vsyncpa [#allocation11], 1 }
 0xb4f   :  { %4614 = vsyncpa [#allocation6], 1 }

</bundles_post_ra>
